<compile_context>
chip_gen: v5e
topology: v5e:2x2
jax: 0.10.0
libtpu: 0.0.40
codegen_flags: <defaults>
</compile_context>

<pallas_src>
import functools
import math

import jax
import jax.numpy as jnp
from jax.experimental import pallas as pl
from jax.experimental.pallas import tpu as pltpu

# Sized against v7x's 64 MiB physical VMEM (v5e/v6e have 128 MiB).
VMEM_LIMIT = 48 * 1024 * 1024

# tile targets (production-shape oriented; demo shapes simply use full dims)
TILE_M = 256      # token-row tile (multiple of 8)
TILE_N = 512      # output-feature tile (multiple of 128)
TILE_K = 512      # reduction tile (multiple of 128)


def _pick_tile(dim, target, align):
    """Largest multiple of `align` <= target that divides dim, else the full dim."""
    if dim <= target:
        return dim
    t = (target // align) * align
    while t >= align:
        if dim % t == 0:
            return t
        t -= align
    return dim


def _rms(x, eps):
    var = jnp.mean(x * x, axis=-1, keepdims=True)
    return x * jax.lax.rsqrt(var + eps)


# ------------------------------ Pallas kernels ------------------------------

def mtp_input_kernel(pos_ref, prev_ref, emb_ref, w_hid_ref, w_tok_ref,
                     wp_ref, we_ref, o_ref, *, eps):
    """Fused: zero embeds at pos==0, token/hidden RMSNorm, split input_proj.

    Instead of concat([prev, emb]) @ W[2H,H] we compute prev @ Wp + emb @ We
    (Wp = W[:H], We = W[H:]) so no [T, 2H] buffer is ever materialized.
    """
    pos = pos_ref[...]                                     # [tm, 1] int32
    e = emb_ref[...].astype(jnp.float32)
    e = jnp.where(pos == 0, 0.0, e)                        # inputs_embeds[positions == 0] = 0
    e = (_rms(e, eps) * w_tok_ref[...]).astype(jnp.bfloat16)          # token_layernorm
    p = (_rms(prev_ref[...].astype(jnp.float32), eps)
         * w_hid_ref[...]).astype(jnp.bfloat16)                        # hidden_layernorm
    acc = jnp.dot(p, wp_ref[...], preferred_element_type=jnp.float32)
    acc = acc + jnp.dot(e, we_ref[...], preferred_element_type=jnp.float32)
    o_ref[...] = acc.astype(o_ref.dtype)


def qkv_kernel(x_ref, wln_ref, w_ref, b_ref, o_ref, *, eps):
    """input_layernorm prologue + QKV matmul + bias epilogue."""
    xn = (_rms(x_ref[...].astype(jnp.float32), eps) * wln_ref[...]).astype(jnp.bfloat16)
    acc = jnp.dot(xn, w_ref[...], preferred_element_type=jnp.float32) + b_ref[...]
    o_ref[...] = acc.astype(o_ref.dtype)


def attention_kernel(q_ref, k_ref, v_ref, cos_ref, sin_ref, o_ref,
                     *, scale, group, head_dim):
    """Causal attention for one KV head and its whole GQA group of Q heads.

    RoPE on K is applied once per KV head (not once per Q head); the 1/sqrt(d)
    scale is folded into Q ([T,D] multiplies instead of [T,T]); scores use
    dot_general contracting the last dims (no explicit K transpose); the softmax
    divide goes through the EUP via pl.reciprocal(approx=True).
    """
    d = head_dim
    cos = cos_ref[...]                                     # [T, d] f32
    sin = sin_ref[...]

    def rope(x):                                           # neox-style half rotation
        half = d // 2
        x1, x2 = x[:, :half], x[:, half:]
        rot = jnp.concatenate([-x2, x1], axis=-1)
        return x * cos + rot * sin

    k = rope(k_ref[...].astype(jnp.float32)).astype(jnp.bfloat16)   # [T, d]
    v = v_ref[...]                                                   # [T, d] bf16
    T = k.shape[0]
    row = jax.lax.broadcasted_iota(jnp.int32, (T, T), 0)
    col = jax.lax.broadcasted_iota(jnp.int32, (T, T), 1)
    causal = col <= row                                    # prefill, no KV cache
    # TODO(synk): for long sequences, tile the KV axis flash-style (online
    # softmax) to bound VMEM at O(T*tk) instead of O(T^2).

    for g in range(group):                                 # static unroll over GQA group
        q = q_ref[:, g * d:(g + 1) * d].astype(jnp.float32)
        q = (rope(q) * scale).astype(jnp.bfloat16)
        s = jax.lax.dot_general(q, k, (((1,), (1,)), ((), ())),
                                preferred_element_type=jnp.float32)  # [T, T]
        s = jnp.where(causal, s, -jnp.inf)
        m = jnp.max(s, axis=-1, keepdims=True)
        p = jnp.exp(s - m)
        denom = jnp.sum(p, axis=-1, keepdims=True)
        o = jnp.dot(p.astype(jnp.bfloat16), v, preferred_element_type=jnp.float32)
        o = o * pl.reciprocal(denom, approx=True)
        o_ref[:, g * d:(g + 1) * d] = o.astype(o_ref.dtype)


def o_proj_kernel(attn_ref, res_ref, w_ref, wln_ref, norm_ref, newres_ref,
                  acc_ref, *, eps):
    """K-tiled o_proj + fused add_rmsnorm(attn_out, residual) epilogue."""
    k = pl.program_id(1)

    @pl.when(k == 0)
    def _():
        acc_ref[...] = jnp.zeros_like(acc_ref)

    acc_ref[...] += jnp.dot(attn_ref[...], w_ref[...],
                            preferred_element_type=jnp.float32)

    @pl.when(k == pl.num_programs(1) - 1)
    def _():
        s = acc_ref[...] + res_ref[...].astype(jnp.float32)
        newres_ref[...] = s.astype(newres_ref.dtype)
        norm_ref[...] = (_rms(s, eps) * wln_ref[...]).astype(norm_ref.dtype)


def mlp_kernel(x_ref, res_ref, wg_ref, wu_ref, wd_ref, wln_ref, out_ref,
               acc_ref, *, eps):
    """I-tiled SwiGLU MLP + fused (residual + mlp_out) + final_layernorm epilogue."""
    j = pl.program_id(1)

    @pl.when(j == 0)
    def _():
        acc_ref[...] = jnp.zeros_like(acc_ref)

    x = x_ref[...]                                          # [tm, H] bf16
    g = jnp.dot(x, wg_ref[...], preferred_element_type=jnp.float32)
    u = jnp.dot(x, wu_ref[...], preferred_element_type=jnp.float32)
    h = ((g * jax.nn.sigmoid(g)) * u).astype(jnp.bfloat16)  # only [tm, ti] live
    acc_ref[...] += jnp.dot(h, wd_ref[...], preferred_element_type=jnp.float32)

    @pl.when(j == pl.num_programs(1) - 1)
    def _():
        s = acc_ref[...] + res_ref[...].astype(jnp.float32)
        out_ref[...] = (_rms(s, eps) * wln_ref[...]).astype(out_ref.dtype)


# ------------------------------ model glue ------------------------------

def rope_cos_sin(positions, d, theta):
    inv_freq = 1.0 / (theta ** (jnp.arange(0, d, 2, dtype=jnp.float32) / d))
    freqs = positions.astype(jnp.float32)[:, None] * inv_freq[None, :]   # [T, d/2]
    cos = jnp.cos(freqs)
    sin = jnp.sin(freqs)
    return jnp.concatenate([cos, cos], axis=-1), jnp.concatenate([sin, sin], axis=-1)


def init_params(key, cfg):
    H, I = cfg["hidden"], cfg["intermediate"]
    nq, nkv, d = cfg["num_heads"], cfg["num_kv_heads"], cfg["head_dim"]
    qkv_w = (nq + 2 * nkv) * d
    ks = jax.random.split(key, 8)
    s, bf = 0.02, jnp.bfloat16
    return dict(
        w_token_ln=jnp.ones((1, H), jnp.float32),
        w_hidden_ln=jnp.ones((1, H), jnp.float32),
        # input_proj [2H, H] split into the prev-half and emb-half
        w_proj_prev=(jax.random.normal(ks[0], (H, H), jnp.float32) * s).astype(bf),
        w_proj_emb=(jax.random.normal(ks[1], (H, H), jnp.float32) * s).astype(bf),
        w_input_ln=jnp.ones((1, H), jnp.float32),
        w_qkv=(jax.random.normal(ks[2], (H, qkv_w), jnp.float32) * s).astype(bf),
        b_qkv=jax.random.normal(ks[3], (1, qkv_w), jnp.float32) * s,
        w_o=(jax.random.normal(ks[4], (nq * d, H), jnp.float32) * s).astype(bf),
        w_post_ln=jnp.ones((1, H), jnp.float32),
        w_gate=(jax.random.normal(ks[5], (H, I), jnp.float32) * s).astype(bf),
        w_up=(jax.random.normal(ks[6], (H, I), jnp.float32) * s).astype(bf),
        w_down=(jax.random.normal(ks[7], (I, H), jnp.float32) * s).astype(bf),
        w_final_ln=jnp.ones((1, H), jnp.float32),
    )


def mimo_mtp_forward(params, inputs_embeds, positions, previous_hidden_states, cfg):
    eps = cfg["eps"]
    nq, nkv, d = cfg["num_heads"], cfg["num_kv_heads"], cfg["head_dim"]
    group = nq // nkv
    T, H = inputs_embeds.shape
    qkv_w = (nq + 2 * nkv) * d
    I = params["w_gate"].shape[1]

    pos2d = positions.reshape(T, 1).astype(jnp.int32)

    tm = _pick_tile(T, TILE_M, 8)
    tn_h = _pick_tile(H, TILE_N, 128)
    tn_qkv = _pick_tile(qkv_w, TILE_N, 128)
    tk_o = _pick_tile(nq * d, TILE_K, 128)
    ti = _pick_tile(I, TILE_K, 128)

    cp_pp = pltpu.CompilerParams(dimension_semantics=("parallel", "parallel"),
                                 vmem_limit_bytes=VMEM_LIMIT)
    cp_pa = pltpu.CompilerParams(dimension_semantics=("parallel", "arbitrary"),
                                 vmem_limit_bytes=VMEM_LIMIT)
    cp_p1 = pltpu.CompilerParams(dimension_semantics=("parallel",),
                                 vmem_limit_bytes=VMEM_LIMIT)

    # ---- 1) fused MTP input projection; h0 is also the attention residual ----
    h0 = pl.pallas_call(
        functools.partial(mtp_input_kernel, eps=eps),
        out_shape=jax.ShapeDtypeStruct((T, H), jnp.bfloat16),
        grid=(T // tm, H // tn_h),
        in_specs=[
            pl.BlockSpec((tm, 1), lambda i, j: (i, 0)),
            pl.BlockSpec((tm, H), lambda i, j: (i, 0)),
            pl.BlockSpec((tm, H), lambda i, j: (i, 0)),
            pl.BlockSpec((1, H), lambda i, j: (0, 0)),
            pl.BlockSpec((1, H), lambda i, j: (0, 0)),
            pl.BlockSpec((H, tn_h), lambda i, j: (0, j)),
            pl.BlockSpec((H, tn_h), lambda i, j: (0, j)),
        ],
        out_specs=pl.BlockSpec((tm, tn_h), lambda i, j: (i, j)),
        compiler_params=cp_pp,
    )(pos2d, previous_hidden_states, inputs_embeds,
      params["w_hidden_ln"], params["w_token_ln"],
      params["w_proj_prev"], params["w_proj_emb"])

    # ---- 2) Qwen2 attention: fused input_layernorm + QKV + bias ----
    qkv = pl.pallas_call(
        functools.partial(qkv_kernel, eps=eps),
        out_shape=jax.ShapeDtypeStruct((T, qkv_w), jnp.bfloat16),
        grid=(T // tm, qkv_w // tn_qkv),
        in_specs=[
            pl.BlockSpec((tm, H), lambda i, j: (i, 0)),
            pl.BlockSpec((1, H), lambda i, j: (0, 0)),
            pl.BlockSpec((H, tn_qkv), lambda i, j: (0, j)),
            pl.BlockSpec((1, tn_qkv), lambda i, j: (0, j)),
        ],
        out_specs=pl.BlockSpec((tm, tn_qkv), lambda i, j: (i, j)),
        compiler_params=cp_pp,
    )(h0, params["w_input_ln"], params["w_qkv"], params["b_qkv"])

    # ---- 3) attention, one program per KV head; heads sliced from the fused
    #         QKV tensor via BlockSpec (no host reshape/transpose) ----
    # TODO(synk): vLLM's Attention with paged KV cache is not modeled; this is
    # prefill-style causal attention over the provided tokens only.
    cos, sin = rope_cos_sin(positions, d, cfg["rope_theta"])
    attn = pl.pallas_call(
        functools.partial(attention_kernel, scale=1.0 / math.sqrt(d),
                          group=group, head_dim=d),
        out_shape=jax.ShapeDtypeStruct((T, nq * d), jnp.bfloat16),
        grid=(nkv,),
        in_specs=[
            pl.BlockSpec((T, group * d), lambda h: (0, h)),            # Q group
            pl.BlockSpec((T, d), lambda h: (0, nq + h)),               # K head
            pl.BlockSpec((T, d), lambda h: (0, nq + nkv + h)),         # V head
            pl.BlockSpec((T, d), lambda h: (0, 0)),                    # cos
            pl.BlockSpec((T, d), lambda h: (0, 0)),                    # sin
        ],
        out_specs=pl.BlockSpec((T, group * d), lambda h: (0, h)),
        compiler_params=cp_p1,
    )(qkv, qkv, qkv, cos, sin)

    # ---- 4) o_proj (K-tiled) + fused residual add + post_attention_layernorm ----
    h_attn_norm, resid1 = pl.pallas_call(
        functools.partial(o_proj_kernel, eps=eps),
        out_shape=(jax.ShapeDtypeStruct((T, H), jnp.bfloat16),
                   jax.ShapeDtypeStruct((T, H), jnp.bfloat16)),
        grid=(T // tm, (nq * d) // tk_o),
        in_specs=[
            pl.BlockSpec((tm, tk_o), lambda i, k: (i, k)),
            pl.BlockSpec((tm, H), lambda i, k: (i, 0)),
            pl.BlockSpec((tk_o, H), lambda i, k: (k, 0)),
            pl.BlockSpec((1, H), lambda i, k: (0, 0)),
        ],
        out_specs=(pl.BlockSpec((tm, H), lambda i, k: (i, 0)),
                   pl.BlockSpec((tm, H), lambda i, k: (i, 0))),
        scratch_shapes=[pltpu.VMEM((tm, H), jnp.float32)],
        compiler_params=cp_pa,
    )(attn, h0, params["w_o"], params["w_post_ln"])

    # ---- 5) SwiGLU MLP (I-tiled) + fused residual add + final_layernorm ----
    out = pl.pallas_call(
        functools.partial(mlp_kernel, eps=eps),
        out_shape=jax.ShapeDtypeStruct((T, H), jnp.float32),
        grid=(T // tm, I // ti),
        in_specs=[
            pl.BlockSpec((tm, H), lambda i, j: (i, 0)),
            pl.BlockSpec((tm, H), lambda i, j: (i, 0)),
            pl.BlockSpec((H, ti), lambda i, j: (0, j)),
            pl.BlockSpec((H, ti), lambda i, j: (0, j)),
            pl.BlockSpec((ti, H), lambda i, j: (j, 0)),
            pl.BlockSpec((1, H), lambda i, j: (0, 0)),
        ],
        out_specs=pl.BlockSpec((tm, H), lambda i, j: (i, 0)),
        scratch_shapes=[pltpu.VMEM((tm, H), jnp.float32)],
        compiler_params=cp_pa,
    )(h_attn_norm, resid1, params["w_gate"], params["w_up"], params["w_down"],
      params["w_final_ln"])
    return out


if __name__ == "__main__":
    # Small but layout-friendly shapes (head_dim / hidden multiples of 128 so all
    # BlockSpec last dims are lane-aligned); grids exercise N tiling (QKV), K
    # accumulation (o_proj) and I accumulation (MLP).
    cfg = dict(hidden=128, intermediate=1024, num_heads=8, num_kv_heads=2,
               head_dim=128, eps=1e-6, rope_theta=10000.0)
    T = 8

    key = jax.random.PRNGKey(0)
    k_params, k_emb, k_prev = jax.random.split(key, 3)
    params = init_params(k_params, cfg)

    inputs_embeds = jax.random.normal(k_emb, (T, cfg["hidden"]), jnp.float32)
    positions = jnp.arange(T, dtype=jnp.int32)      # position 0 exercises the zeroing
    previous_hidden_states = jax.random.normal(k_prev, (T, cfg["hidden"]), jnp.float32)

    fwd = jax.jit(functools.partial(mimo_mtp_forward, cfg=cfg))
    out = fwd(params, inputs_embeds, positions, previous_hidden_states)
    jax.block_until_ready(out)
    assert out.shape == (T, cfg["hidden"]) and bool(jnp.all(jnp.isfinite(out)))
    print("KERNEL_OK")
</pallas_src>

<mosaic_0001>
module attributes {stable_mosaic.version = 11 : i64} {
  func.func @qkv_kernel(%arg0: i32, %arg1: i32, %arg2: memref<8x128xbf16, #tpu.memory_space<vmem>>, %arg3: memref<1x128xf32, #tpu.memory_space<vmem>>, %arg4: memref<128x512xbf16, #tpu.memory_space<vmem>>, %arg5: memref<1x512xf32, #tpu.memory_space<vmem>>, %arg6: memref<8x512xbf16, #tpu.memory_space<vmem>>) attributes {dimension_semantics = [#tpu.dimension_semantics<parallel>, #tpu.dimension_semantics<parallel>], iteration_bounds = array<i64: 1, 3>, scalar_prefetch = 0 : i64, scratch_operands = 0 : i64, tpu.core_type = #tpu.core_type<tc>, window_params = [{transform_indices = @transform_0, window_bounds = array<i64: 8, 128>}, {pipeline_mode = #tpu.pipeline_mode<synchronous>, transform_indices = @transform_1, window_bounds = array<i64: 1, 128>}, {transform_indices = @transform_2, window_bounds = array<i64: 128, 512>}, {transform_indices = @transform_3, window_bounds = array<i64: 1, 512>}, {transform_indices = @transform_4, window_bounds = array<i64: 8, 512>}]} {
    %c0 = arith.constant 0 : index
    %c0_0 = arith.constant 0 : index
    %0 = vector.load %arg2[%c0, %c0_0] : memref<8x128xbf16, #tpu.memory_space<vmem>>, vector<8x128xbf16>
    %1 = arith.extf %0 : vector<8x128xbf16> to vector<8x128xf32>
    %2 = arith.mulf %1, %1 : vector<8x128xf32>
    %cst = arith.constant dense<0.000000e+00> : vector<8xf32>
    %3 = vector.multi_reduction <add>, %2, %cst [1] : vector<8x128xf32> to vector<8xf32>
    %4 = vector.shape_cast %3 : vector<8xf32> to vector<8x1xf32>
    %cst_1 = arith.constant 1.280000e+02 : f32
    %5 = vector.broadcast %cst_1 : f32 to vector<8x1xf32>
    %6 = arith.divf %4, %5 : vector<8x1xf32>
    %cst_2 = arith.constant 9.99999997E-7 : f32
    %7 = vector.broadcast %cst_2 : f32 to vector<8x1xf32>
    %8 = arith.addf %6, %7 : vector<8x1xf32>
    %9 = math.rsqrt %8 : vector<8x1xf32>
    %10 = vector.broadcast %9 : vector<8x1xf32> to vector<8x128xf32>
    %11 = arith.mulf %1, %10 : vector<8x128xf32>
    %c0_3 = arith.constant 0 : index
    %c0_4 = arith.constant 0 : index
    %12 = vector.load %arg3[%c0_3, %c0_4] : memref<1x128xf32, #tpu.memory_space<vmem>>, vector<1x128xf32>
    %13 = vector.broadcast %12 : vector<1x128xf32> to vector<8x128xf32>
    %14 = arith.mulf %11, %13 : vector<8x128xf32>
    %15 = arith.truncf %14 : vector<8x128xf32> to vector<8x128xbf16>
    %c0_5 = arith.constant 0 : index
    %c0_6 = arith.constant 0 : index
    %16 = vector.load %arg4[%c0_5, %c0_6] : memref<128x512xbf16, #tpu.memory_space<vmem>>, vector<128x512xbf16>
    %cst_7 = arith.constant dense<0.000000e+00> : vector<8x512xf32>
    %17 = tpu.matmul %15, %16, %cst_7 {dimension_numbers = #tpu.dot_dimension_numbers<[1], [0], [0], [1], [0, 0, 1, 1], [], []>} : vector<8x128xbf16>, vector<128x512xbf16>, vector<8x512xf32> -> vector<8x512xf32>
    %c0_8 = arith.constant 0 : index
    %c0_9 = arith.constant 0 : index
    %18 = vector.load %arg5[%c0_8, %c0_9] : memref<1x512xf32, #tpu.memory_space<vmem>>, vector<1x512xf32>
    %19 = vector.broadcast %18 : vector<1x512xf32> to vector<8x512xf32>
    %20 = arith.addf %17, %19 : vector<8x512xf32>
    %21 = arith.truncf %20 : vector<8x512xf32> to vector<8x512xbf16>
    %c0_10 = arith.constant 0 : index
    %c0_11 = arith.constant 0 : index
    %22 = vector.load %arg6[%c0_10, %c0_11] : memref<8x512xbf16, #tpu.memory_space<vmem>>, vector<8x512xbf16>
    tpu.vector_store %arg6[%c0_10, %c0_11], %21 {strides = array<i32>} : memref<8x512xbf16, #tpu.memory_space<vmem>>, vector<8x512xbf16>,
    return
  }
  func.func @transform_0(%arg0: i32, %arg1: i32) -> (i32, i32) {
    %c0_i32 = arith.constant 0 : i32
    %c0_i32_0 = arith.constant 0 : i32
    return %arg0, %c0_i32 : i32, i32
  }
  func.func @transform_1(%arg0: i32, %arg1: i32) -> (i32, i32) {
    %c0_i32 = arith.constant 0 : i32
    %c0_i32_0 = arith.constant 0 : i32
    %c0_i32_1 = arith.constant 0 : i32
    return %c0_i32, %c0_i32_0 : i32, i32
  }
  func.func @transform_2(%arg0: i32, %arg1: i32) -> (i32, i32) {
    %c0_i32 = arith.constant 0 : i32
    %c0_i32_0 = arith.constant 0 : i32
    return %c0_i32, %arg1 : i32, i32
  }
  func.func @transform_3(%arg0: i32, %arg1: i32) -> (i32, i32) {
    %c0_i32 = arith.constant 0 : i32
    %c0_i32_0 = arith.constant 0 : i32
    return %c0_i32, %arg1 : i32, i32
  }
  func.func @transform_4(%arg0: i32, %arg1: i32) -> (i32, i32) {
    %c0_i32 = arith.constant 0 : i32
    return %arg0, %arg1 : i32, i32
  }
}

module attributes {stable_mosaic.version = 11 : i64} {
  func.func @mtp_input_kernel(%arg0: i32, %arg1: i32, %arg2: memref<8x1xi32, #tpu.memory_space<vmem>>, %arg3: memref<8x128xf32, #tpu.memory_space<vmem>>, %arg4: memref<8x128xf32, #tpu.memory_space<vmem>>, %arg5: memref<1x128xf32, #tpu.memory_space<vmem>>, %arg6: memref<1x128xf32, #tpu.memory_space<vmem>>, %arg7: memref<128x128xbf16, #tpu.memory_space<vmem>>, %arg8: memref<128x128xbf16, #tpu.memory_space<vmem>>, %arg9: memref<8x128xbf16, #tpu.memory_space<vmem>>) attributes {dimension_semantics = [#tpu.dimension_semantics<parallel>, #tpu.dimension_semantics<parallel>], iteration_bounds = array<i64: 1, 1>, scalar_prefetch = 0 : i64, scratch_operands = 0 : i64, tpu.core_type = #tpu.core_type<tc>, window_params = [{transform_indices = @transform_0, window_bounds = array<i64: 8, 1>}, {transform_indices = @transform_1, window_bounds = array<i64: 8, 128>}, {transform_indices = @transform_2, window_bounds = array<i64: 8, 128>}, {pipeline_mode = #tpu.pipeline_mode<synchronous>, transform_indices = @transform_3, window_bounds = array<i64: 1, 128>}, {pipeline_mode = #tpu.pipeline_mode<synchronous>, transform_indices = @transform_4, window_bounds = array<i64: 1, 128>}, {transform_indices = @transform_5, window_bounds = array<i64: 128, 128>}, {transform_indices = @transform_6, window_bounds = array<i64: 128, 128>}, {transform_indices = @transform_7, window_bounds = array<i64: 8, 128>}]} {
    %c0 = arith.constant 0 : index
    %c0_0 = arith.constant 0 : index
    %0 = vector.load %arg2[%c0, %c0_0] : memref<8x1xi32, #tpu.memory_space<vmem>>, vector<8x1xi32>
    %c0_1 = arith.constant 0 : index
    %c0_2 = arith.constant 0 : index
    %1 = vector.load %arg4[%c0_1, %c0_2] : memref<8x128xf32, #tpu.memory_space<vmem>>, vector<8x128xf32>
    %c0_i32 = arith.constant 0 : i32
    %2 = vector.broadcast %c0_i32 : i32 to vector<8x1xi32>
    %3 = arith.cmpi eq, %0, %2 : vector<8x1xi32>
    %cst = arith.constant 0.000000e+00 : f32
    %4 = vector.shape_cast %3 : vector<8x1xi1> to vector<8x1xi1>
    %5 = vector.broadcast %4 : vector<8x1xi1> to vector<8x128xi1>
    %6 = vector.broadcast %cst : f32 to vector<8x128xf32>
    %7 = arith.select %5, %6, %1 : vector<8x128xi1>, vector<8x128xf32>
    %8 = arith.mulf %7, %7 : vector<8x128xf32>
    %cst_3 = arith.constant dense<0.000000e+00> : vector<8xf32>
    %9 = vector.multi_reduction <add>, %8, %cst_3 [1] : vector<8x128xf32> to vector<8xf32>
    %10 = vector.shape_cast %9 : vector<8xf32> to vector<8x1xf32>
    %cst_4 = arith.constant 1.280000e+02 : f32
    %11 = vector.broadcast %cst_4 : f32 to vector<8x1xf32>
    %12 = arith.divf %10, %11 : vector<8x1xf32>
    %cst_5 = arith.constant 9.99999997E-7 : f32
    %13 = vector.broadcast %cst_5 : f32 to vector<8x1xf32>
    %14 = arith.addf %12, %13 : vector<8x1xf32>
    %15 = math.rsqrt %14 : vector<8x1xf32>
    %16 = vector.broadcast %15 : vector<8x1xf32> to vector<8x128xf32>
    %17 = arith.mulf %7, %16 : vector<8x128xf32>
    %c0_6 = arith.constant 0 : index
    %c0_7 = arith.constant 0 : index
    %18 = vector.load %arg6[%c0_6, %c0_7] : memref<1x128xf32, #tpu.memory_space<vmem>>, vector<1x128xf32>
    %19 = vector.broadcast %18 : vector<1x128xf32> to vector<8x128xf32>
    %20 = arith.mulf %17, %19 : vector<8x128xf32>
    %21 = arith.truncf %20 : vector<8x128xf32> to vector<8x128xbf16>
    %c0_8 = arith.constant 0 : index
    %c0_9 = arith.constant 0 : index
    %22 = vector.load %arg3[%c0_8, %c0_9] : memref<8x128xf32, #tpu.memory_space<vmem>>, vector<8x128xf32>
    %23 = arith.mulf %22, %22 : vector<8x128xf32>
    %cst_10 = arith.constant dense<0.000000e+00> : vector<8xf32>
    %24 = vector.multi_reduction <add>, %23, %cst_10 [1] : vector<8x128xf32> to vector<8xf32>
    %25 = vector.shape_cast %24 : vector<8xf32> to vector<8x1xf32>
    %cst_11 = arith.constant 1.280000e+02 : f32
    %26 = vector.broadcast %cst_11 : f32 to vector<8x1xf32>
    %27 = arith.divf %25, %26 : vector<8x1xf32>
    %cst_12 = arith.constant 9.99999997E-7 : f32
    %28 = vector.broadcast %cst_12 : f32 to vector<8x1xf32>
    %29 = arith.addf %27, %28 : vector<8x1xf32>
    %30 = math.rsqrt %29 : vector<8x1xf32>
    %31 = vector.broadcast %30 : vector<8x1xf32> to vector<8x128xf32>
    %32 = arith.mulf %22, %31 : vector<8x128xf32>
    %c0_13 = arith.constant 0 : index
    %c0_14 = arith.constant 0 : index
    %33 = vector.load %arg5[%c0_13, %c0_14] : memref<1x128xf32, #tpu.memory_space<vmem>>, vector<1x128xf32>
    %34 = vector.broadcast %33 : vector<1x128xf32> to vector<8x128xf32>
    %35 = arith.mulf %32, %34 : vector<8x128xf32>
    %36 = arith.truncf %35 : vector<8x128xf32> to vector<8x128xbf16>
    %c0_15 = arith.constant 0 : index
    %c0_16 = arith.constant 0 : index
    %37 = vector.load %arg7[%c0_15, %c0_16] : memref<128x128xbf16, #tpu.memory_space<vmem>>, vector<128x128xbf16>
    %cst_17 = arith.constant dense<0.000000e+00> : vector<8x128xf32>
    %38 = tpu.matmul %36, %37, %cst_17 {dimension_numbers = #tpu.dot_dimension_numbers<[1], [0], [0], [1], [0, 0, 1, 1], [], []>} : vector<8x128xbf16>, vector<128x128xbf16>, vector<8x128xf32> -> vector<8x128xf32>
    %c0_18 = arith.constant 0 : index
    %c0_19 = arith.constant 0 : index
    %39 = vector.load %arg8[%c0_18, %c0_19] : memref<128x128xbf16, #tpu.memory_space<vmem>>, vector<128x128xbf16>
    %cst_20 = arith.constant dense<0.000000e+00> : vector<8x128xf32>
    %40 = tpu.matmul %21, %39, %cst_20 {dimension_numbers = #tpu.dot_dimension_numbers<[1], [0], [0], [1], [0, 0, 1, 1], [], []>} : vector<8x128xbf16>, vector<128x128xbf16>, vector<8x128xf32> -> vector<8x128xf32>
    %41 = arith.addf %38, %40 : vector<8x128xf32>
    %42 = arith.truncf %41 : vector<8x128xf32> to vector<8x128xbf16>
    %c0_21 = arith.constant 0 : index
    %c0_22 = arith.constant 0 : index
    %43 = vector.load %arg9[%c0_21, %c0_22] : memref<8x128xbf16, #tpu.memory_space<vmem>>, vector<8x128xbf16>
    tpu.vector_store %arg9[%c0_21, %c0_22], %42 {strides = array<i32>} : memref<8x128xbf16, #tpu.memory_space<vmem>>, vector<8x128xbf16>,
    return
  }
  func.func @transform_0(%arg0: i32, %arg1: i32) -> (i32, i32) {
    %c0_i32 = arith.constant 0 : i32
    %c0_i32_0 = arith.constant 0 : i32
    return %arg0, %c0_i32 : i32, i32
  }
  func.func @transform_1(%arg0: i32, %arg1: i32) -> (i32, i32) {
    %c0_i32 = arith.constant 0 : i32
    %c0_i32_0 = arith.constant 0 : i32
    return %arg0, %c0_i32 : i32, i32
  }
  func.func @transform_2(%arg0: i32, %arg1: i32) -> (i32, i32) {
    %c0_i32 = arith.constant 0 : i32
    %c0_i32_0 = arith.constant 0 : i32
    return %arg0, %c0_i32 : i32, i32
  }
  func.func @transform_3(%arg0: i32, %arg1: i32) -> (i32, i32) {
    %c0_i32 = arith.constant 0 : i32
    %c0_i32_0 = arith.constant 0 : i32
    %c0_i32_1 = arith.constant 0 : i32
    return %c0_i32, %c0_i32_0 : i32, i32
  }
  func.func @transform_4(%arg0: i32, %arg1: i32) -> (i32, i32) {
    %c0_i32 = arith.constant 0 : i32
    %c0_i32_0 = arith.constant 0 : i32
    %c0_i32_1 = arith.constant 0 : i32
    return %c0_i32, %c0_i32_0 : i32, i32
  }
  func.func @transform_5(%arg0: i32, %arg1: i32) -> (i32, i32) {
    %c0_i32 = arith.constant 0 : i32
    %c0_i32_0 = arith.constant 0 : i32
    return %c0_i32, %arg1 : i32, i32
  }
  func.func @transform_6(%arg0: i32, %arg1: i32) -> (i32, i32) {
    %c0_i32 = arith.constant 0 : i32
    %c0_i32_0 = arith.constant 0 : i32
    return %c0_i32, %arg1 : i32, i32
  }
  func.func @transform_7(%arg0: i32, %arg1: i32) -> (i32, i32) {
    %c0_i32 = arith.constant 0 : i32
    return %arg0, %arg1 : i32, i32
  }
}

module attributes {stable_mosaic.version = 11 : i64} {
  func.func @o_proj_kernel(%arg0: i32, %arg1: i32, %arg2: memref<8x512xbf16, #tpu.memory_space<vmem>>, %arg3: memref<8x128xbf16, #tpu.memory_space<vmem>>, %arg4: memref<512x128xbf16, #tpu.memory_space<vmem>>, %arg5: memref<1x128xf32, #tpu.memory_space<vmem>>, %arg6: memref<8x128xbf16, #tpu.memory_space<vmem>>, %arg7: memref<8x128xbf16, #tpu.memory_space<vmem>>, %arg8: memref<8x128xf32, #tpu.memory_space<vmem>>) attributes {dimension_semantics = [#tpu.dimension_semantics<parallel>, #tpu.dimension_semantics<arbitrary>], iteration_bounds = array<i64: 1, 2>, scalar_prefetch = 0 : i64, scratch_operands = 1 : i64, tpu.core_type = #tpu.core_type<tc>, window_params = [{transform_indices = @transform_0, window_bounds = array<i64: 8, 512>}, {transform_indices = @transform_1, window_bounds = array<i64: 8, 128>}, {transform_indices = @transform_2, window_bounds = array<i64: 512, 128>}, {pipeline_mode = #tpu.pipeline_mode<synchronous>, transform_indices = @transform_3, window_bounds = array<i64: 1, 128>}, {transform_indices = @transform_4, window_bounds = array<i64: 8, 128>}, {transform_indices = @transform_5, window_bounds = array<i64: 8, 128>}]} {
    %c0_i32 = arith.constant 0 : i32
    %0 = arith.cmpi eq, %arg1, %c0_i32 : i32
    %1 = arith.extui %0 : i1 to i32
    %c0_i32_0 = arith.constant 0 : i32
    %2 = arith.cmpi ne, %1, %c0_i32_0 : i32
    scf.if %2 {
      %cst_9 = arith.constant 0.000000e+00 : f32
      %12 = vector.broadcast %cst_9 : f32 to vector<8x128xf32>
      %c0_10 = arith.constant 0 : index
      %c0_11 = arith.constant 0 : index
      %13 = vector.load %arg8[%c0_10, %c0_11] : memref<8x128xf32, #tpu.memory_space<vmem>>, vector<8x128xf32>
      tpu.vector_store %arg8[%c0_10, %c0_11], %12 {strides = array<i32>} : memref<8x128xf32, #tpu.memory_space<vmem>>, vector<8x128xf32>,
    } else {
    }
    %c0 = arith.constant 0 : index
    %c0_1 = arith.constant 0 : index
    %3 = vector.load %arg8[%c0, %c0_1] : memref<8x128xf32, #tpu.memory_space<vmem>>, vector<8x128xf32>
    %c0_2 = arith.constant 0 : index
    %c0_3 = arith.constant 0 : index
    %4 = vector.load %arg2[%c0_2, %c0_3] : memref<8x512xbf16, #tpu.memory_space<vmem>>, vector<8x512xbf16>
    %c0_4 = arith.constant 0 : index
    %c0_5 = arith.constant 0 : index
    %5 = vector.load %arg4[%c0_4, %c0_5] : memref<512x128xbf16, #tpu.memory_space<vmem>>, vector<512x128xbf16>
    %cst = arith.constant dense<0.000000e+00> : vector<8x128xf32>
    %6 = tpu.matmul %4, %5, %cst {dimension_numbers = #tpu.dot_dimension_numbers<[1], [0], [0], [1], [0, 0, 1, 1], [], []>} : vector<8x512xbf16>, vector<512x128xbf16>, vector<8x128xf32> -> vector<8x128xf32>
    %7 = arith.addf %3, %6 : vector<8x128xf32>
    %c0_6 = arith.constant 0 : index
    %c0_7 = arith.constant 0 : index
    %8 = vector.load %arg8[%c0_6, %c0_7] : memref<8x128xf32, #tpu.memory_space<vmem>>, vector<8x128xf32>
    tpu.vector_store %arg8[%c0_6, %c0_7], %7 {strides = array<i32>} : memref<8x128xf32, #tpu.memory_space<vmem>>, vector<8x128xf32>,
    %c1_i32 = arith.constant 1 : i32
    %9 = arith.cmpi eq, %arg1, %c1_i32 : i32
    %10 = arith.extui %9 : i1 to i32
    %c0_i32_8 = arith.constant 0 : i32
    %11 = arith.cmpi ne, %10, %c0_i32_8 : i32
    scf.if %11 {
      %c0_9 = arith.constant 0 : index
      %c0_10 = arith.constant 0 : index
      %12 = vector.load %arg8[%c0_9, %c0_10] : memref<8x128xf32, #tpu.memory_space<vmem>>, vector<8x128xf32>
      %c0_11 = arith.constant 0 : index
      %c0_12 = arith.constant 0 : index
      %13 = vector.load %arg3[%c0_11, %c0_12] : memref<8x128xbf16, #tpu.memory_space<vmem>>, vector<8x128xbf16>
      %14 = arith.extf %13 : vector<8x128xbf16> to vector<8x128xf32>
      %15 = arith.addf %12, %14 : vector<8x128xf32>
      %16 = arith.truncf %15 : vector<8x128xf32> to vector<8x128xbf16>
      %c0_13 = arith.constant 0 : index
      %c0_14 = arith.constant 0 : index
      %17 = vector.load %arg7[%c0_13, %c0_14] : memref<8x128xbf16, #tpu.memory_space<vmem>>, vector<8x128xbf16>
      tpu.vector_store %arg7[%c0_13, %c0_14], %16 {strides = array<i32>} : memref<8x128xbf16, #tpu.memory_space<vmem>>, vector<8x128xbf16>,
      %18 = arith.mulf %15, %15 : vector<8x128xf32>
      %cst_15 = arith.constant dense<0.000000e+00> : vector<8xf32>
      %19 = vector.multi_reduction <add>, %18, %cst_15 [1] : vector<8x128xf32> to vector<8xf32>
      %20 = vector.shape_cast %19 : vector<8xf32> to vector<8x1xf32>
      %cst_16 = arith.constant 1.280000e+02 : f32
      %21 = vector.broadcast %cst_16 : f32 to vector<8x1xf32>
      %22 = arith.divf %20, %21 : vector<8x1xf32>
      %cst_17 = arith.constant 9.99999997E-7 : f32
      %23 = vector.broadcast %cst_17 : f32 to vector<8x1xf32>
      %24 = arith.addf %22, %23 : vector<8x1xf32>
      %25 = math.rsqrt %24 : vector<8x1xf32>
      %26 = vector.broadcast %25 : vector<8x1xf32> to vector<8x128xf32>
      %27 = arith.mulf %15, %26 : vector<8x128xf32>
      %c0_18 = arith.constant 0 : index
      %c0_19 = arith.constant 0 : index
      %28 = vector.load %arg5[%c0_18, %c0_19] : memref<1x128xf32, #tpu.memory_space<vmem>>, vector<1x128xf32>
      %29 = vector.broadcast %28 : vector<1x128xf32> to vector<8x128xf32>
      %30 = arith.mulf %27, %29 : vector<8x128xf32>
      %31 = arith.truncf %30 : vector<8x128xf32> to vector<8x128xbf16>
      %c0_20 = arith.constant 0 : index
      %c0_21 = arith.constant 0 : index
      %32 = vector.load %arg6[%c0_20, %c0_21] : memref<8x128xbf16, #tpu.memory_space<vmem>>, vector<8x128xbf16>
      tpu.vector_store %arg6[%c0_20, %c0_21], %31 {strides = array<i32>} : memref<8x128xbf16, #tpu.memory_space<vmem>>, vector<8x128xbf16>,
    } else {
    }
    return
  }
  func.func @transform_0(%arg0: i32, %arg1: i32) -> (i32, i32) {
    %c0_i32 = arith.constant 0 : i32
    return %arg0, %arg1 : i32, i32
  }
  func.func @transform_1(%arg0: i32, %arg1: i32) -> (i32, i32) {
    %c0_i32 = arith.constant 0 : i32
    %c0_i32_0 = arith.constant 0 : i32
    return %arg0, %c0_i32 : i32, i32
  }
  func.func @transform_2(%arg0: i32, %arg1: i32) -> (i32, i32) {
    %c0_i32 = arith.constant 0 : i32
    %c0_i32_0 = arith.constant 0 : i32
    return %arg1, %c0_i32 : i32, i32
  }
  func.func @transform_3(%arg0: i32, %arg1: i32) -> (i32, i32) {
    %c0_i32 = arith.constant 0 : i32
    %c0_i32_0 = arith.constant 0 : i32
    %c0_i32_1 = arith.constant 0 : i32
    return %c0_i32, %c0_i32_0 : i32, i32
  }
  func.func @transform_4(%arg0: i32, %arg1: i32) -> (i32, i32) {
    %c0_i32 = arith.constant 0 : i32
    %c0_i32_0 = arith.constant 0 : i32
    return %arg0, %c0_i32 : i32, i32
  }
  func.func @transform_5(%arg0: i32, %arg1: i32) -> (i32, i32) {
    %c0_i32 = arith.constant 0 : i32
    %c0_i32_0 = arith.constant 0 : i32
    return %arg0, %c0_i32 : i32, i32
  }
}

module attributes {stable_mosaic.version = 11 : i64} {
  func.func @attention_kernel(%arg0: i32, %arg1: memref<8x512xbf16, #tpu.memory_space<vmem>>, %arg2: memref<8x128xbf16, #tpu.memory_space<vmem>>, %arg3: memref<8x128xbf16, #tpu.memory_space<vmem>>, %arg4: memref<8x128xf32, #tpu.memory_space<vmem>>, %arg5: memref<8x128xf32, #tpu.memory_space<vmem>>, %arg6: memref<8x512xbf16, #tpu.memory_space<vmem>>) attributes {dimension_semantics = [#tpu.dimension_semantics<parallel>], iteration_bounds = array<i64: 2>, scalar_prefetch = 0 : i64, scratch_operands = 0 : i64, tpu.core_type = #tpu.core_type<tc>, window_params = [{transform_indices = @transform_0, window_bounds = array<i64: 8, 512>}, {transform_indices = @transform_1, window_bounds = array<i64: 8, 128>}, {transform_indices = @transform_2, window_bounds = array<i64: 8, 128>}, {pipeline_mode = #tpu.pipeline_mode<synchronous>, transform_indices = @transform_3, window_bounds = array<i64: 8, 128>}, {pipeline_mode = #tpu.pipeline_mode<synchronous>, transform_indices = @transform_4, window_bounds = array<i64: 8, 128>}, {transform_indices = @transform_5, window_bounds = array<i64: 8, 512>}]} {
    %c0 = arith.constant 0 : index
    %c0_0 = arith.constant 0 : index
    %0 = vector.load %arg4[%c0, %c0_0] : memref<8x128xf32, #tpu.memory_space<vmem>>, vector<8x128xf32>
    %c0_1 = arith.constant 0 : index
    %c0_2 = arith.constant 0 : index
    %1 = vector.load %arg5[%c0_1, %c0_2] : memref<8x128xf32, #tpu.memory_space<vmem>>, vector<8x128xf32>
    %c0_3 = arith.constant 0 : index
    %c0_4 = arith.constant 0 : index
    %2 = vector.load %arg2[%c0_3, %c0_4] : memref<8x128xbf16, #tpu.memory_space<vmem>>, vector<8x128xbf16>
    %3 = arith.extf %2 : vector<8x128xbf16> to vector<8x128xf32>
    %4 = vector.extract_strided_slice %3 {offsets = [0, 0], sizes = [8, 64], strides = [1, 1]} : vector<8x128xf32> to vector<8x64xf32>
    %5 = vector.extract_strided_slice %3 {offsets = [0, 64], sizes = [8, 64], strides = [1, 1]} : vector<8x128xf32> to vector<8x64xf32>
    %cst = arith.constant 0.000000e+00 : f32
    %6 = vector.broadcast %cst : f32 to vector<8x64xf32>
    %7 = arith.subf %6, %5 : vector<8x64xf32>
    %8 = tpu.concatenate %7, %4 in 1 : vector<8x64xf32>, vector<8x64xf32> -> vector<8x128xf32>
    %9 = arith.mulf %3, %0 : vector<8x128xf32>
    %10 = arith.mulf %8, %1 : vector<8x128xf32>
    %11 = arith.addf %9, %10 : vector<8x128xf32>
    %12 = arith.truncf %11 : vector<8x128xf32> to vector<8x128xbf16>
    %c0_5 = arith.constant 0 : index
    %c0_6 = arith.constant 0 : index
    %13 = vector.load %arg3[%c0_5, %c0_6] : memref<8x128xbf16, #tpu.memory_space<vmem>>, vector<8x128xbf16>
    %14 = tpu.iota {dimensions = array<i32: 0>} : vector<8x8xi32>
    %15 = tpu.iota {dimensions = array<i32: 1>} : vector<8x8xi32>
    %16 = arith.cmpi sle, %15, %14 : vector<8x8xi32>
    %c0_7 = arith.constant 0 : index
    %c0_8 = arith.constant 0 : index
    %17 = vector.load %arg1[%c0_7, %c0_8] : memref<8x512xbf16, #tpu.memory_space<vmem>>, vector<8x128xbf16>
    %18 = arith.extf %17 : vector<8x128xbf16> to vector<8x128xf32>
    %19 = vector.extract_strided_slice %18 {offsets = [0, 0], sizes = [8, 64], strides = [1, 1]} : vector<8x128xf32> to vector<8x64xf32>
    %20 = vector.extract_strided_slice %18 {offsets = [0, 64], sizes = [8, 64], strides = [1, 1]} : vector<8x128xf32> to vector<8x64xf32>
    %cst_9 = arith.constant 0.000000e+00 : f32
    %21 = vector.broadcast %cst_9 : f32 to vector<8x64xf32>
    %22 = arith.subf %21, %20 : vector<8x64xf32>
    %23 = tpu.concatenate %22, %19 in 1 : vector<8x64xf32>, vector<8x64xf32> -> vector<8x128xf32>
    %24 = arith.mulf %18, %0 : vector<8x128xf32>
    %25 = arith.mulf %23, %1 : vector<8x128xf32>
    %26 = arith.addf %24, %25 : vector<8x128xf32>
    %cst_10 = arith.constant 0.0883883461 : f32
    %27 = vector.broadcast %cst_10 : f32 to vector<8x128xf32>
    %28 = arith.mulf %26, %27 : vector<8x128xf32>
    %29 = arith.truncf %28 : vector<8x128xf32> to vector<8x128xbf16>
    %cst_11 = arith.constant dense<0.000000e+00> : vector<8x8xf32>
    %30 = tpu.matmul %29, %12, %cst_11 {dimension_numbers = #tpu.dot_dimension_numbers<[1], [1], [0], [0], [0, 0, 1, 0], [], []>} : vector<8x128xbf16>, vector<8x128xbf16>, vector<8x8xf32> -> vector<8x8xf32>
    %cst_12 = arith.constant 0xFF800000 : f32
    %31 = vector.broadcast %cst_12 : f32 to vector<8x8xf32>
    %32 = arith.select %16, %30, %31 : vector<8x8xi1>, vector<8x8xf32>
    %cst_13 = arith.constant dense<0xFF800000> : vector<8xf32>
    %33 = vector.multi_reduction <maximumf>, %32, %cst_13 [1] : vector<8x8xf32> to vector<8xf32>
    %34 = vector.shape_cast %33 : vector<8xf32> to vector<8x1xf32>
    %35 = vector.broadcast %34 : vector<8x1xf32> to vector<8x8xf32>
    %36 = arith.subf %32, %35 : vector<8x8xf32>
    %37 = math.exp %36 : vector<8x8xf32>
    %cst_14 = arith.constant dense<0.000000e+00> : vector<8xf32>
    %38 = vector.multi_reduction <add>, %37, %cst_14 [1] : vector<8x8xf32> to vector<8xf32>
    %39 = vector.shape_cast %38 : vector<8xf32> to vector<8x1xf32>
    %40 = arith.truncf %37 : vector<8x8xf32> to vector<8x8xbf16>
    %cst_15 = arith.constant dense<0.000000e+00> : vector<8x128xf32>
    %41 = tpu.matmul %40, %13, %cst_15 {dimension_numbers = #tpu.dot_dimension_numbers<[1], [0], [0], [1], [0, 0, 1, 1], [], []>} : vector<8x8xbf16>, vector<8x128xbf16>, vector<8x128xf32> -> vector<8x128xf32>
    %42 = tpu.reciprocal %39 {approx = true} : vector<8x1xf32> -> vector<8x1xf32>
    %43 = vector.broadcast %42 : vector<8x1xf32> to vector<8x128xf32>
    %44 = arith.mulf %41, %43 : vector<8x128xf32>
    %45 = arith.truncf %44 : vector<8x128xf32> to vector<8x128xbf16>
    %c0_16 = arith.constant 0 : index
    %c0_17 = arith.constant 0 : index
    %46 = vector.load %arg6[%c0_16, %c0_17] : memref<8x512xbf16, #tpu.memory_space<vmem>>, vector<8x128xbf16>
    tpu.vector_store %arg6[%c0_16, %c0_17], %45 {strides = array<i32>} : memref<8x512xbf16, #tpu.memory_space<vmem>>, vector<8x128xbf16>,
    %c0_18 = arith.constant 0 : index
    %c128 = arith.constant 128 : index
    %47 = vector.load %arg1[%c0_18, %c128] : memref<8x512xbf16, #tpu.memory_space<vmem>>, vector<8x128xbf16>
    %48 = arith.extf %47 : vector<8x128xbf16> to vector<8x128xf32>
    %49 = vector.extract_strided_slice %48 {offsets = [0, 0], sizes = [8, 64], strides = [1, 1]} : vector<8x128xf32> to vector<8x64xf32>
    %50 = vector.extract_strided_slice %48 {offsets = [0, 64], sizes = [8, 64], strides = [1, 1]} : vector<8x128xf32> to vector<8x64xf32>
    %cst_19 = arith.constant 0.000000e+00 : f32
    %51 = vector.broadcast %cst_19 : f32 to vector<8x64xf32>
    %52 = arith.subf %51, %50 : vector<8x64xf32>
    %53 = tpu.concatenate %52, %49 in 1 : vector<8x64xf32>, vector<8x64xf32> -> vector<8x128xf32>
    %54 = arith.mulf %48, %0 : vector<8x128xf32>
    %55 = arith.mulf %53, %1 : vector<8x128xf32>
    %56 = arith.addf %54, %55 : vector<8x128xf32>
    %cst_20 = arith.constant 0.0883883461 : f32
    %57 = vector.broadcast %cst_20 : f32 to vector<8x128xf32>
    %58 = arith.mulf %56, %57 : vector<8x128xf32>
    %59 = arith.truncf %58 : vector<8x128xf32> to vector<8x128xbf16>
    %cst_21 = arith.constant dense<0.000000e+00> : vector<8x8xf32>
    %60 = tpu.matmul %59, %12, %cst_21 {dimension_numbers = #tpu.dot_dimension_numbers<[1], [1], [0], [0], [0, 0, 1, 0], [], []>} : vector<8x128xbf16>, vector<8x128xbf16>, vector<8x8xf32> -> vector<8x8xf32>
    %cst_22 = arith.constant 0xFF800000 : f32
    %61 = vector.broadcast %cst_22 : f32 to vector<8x8xf32>
    %62 = arith.select %16, %60, %61 : vector<8x8xi1>, vector<8x8xf32>
    %cst_23 = arith.constant dense<0xFF800000> : vector<8xf32>
    %63 = vector.multi_reduction <maximumf>, %62, %cst_23 [1] : vector<8x8xf32> to vector<8xf32>
    %64 = vector.shape_cast %63 : vector<8xf32> to vector<8x1xf32>
    %65 = vector.broadcast %64 : vector<8x1xf32> to vector<8x8xf32>
    %66 = arith.subf %62, %65 : vector<8x8xf32>
    %67 = math.exp %66 : vector<8x8xf32>
    %cst_24 = arith.constant dense<0.000000e+00> : vector<8xf32>
    %68 = vector.multi_reduction <add>, %67, %cst_24 [1] : vector<8x8xf32> to vector<8xf32>
    %69 = vector.shape_cast %68 : vector<8xf32> to vector<8x1xf32>
    %70 = arith.truncf %67 : vector<8x8xf32> to vector<8x8xbf16>
    %cst_25 = arith.constant dense<0.000000e+00> : vector<8x128xf32>
    %71 = tpu.matmul %70, %13, %cst_25 {dimension_numbers = #tpu.dot_dimension_numbers<[1], [0], [0], [1], [0, 0, 1, 1], [], []>} : vector<8x8xbf16>, vector<8x128xbf16>, vector<8x128xf32> -> vector<8x128xf32>
    %72 = tpu.reciprocal %69 {approx = true} : vector<8x1xf32> -> vector<8x1xf32>
    %73 = vector.broadcast %72 : vector<8x1xf32> to vector<8x128xf32>
    %74 = arith.mulf %71, %73 : vector<8x128xf32>
    %75 = arith.truncf %74 : vector<8x128xf32> to vector<8x128xbf16>
    %c0_26 = arith.constant 0 : index
    %c128_27 = arith.constant 128 : index
    %76 = vector.load %arg6[%c0_26, %c128_27] : memref<8x512xbf16, #tpu.memory_space<vmem>>, vector<8x128xbf16>
    tpu.vector_store %arg6[%c0_26, %c128_27], %75 {strides = array<i32>} : memref<8x512xbf16, #tpu.memory_space<vmem>>, vector<8x128xbf16>,
    %c0_28 = arith.constant 0 : index
    %c256 = arith.constant 256 : index
    %77 = vector.load %arg1[%c0_28, %c256] : memref<8x512xbf16, #tpu.memory_space<vmem>>, vector<8x128xbf16>
    %78 = arith.extf %77 : vector<8x128xbf16> to vector<8x128xf32>
    %79 = vector.extract_strided_slice %78 {offsets = [0, 0], sizes = [8, 64], strides = [1, 1]} : vector<8x128xf32> to vector<8x64xf32>
    %80 = vector.extract_strided_slice %78 {offsets = [0, 64], sizes = [8, 64], strides = [1, 1]} : vector<8x128xf32> to vector<8x64xf32>
    %cst_29 = arith.constant 0.000000e+00 : f32
    %81 = vector.broadcast %cst_29 : f32 to vector<8x64xf32>
    %82 = arith.subf %81, %80 : vector<8x64xf32>
    %83 = tpu.concatenate %82, %79 in 1 : vector<8x64xf32>, vector<8x64xf32> -> vector<8x128xf32>
    %84 = arith.mulf %78, %0 : vector<8x128xf32>
    %85 = arith.mulf %83, %1 : vector<8x128xf32>
    %86 = arith.addf %84, %85 : vector<8x128xf32>
    %cst_30 = arith.constant 0.0883883461 : f32
    %87 = vector.broadcast %cst_30 : f32 to vector<8x128xf32>
    %88 = arith.mulf %86, %87 : vector<8x128xf32>
    %89 = arith.truncf %88 : vector<8x128xf32> to vector<8x128xbf16>
    %cst_31 = arith.constant dense<0.000000e+00> : vector<8x8xf32>
    %90 = tpu.matmul %89, %12, %cst_31 {dimension_numbers = #tpu.dot_dimension_numbers<[1], [1], [0], [0], [0, 0, 1, 0], [], []>} : vector<8x128xbf16>, vector<8x128xbf16>, vector<8x8xf32> -> vector<8x8xf32>
    %cst_32 = arith.constant 0xFF800000 : f32
    %91 = vector.broadcast %cst_32 : f32 to vector<8x8xf32>
    %92 = arith.select %16, %90, %91 : vector<8x8xi1>, vector<8x8xf32>
    %cst_33 = arith.constant dense<0xFF800000> : vector<8xf32>
    %93 = vector.multi_reduction <maximumf>, %92, %cst_33 [1] : vector<8x8xf32> to vector<8xf32>
    %94 = vector.shape_cast %93 : vector<8xf32> to vector<8x1xf32>
    %95 = vector.broadcast %94 : vector<8x1xf32> to vector<8x8xf32>
    %96 = arith.subf %92, %95 : vector<8x8xf32>
    %97 = math.exp %96 : vector<8x8xf32>
    %cst_34 = arith.constant dense<0.000000e+00> : vector<8xf32>
    %98 = vector.multi_reduction <add>, %97, %cst_34 [1] : vector<8x8xf32> to vector<8xf32>
    %99 = vector.shape_cast %98 : vector<8xf32> to vector<8x1xf32>
    %100 = arith.truncf %97 : vector<8x8xf32> to vector<8x8xbf16>
    %cst_35 = arith.constant dense<0.000000e+00> : vector<8x128xf32>
    %101 = tpu.matmul %100, %13, %cst_35 {dimension_numbers = #tpu.dot_dimension_numbers<[1], [0], [0], [1], [0, 0, 1, 1], [], []>} : vector<8x8xbf16>, vector<8x128xbf16>, vector<8x128xf32> -> vector<8x128xf32>
    %102 = tpu.reciprocal %99 {approx = true} : vector<8x1xf32> -> vector<8x1xf32>
    %103 = vector.broadcast %102 : vector<8x1xf32> to vector<8x128xf32>
    %104 = arith.mulf %101, %103 : vector<8x128xf32>
    %105 = arith.truncf %104 : vector<8x128xf32> to vector<8x128xbf16>
    %c0_36 = arith.constant 0 : index
    %c256_37 = arith.constant 256 : index
    %106 = vector.load %arg6[%c0_36, %c256_37] : memref<8x512xbf16, #tpu.memory_space<vmem>>, vector<8x128xbf16>
    tpu.vector_store %arg6[%c0_36, %c256_37], %105 {strides = array<i32>} : memref<8x512xbf16, #tpu.memory_space<vmem>>, vector<8x128xbf16>,
    %c0_38 = arith.constant 0 : index
    %c384 = arith.constant 384 : index
    %107 = vector.load %arg1[%c0_38, %c384] : memref<8x512xbf16, #tpu.memory_space<vmem>>, vector<8x128xbf16>
    %108 = arith.extf %107 : vector<8x128xbf16> to vector<8x128xf32>
    %109 = vector.extract_strided_slice %108 {offsets = [0, 0], sizes = [8, 64], strides = [1, 1]} : vector<8x128xf32> to vector<8x64xf32>
    %110 = vector.extract_strided_slice %108 {offsets = [0, 64], sizes = [8, 64], strides = [1, 1]} : vector<8x128xf32> to vector<8x64xf32>
    %cst_39 = arith.constant 0.000000e+00 : f32
    %111 = vector.broadcast %cst_39 : f32 to vector<8x64xf32>
    %112 = arith.subf %111, %110 : vector<8x64xf32>
    %113 = tpu.concatenate %112, %109 in 1 : vector<8x64xf32>, vector<8x64xf32> -> vector<8x128xf32>
    %114 = arith.mulf %108, %0 : vector<8x128xf32>
    %115 = arith.mulf %113, %1 : vector<8x128xf32>
    %116 = arith.addf %114, %115 : vector<8x128xf32>
    %cst_40 = arith.constant 0.0883883461 : f32
    %117 = vector.broadcast %cst_40 : f32 to vector<8x128xf32>
    %118 = arith.mulf %116, %117 : vector<8x128xf32>
    %119 = arith.truncf %118 : vector<8x128xf32> to vector<8x128xbf16>
    %cst_41 = arith.constant dense<0.000000e+00> : vector<8x8xf32>
    %120 = tpu.matmul %119, %12, %cst_41 {dimension_numbers = #tpu.dot_dimension_numbers<[1], [1], [0], [0], [0, 0, 1, 0], [], []>} : vector<8x128xbf16>, vector<8x128xbf16>, vector<8x8xf32> -> vector<8x8xf32>
    %cst_42 = arith.constant 0xFF800000 : f32
    %121 = vector.broadcast %cst_42 : f32 to vector<8x8xf32>
    %122 = arith.select %16, %120, %121 : vector<8x8xi1>, vector<8x8xf32>
    %cst_43 = arith.constant dense<0xFF800000> : vector<8xf32>
    %123 = vector.multi_reduction <maximumf>, %122, %cst_43 [1] : vector<8x8xf32> to vector<8xf32>
    %124 = vector.shape_cast %123 : vector<8xf32> to vector<8x1xf32>
    %125 = vector.broadcast %124 : vector<8x1xf32> to vector<8x8xf32>
    %126 = arith.subf %122, %125 : vector<8x8xf32>
    %127 = math.exp %126 : vector<8x8xf32>
    %cst_44 = arith.constant dense<0.000000e+00> : vector<8xf32>
    %128 = vector.multi_reduction <add>, %127, %cst_44 [1] : vector<8x8xf32> to vector<8xf32>
    %129 = vector.shape_cast %128 : vector<8xf32> to vector<8x1xf32>
    %130 = arith.truncf %127 : vector<8x8xf32> to vector<8x8xbf16>
    %cst_45 = arith.constant dense<0.000000e+00> : vector<8x128xf32>
    %131 = tpu.matmul %130, %13, %cst_45 {dimension_numbers = #tpu.dot_dimension_numbers<[1], [0], [0], [1], [0, 0, 1, 1], [], []>} : vector<8x8xbf16>, vector<8x128xbf16>, vector<8x128xf32> -> vector<8x128xf32>
    %132 = tpu.reciprocal %129 {approx = true} : vector<8x1xf32> -> vector<8x1xf32>
    %133 = vector.broadcast %132 : vector<8x1xf32> to vector<8x128xf32>
    %134 = arith.mulf %131, %133 : vector<8x128xf32>
    %135 = arith.truncf %134 : vector<8x128xf32> to vector<8x128xbf16>
    %c0_46 = arith.constant 0 : index
    %c384_47 = arith.constant 384 : index
    %136 = vector.load %arg6[%c0_46, %c384_47] : memref<8x512xbf16, #tpu.memory_space<vmem>>, vector<8x128xbf16>
    tpu.vector_store %arg6[%c0_46, %c384_47], %135 {strides = array<i32>} : memref<8x512xbf16, #tpu.memory_space<vmem>>, vector<8x128xbf16>,
    return
  }
  func.func @transform_0(%arg0: i32) -> (i32, i32) {
    %c0_i32 = arith.constant 0 : i32
    %c0_i32_0 = arith.constant 0 : i32
    return %c0_i32, %arg0 : i32, i32
  }
  func.func @transform_1(%arg0: i32) -> (i32, i32) {
    %c8_i32 = arith.constant 8 : i32
    %0 = arith.addi %c8_i32, %arg0 : i32
    %c0_i32 = arith.constant 0 : i32
    %c0_i32_0 = arith.constant 0 : i32
    return %c0_i32, %0 : i32, i32
  }
  func.func @transform_2(%arg0: i32) -> (i32, i32) {
    %c10_i32 = arith.constant 10 : i32
    %0 = arith.addi %c10_i32, %arg0 : i32
    %c0_i32 = arith.constant 0 : i32
    %c0_i32_0 = arith.constant 0 : i32
    return %c0_i32, %0 : i32, i32
  }
  func.func @transform_3(%arg0: i32) -> (i32, i32) {
    %c0_i32 = arith.constant 0 : i32
    %c0_i32_0 = arith.constant 0 : i32
    %c0_i32_1 = arith.constant 0 : i32
    return %c0_i32, %c0_i32_0 : i32, i32
  }
  func.func @transform_4(%arg0: i32) -> (i32, i32) {
    %c0_i32 = arith.constant 0 : i32
    %c0_i32_0 = arith.constant 0 : i32
    %c0_i32_1 = arith.constant 0 : i32
    return %c0_i32, %c0_i32_0 : i32, i32
  }
  func.func @transform_5(%arg0: i32) -> (i32, i32) {
    %c0_i32 = arith.constant 0 : i32
    %c0_i32_0 = arith.constant 0 : i32
    return %c0_i32, %arg0 : i32, i32
  }
}

module attributes {stable_mosaic.version = 11 : i64} {
  func.func @mlp_kernel(%arg0: i32, %arg1: i32, %arg2: memref<8x128xbf16, #tpu.memory_space<vmem>>, %arg3: memref<8x128xbf16, #tpu.memory_space<vmem>>, %arg4: memref<128x512xbf16, #tpu.memory_space<vmem>>, %arg5: memref<128x512xbf16, #tpu.memory_space<vmem>>, %arg6: memref<512x128xbf16, #tpu.memory_space<vmem>>, %arg7: memref<1x128xf32, #tpu.memory_space<vmem>>, %arg8: memref<8x128xf32, #tpu.memory_space<vmem>>, %arg9: memref<8x128xf32, #tpu.memory_space<vmem>>) attributes {dimension_semantics = [#tpu.dimension_semantics<parallel>, #tpu.dimension_semantics<arbitrary>], iteration_bounds = array<i64: 1, 2>, scalar_prefetch = 0 : i64, scratch_operands = 1 : i64, tpu.core_type = #tpu.core_type<tc>, window_params = [{transform_indices = @transform_0, window_bounds = array<i64: 8, 128>}, {transform_indices = @transform_1, window_bounds = array<i64: 8, 128>}, {transform_indices = @transform_2, window_bounds = array<i64: 128, 512>}, {transform_indices = @transform_3, window_bounds = array<i64: 128, 512>}, {transform_indices = @transform_4, window_bounds = array<i64: 512, 128>}, {pipeline_mode = #tpu.pipeline_mode<synchronous>, transform_indices = @transform_5, window_bounds = array<i64: 1, 128>}, {transform_indices = @transform_6, window_bounds = array<i64: 8, 128>}]} {
    %c0_i32 = arith.constant 0 : i32
    %0 = arith.cmpi eq, %arg1, %c0_i32 : i32
    %1 = arith.extui %0 : i1 to i32
    %c0_i32_0 = arith.constant 0 : i32
    %2 = arith.cmpi ne, %1, %c0_i32_0 : i32
    scf.if %2 {
      %cst_16 = arith.constant 0.000000e+00 : f32
      %24 = vector.broadcast %cst_16 : f32 to vector<8x128xf32>
      %c0_17 = arith.constant 0 : index
      %c0_18 = arith.constant 0 : index
      %25 = vector.load %arg9[%c0_17, %c0_18] : memref<8x128xf32, #tpu.memory_space<vmem>>, vector<8x128xf32>
      tpu.vector_store %arg9[%c0_17, %c0_18], %24 {strides = array<i32>} : memref<8x128xf32, #tpu.memory_space<vmem>>, vector<8x128xf32>,
    } else {
    }
    %c0 = arith.constant 0 : index
    %c0_1 = arith.constant 0 : index
    %3 = vector.load %arg2[%c0, %c0_1] : memref<8x128xbf16, #tpu.memory_space<vmem>>, vector<8x128xbf16>
    %c0_2 = arith.constant 0 : index
    %c0_3 = arith.constant 0 : index
    %4 = vector.load %arg4[%c0_2, %c0_3] : memref<128x512xbf16, #tpu.memory_space<vmem>>, vector<128x512xbf16>
    %cst = arith.constant dense<0.000000e+00> : vector<8x512xf32>
    %5 = tpu.matmul %3, %4, %cst {dimension_numbers = #tpu.dot_dimension_numbers<[1], [0], [0], [1], [0, 0, 1, 1], [], []>} : vector<8x128xbf16>, vector<128x512xbf16>, vector<8x512xf32> -> vector<8x512xf32>
    %c0_4 = arith.constant 0 : index
    %c0_5 = arith.constant 0 : index
    %6 = vector.load %arg5[%c0_4, %c0_5] : memref<128x512xbf16, #tpu.memory_space<vmem>>, vector<128x512xbf16>
    %cst_6 = arith.constant dense<0.000000e+00> : vector<8x512xf32>
    %7 = tpu.matmul %3, %6, %cst_6 {dimension_numbers = #tpu.dot_dimension_numbers<[1], [0], [0], [1], [0, 0, 1, 1], [], []>} : vector<8x128xbf16>, vector<128x512xbf16>, vector<8x512xf32> -> vector<8x512xf32>
    %8 = arith.negf %5 : vector<8x512xf32>
    %9 = math.exp %8 : vector<8x512xf32>
    %cst_7 = arith.constant 1.000000e+00 : f32
    %10 = vector.broadcast %cst_7 : f32 to vector<8x512xf32>
    %11 = arith.addf %10, %9 : vector<8x512xf32>
    %12 = arith.divf %10, %11 : vector<8x512xf32>
    %13 = arith.mulf %5, %12 : vector<8x512xf32>
    %14 = arith.mulf %13, %7 : vector<8x512xf32>
    %15 = arith.truncf %14 : vector<8x512xf32> to vector<8x512xbf16>
    %c0_8 = arith.constant 0 : index
    %c0_9 = arith.constant 0 : index
    %16 = vector.load %arg9[%c0_8, %c0_9] : memref<8x128xf32, #tpu.memory_space<vmem>>, vector<8x128xf32>
    %c0_10 = arith.constant 0 : index
    %c0_11 = arith.constant 0 : index
    %17 = vector.load %arg6[%c0_10, %c0_11] : memref<512x128xbf16, #tpu.memory_space<vmem>>, vector<512x128xbf16>
    %cst_12 = arith.constant dense<0.000000e+00> : vector<8x128xf32>
    %18 = tpu.matmul %15, %17, %cst_12 {dimension_numbers = #tpu.dot_dimension_numbers<[1], [0], [0], [1], [0, 0, 1, 1], [], []>} : vector<8x512xbf16>, vector<512x128xbf16>, vector<8x128xf32> -> vector<8x128xf32>
    %19 = arith.addf %16, %18 : vector<8x128xf32>
    %c0_13 = arith.constant 0 : index
    %c0_14 = arith.constant 0 : index
    %20 = vector.load %arg9[%c0_13, %c0_14] : memref<8x128xf32, #tpu.memory_space<vmem>>, vector<8x128xf32>
    tpu.vector_store %arg9[%c0_13, %c0_14], %19 {strides = array<i32>} : memref<8x128xf32, #tpu.memory_space<vmem>>, vector<8x128xf32>,
    %c1_i32 = arith.constant 1 : i32
    %21 = arith.cmpi eq, %arg1, %c1_i32 : i32
    %22 = arith.extui %21 : i1 to i32
    %c0_i32_15 = arith.constant 0 : i32
    %23 = arith.cmpi ne, %22, %c0_i32_15 : i32
    scf.if %23 {
      %c0_16 = arith.constant 0 : index
      %c0_17 = arith.constant 0 : index
      %24 = vector.load %arg9[%c0_16, %c0_17] : memref<8x128xf32, #tpu.memory_space<vmem>>, vector<8x128xf32>
      %c0_18 = arith.constant 0 : index
      %c0_19 = arith.constant 0 : index
      %25 = vector.load %arg3[%c0_18, %c0_19] : memref<8x128xbf16, #tpu.memory_space<vmem>>, vector<8x128xbf16>
      %26 = arith.extf %25 : vector<8x128xbf16> to vector<8x128xf32>
      %27 = arith.addf %24, %26 : vector<8x128xf32>
      %28 = arith.mulf %27, %27 : vector<8x128xf32>
      %cst_20 = arith.constant dense<0.000000e+00> : vector<8xf32>
      %29 = vector.multi_reduction <add>, %28, %cst_20 [1] : vector<8x128xf32> to vector<8xf32>
      %30 = vector.shape_cast %29 : vector<8xf32> to vector<8x1xf32>
      %cst_21 = arith.constant 1.280000e+02 : f32
      %31 = vector.broadcast %cst_21 : f32 to vector<8x1xf32>
      %32 = arith.divf %30, %31 : vector<8x1xf32>
      %cst_22 = arith.constant 9.99999997E-7 : f32
      %33 = vector.broadcast %cst_22 : f32 to vector<8x1xf32>
      %34 = arith.addf %32, %33 : vector<8x1xf32>
      %35 = math.rsqrt %34 : vector<8x1xf32>
      %36 = vector.broadcast %35 : vector<8x1xf32> to vector<8x128xf32>
      %37 = arith.mulf %27, %36 : vector<8x128xf32>
      %c0_23 = arith.constant 0 : index
      %c0_24 = arith.constant 0 : index
      %38 = vector.load %arg7[%c0_23, %c0_24] : memref<1x128xf32, #tpu.memory_space<vmem>>, vector<1x128xf32>
      %39 = vector.broadcast %38 : vector<1x128xf32> to vector<8x128xf32>
      %40 = arith.mulf %37, %39 : vector<8x128xf32>
      %c0_25 = arith.constant 0 : index
      %c0_26 = arith.constant 0 : index
      %41 = vector.load %arg8[%c0_25, %c0_26] : memref<8x128xf32, #tpu.memory_space<vmem>>, vector<8x128xf32>
      tpu.vector_store %arg8[%c0_25, %c0_26], %40 {strides = array<i32>} : memref<8x128xf32, #tpu.memory_space<vmem>>, vector<8x128xf32>,
    } else {
    }
    return
  }
  func.func @transform_0(%arg0: i32, %arg1: i32) -> (i32, i32) {
    %c0_i32 = arith.constant 0 : i32
    %c0_i32_0 = arith.constant 0 : i32
    return %arg0, %c0_i32 : i32, i32
  }
  func.func @transform_1(%arg0: i32, %arg1: i32) -> (i32, i32) {
    %c0_i32 = arith.constant 0 : i32
    %c0_i32_0 = arith.constant 0 : i32
    return %arg0, %c0_i32 : i32, i32
  }
  func.func @transform_2(%arg0: i32, %arg1: i32) -> (i32, i32) {
    %c0_i32 = arith.constant 0 : i32
    %c0_i32_0 = arith.constant 0 : i32
    return %c0_i32, %arg1 : i32, i32
  }
  func.func @transform_3(%arg0: i32, %arg1: i32) -> (i32, i32) {
    %c0_i32 = arith.constant 0 : i32
    %c0_i32_0 = arith.constant 0 : i32
    return %c0_i32, %arg1 : i32, i32
  }
  func.func @transform_4(%arg0: i32, %arg1: i32) -> (i32, i32) {
    %c0_i32 = arith.constant 0 : i32
    %c0_i32_0 = arith.constant 0 : i32
    return %arg1, %c0_i32 : i32, i32
  }
  func.func @transform_5(%arg0: i32, %arg1: i32) -> (i32, i32) {
    %c0_i32 = arith.constant 0 : i32
    %c0_i32_0 = arith.constant 0 : i32
    %c0_i32_1 = arith.constant 0 : i32
    return %c0_i32, %c0_i32_0 : i32, i32
  }
  func.func @transform_6(%arg0: i32, %arg1: i32) -> (i32, i32) {
    %c0_i32 = arith.constant 0 : i32
    %c0_i32_0 = arith.constant 0 : i32
    return %arg0, %c0_i32 : i32, i32
  }
}

</mosaic_0001>

<bundles_post_ra>
// kernel: mimo_mtp_forward.6
= control target key start
LH: loop header
LB: loop body
LE: loop exit
PB: predicated region body
PF: predicated region fallthrough
CT: control target
= control target key end

     0   :  { %9 = vsyncpa [#allocation3], 0  ;;  %s1210_s0 = inlined_call_operand.vmem [shape: bf16[8,128], index: 0, kind: input, shape index: {}]   ;;  %s1211_s1 = inlined_call_operand.vmem [shape: f32[1,128], index: 1, kind: input, shape index: {}]   ;;  %s1212_s2 = inlined_call_operand.hbm [shape: bf16[128,1536], index: 2, kind: input, shape index: {}]   ;;  %s1213_s3 = inlined_call_operand.vmem [shape: f32[1,1536], index: 3, kind: input, shape index: {}]   ;;  %s1214_s4 = inlined_call_operand.vmem [shape: bf16[8,1536], index: 4, kind: output, shape index: {}]  }
   0x1   :  { %11 = vsyncpa [#allocation3 + $0x1], 0  ;;  %s1036_s15 = smov 0   ;;  %s1038_s16 = smov 0  }
   0x2   :  { %s1040_s17 = smov 0   ;;  %s1042_s18 = smov 0  }
   0x3   :  { %s1044_s19 = smov 0   ;;  %s1046_s20 = smov 0  }
   0x4 LB: > { %s685_s21 = sadd.s32 4294967295, %s1005_s20   ;;  %s26_s22 = sadd.s32 1, %s1001_s19  ;;  %s1005_s20 = sphi %s1046_s20, %s17_s20   ;;  %s1001_s19 = sphi %s1044_s19, %s1221_s19   ;;  %s997_s18 = sphi %s1042_s18, %s1220_s18   ;;  %s993_s17 = sphi %s1040_s17, %s1219_s17   ;;  %s989_s16 = sphi %s1038_s16, %s1218_s16   ;;  %s985_s15 = sphi %s1036_s15, %s1217_s15  }
   0x5   : > { %p27_p0 = scmp.ge.s32.totalorder %s26_s22, 3  ;;  %s83_s23 = sadd.s32 1, %s993_s17 }
   0x6   : > { %p90_p1 = scmp.ne.s32.totalorder %s993_s17, %s989_s16  ;;  %p91_p2 = scmp.eq.s32.totalorder %s1005_s20, 0 }
   0x7   : > { %s1223_s22 = smov (%p27_p0, %s26_s22), 0  ;;  %p96_p4 = scmp.ne.s32.totalorder %s989_s16, %s985_s15 }
   0x8   : > { %p1072_p3 = por %p91_p2, %p90_p1  ;;  %s80_s25 = ssub.s32 %s1001_s19, %s1223_s22 }
   0x9   : > { %p97_p5 = scmp.eq.s32.totalorder %s685_s21, 0  ;;  %p81_p6 = scmp.eq.s32.totalorder %s80_s25, 0 }
   0xa   : > { %p867_p8 = scmp.lt.s32.totalorder %s1005_s20, 3  ;;  %s184_s28 = sand.u32 1, %s993_s17  }
   0xb   : > { %p1079_p7 = por %p97_p5, %p96_p4  ;;  %s828_s29 = sshll.u32 %s1001_s19, 4 }
   0xc   : > { %s1085_s27 = scalar_select %p81_p6, %s993_s17, %s83_s23  }
   0xd   : > { %s690_s30 = sshll.u32 %s184_s28, 8  ;;  %s193_s7 = scalar_lea.hbm %s1212_s2, %s828_s29 }
   0xe   : > { %s194_s8 = sshll.u32 %s193_s7, 4  ;;  %s188_s9 = scalar_lea.vmem [#allocation2], %s690_s30  ;;  %s195_s8 = int_to_ptr.hbm [resolvable:$true] %s194_s8 }
   0xf   : > { %s196_s10 = sshll.u32 %s188_s9, 4  ;;  %p864_p9 = pnand %p867_p8, %p1072_p3  ;;  %s197_s10 = int_to_ptr.vmem [resolvable:$true] %s196_s10 }
  0x10   : > { %p693_p10 = scmp.ge.s32.totalorder %s1005_s20, 1  ;;  %s185_s11 = scalar_lea.sflag [#allocation3], %s184_s28 }
  0x11   : > { %s1007_s12 = smov 768   ;;  %s1008_s13 = smov 256  }
  0x12   : > { %s1009_s14 = smov 16   ;;  %p212_p11 = scmp.lt.s32.totalorder %s1005_s20, 4 }
  0x13   : > { %866 = dma.hbm_to_vmem [thread:$0]  (!%p864_p9), %s195_s8, 4096, %s197_s10, %s185_s11, %s1007_s12, %s1008_s13, %s1009_s14  }
  0x14   : > { %p213_p12 = pnand %p693_p10, %p212_p11 }
  0x15   : > { %s218_s15 = sand.u32 (!%p213_p12), 1, %s989_s16  }
  0x16   : > { %216 = sbr.rel (%p213_p12) target bundleno = 318 (0x13e), region = 36  ;;  %s694_s21 = sshll.u32 (!%p213_p12), %s218_s15, 8 }
  0x17   : > { %s219_s23 = scalar_lea.sflag (!%p213_p12), [#allocation3], %s218_s15  ;;  %s1097_s25 = scalar_lea.vmem (!%p213_p12), [#allocation2], %s694_s21 }
  0x1b   : > { %980 = dma.done.wait (%p1079_p7), %s219_s23, 4096  }
  0x1c   : > { %982 = vsyncadd (%p1079_p7), %s219_s23, 4294963200  ;;  %v280_v0 = vld [vmem:[%s1210_s0] sm:$0xf]  ;;  %v859_v2 = vld [vmem:[%s1097_s25 + $0xec] sm:$0xf0]  ;;  %v1010_v34 = vmov 128.0  }
  0x1d   : > { %v812_v1 = vld [vmem:[%s1097_s25 + $0xe0] sm:$0xf]  ;;  %v1108_v3 = vunpack.c.l.bf16 %v280_v0  ;;  %v857_v5 = vld [vmem:[%s1097_s25 + $0xe4] sm:$0xf]  ;;  %v814_v6 = vld [vmem:[%s1097_s25 + $0xf0] sm:$0xf0]  ;;  %921 = vrcp.f32 %v1010_v34 }
  0x1e   : > { %v813_v4 = vor.u32 %v859_v2, %v812_v1  ;;  %v820_v7 = vld [vmem:[%s1097_s25 + $0xe8] sm:$0xf]  ;;  %v817_v8 = vor.u32 %v857_v5, %v814_v6  ;;  %v860_v9 = vld [vmem:[%s1097_s25 + $0xf4] sm:$0xf0]  ;;  %v858_v10 = vld [vmem:[%s1097_s25 + $0xec] sm:$0xf] }
  0x1f   : > { %v822_v11 = vld [vmem:[%s1097_s25 + $0xf8] sm:$0xf0]  ;;  %v282_v12 = vmul.f32 %v1108_v3, %v1108_v3  ;;  %v821_v13 = vor.u32 %v860_v9, %v820_v7  ;;  %v796_v15 = vld [vmem:[%s1097_s25 + $0xc0] sm:$0xf]  ;;  %v855_v16 = vld [vmem:[%s1097_s25 + $0xcc] sm:$0xf0] }
  0x20   : > { %513 = vmatpush.bf16.msra.mxu0 %v813_v4  ;;  %v825_v14 = vor.u32 %v858_v10, %v822_v11  ;;  %526 = vmatpush.bf16.msra.mxu1 %v817_v8  ;;  %v853_v17 = vld [vmem:[%s1097_s25 + $0xc4] sm:$0xf]  ;;  %v797_v18 = vor.u32 %v855_v16, %v796_v15  ;;  %v798_v19 = vld [vmem:[%s1097_s25 + $0xd0] sm:$0xf0]  ;;  %v804_v20 = vld [vmem:[%s1097_s25 + $0xc8] sm:$0xf] }
  0x21   : > { %283 = vadd.xlane.f32.xlu0 %v282_v12  ;;  %539 = vmatpush.bf16.msra.mxu2 %v821_v13  ;;  %v856_v21 = vld [vmem:[%s1097_s25 + $0xd4] sm:$0xf0]  ;;  %v801_v22 = vor.u32 %v853_v17, %v798_v19  ;;  %v854_v24 = vld [vmem:[%s1097_s25 + $0xcc] sm:$0xf]  ;;  %v806_v25 = vld [vmem:[%s1097_s25 + $0xd8] sm:$0xf0] }
  0x22   : > { %552 = vmatpush.bf16.msra.mxu3 %v825_v14  ;;  %v805_v23 = vor.u32 %v856_v21, %v804_v20  ;;  %v809_v26 = vor.u32 %v854_v24, %v806_v25  ;;  %v780_v27 = vld [vmem:[%s1097_s25 + $0xa0] sm:$0xf]  ;;  %v851_v28 = vld [vmem:[%s1097_s25 + $0xac] sm:$0xf0]  ;;  %v849_v29 = vld [vmem:[%s1097_s25 + $0xa4] sm:$0xf] }
  0x23   : > { %v781_v30 = vor.u32 %v851_v28, %v780_v27  ;;  %v782_v31 = vld [vmem:[%s1097_s25 + $0xb0] sm:$0xf0]  ;;  %v788_v32 = vld [vmem:[%s1097_s25 + $0xa8] sm:$0xf]  ;;  %v852_v33 = vld [vmem:[%s1097_s25 + $0xb4] sm:$0xf0]  ;;  %v1142_v52 = vpop.eup %921 }
  0x24   : > { %514 = vmatpush.bf16.msra.mxu0 %v797_v18  ;;  %527 = vmatpush.bf16.msra.mxu1 %v801_v22  ;;  %v785_v35 = vor.u32 %v849_v29, %v782_v31  ;;  %v789_v36 = vor.u32 %v852_v33, %v788_v32  ;;  %v850_v37 = vld [vmem:[%s1097_s25 + $0xac] sm:$0xf]  ;;  %v790_v38 = vld [vmem:[%s1097_s25 + $0xb8] sm:$0xf0]  ;;  %v764_v40 = vld [vmem:[%s1097_s25 + $0x80] sm:$0xf]  ;;  %vm290_vm0 = vweird.f32 %v1142_v52 }
  0x25   : > { %540 = vmatpush.bf16.msra.mxu2 %v805_v23  ;;  %v793_v39 = vor.u32 %v850_v37, %v790_v38  ;;  %v847_v41 = vld [vmem:[%s1097_s25 + $0x8c] sm:$0xf0]  ;;  %v845_v42 = vld [vmem:[%s1097_s25 + $0x84] sm:$0xf]  ;;  %v766_v44 = vld [vmem:[%s1097_s25 + $0x90] sm:$0xf0] }
  0x26   : > { %553 = vmatpush.bf16.msra.mxu3 %v809_v26  ;;  %v765_v43 = vor.u32 %v847_v41, %v764_v40  ;;  %v772_v45 = vld [vmem:[%s1097_s25 + $0x88] sm:$0xf]  ;;  %v848_v46 = vld [vmem:[%s1097_s25 + $0x94] sm:$0xf0]  ;;  %v769_v47 = vor.u32 %v845_v42, %v766_v44  ;;  %v846_v49 = vld [vmem:[%s1097_s25 + $0x8c] sm:$0xf] }
  0x27   : > { %v773_v48 = vor.u32 %v848_v46, %v772_v45  ;;  %v774_v50 = vld [vmem:[%s1097_s25 + $0x98] sm:$0xf0]  ;;  %v748_v53 = vld [vmem:[%s1097_s25 + $0x60] sm:$0xf]  ;;  %v843_v54 = vld [vmem:[%s1097_s25 + $0x6c] sm:$0xf0] }
  0x28   : > { %515 = vmatpush.bf16.msra.mxu0 %v781_v30  ;;  %528 = vmatpush.bf16.msra.mxu1 %v785_v35  ;;  %v777_v51 = vor.u32 %v846_v49, %v774_v50  ;;  %v841_v55 = vld [vmem:[%s1097_s25 + $0x64] sm:$0xf]  ;;  %v749_v56 = vor.u32 %v843_v54, %v748_v53  ;;  %v750_v57 = vld [vmem:[%s1097_s25 + $0x70] sm:$0xf0]  ;;  %v756_v58 = vld [vmem:[%s1097_s25 + $0x68] sm:$0xf] }
  0x29   : > { %541 = vmatpush.bf16.msra.mxu2 %v789_v36  ;;  %v844_v59 = vld [vmem:[%s1097_s25 + $0x74] sm:$0xf0]  ;;  %v753_v60 = vor.u32 %v841_v55, %v750_v57  ;;  %v842_v62 = vld [vmem:[%s1097_s25 + $0x6c] sm:$0xf]  ;;  %v758_v63 = vld [vmem:[%s1097_s25 + $0x78] sm:$0xf0] }
  0x2a   : > { %554 = vmatpush.bf16.msra.mxu3 %v793_v39  ;;  %v757_v61 = vor.u32 %v844_v59, %v756_v58  ;;  %v286_v0 = vmul.f32 128.0, %v1142_v52  ;;  %v761_v1 = vor.u32 %v842_v62, %v758_v63  ;;  %v732_v2 = vld [vmem:[%s1097_s25 + $0x40] sm:$0xf]  ;;  %v839_v4 = vld [vmem:[%s1097_s25 + $0x4c] sm:$0xf0]  ;;  %s695_s30 = sshll.u32 %s997_s18, 2 }
  0x2b   : > { %v837_v5 = vld [vmem:[%s1097_s25 + $0x44] sm:$0xf]  ;;  %v733_v6 = vor.u32 %v839_v4, %v732_v2  ;;  %v734_v7 = vld [vmem:[%s1097_s25 + $0x50] sm:$0xf0]  ;;  %v740_v8 = vld [vmem:[%s1097_s25 + $0x48] sm:$0xf] }
  0x2c   : > { %516 = vmatpush.bf16.msra.mxu0 %v765_v43  ;;  %529 = vmatpush.bf16.msra.mxu1 %v769_v47  ;;  %v840_v9 = vld [vmem:[%s1097_s25 + $0x54] sm:$0xf0]  ;;  %v737_v10 = vor.u32 %v837_v5, %v734_v7  ;;  %v838_v12 = vld [vmem:[%s1097_s25 + $0x4c] sm:$0xf]  ;;  %v742_v13 = vld [vmem:[%s1097_s25 + $0x58] sm:$0xf0] }
  0x2d   : > { %542 = vmatpush.bf16.msra.mxu2 %v773_v48  ;;  %v741_v11 = vor.u32 %v840_v9, %v740_v8  ;;  %v287_v14 = vsub.f32 1.0, %v286_v0  ;;  %v745_v15 = vor.u32 %v838_v12, %v742_v13  ;;  %v716_v16 = vld [vmem:[%s1097_s25 + $0x20] sm:$0xf]  ;;  %v835_v17 = vld [vmem:[%s1097_s25 + $0x2c] sm:$0xf0]  ;;  %p266_p13 = scmp.lt.s32.totalorder %s695_s30, 11 }
  0x2e   : > { %555 = vmatpush.bf16.msra.mxu3 %v777_v51  ;;  %v833_v18 = vld [vmem:[%s1097_s25 + $0x24] sm:$0xf]  ;;  %v717_v19 = vor.u32 %v835_v17, %v716_v16  ;;  %v718_v20 = vld [vmem:[%s1097_s25 + $0x30] sm:$0xf0]  ;;  %v724_v21 = vld [vmem:[%s1097_s25 + $0x28] sm:$0xf] }
  0x2f   : > { %v836_v22 = vld [vmem:[%s1097_s25 + $0x34] sm:$0xf0]  ;;  %v721_v23 = vor.u32 %v833_v18, %v718_v20  ;;  %v834_v25 = vld [vmem:[%s1097_s25 + $0x2c] sm:$0xf]  ;;  %v726_v26 = vld [vmem:[%s1097_s25 + $0x38] sm:$0xf0]  ;;  %v288_v27 = vmul.f32 %v1142_v52, %v287_v14 }
  0x30   : > { %517 = vmatpush.bf16.msra.mxu0 %v749_v56  ;;  %530 = vmatpush.bf16.msra.mxu1 %v753_v60  ;;  %v725_v24 = vor.u32 %v836_v22, %v724_v21  ;;  %v729_v28 = vor.u32 %v834_v25, %v726_v26  ;;  %v700_v29 = vld [vmem:[%s1097_s25] sm:$0xf]  ;;  %v831_v30 = vld [vmem:[%s1097_s25 + $0xc] sm:$0xf0]  ;;  %v829_v31 = vld [vmem:[%s1097_s25 + $0x4] sm:$0xf] }
  0x31   : > { %543 = vmatpush.bf16.msra.mxu2 %v757_v61  ;;  %v701_v32 = vor.u32 %v831_v30, %v700_v29  ;;  %v702_v33 = vld [vmem:[%s1097_s25 + $0x10] sm:$0xf0]  ;;  %v708_v34 = vld [vmem:[%s1097_s25 + $0x8] sm:$0xf]  ;;  %v832_v35 = vld [vmem:[%s1097_s25 + $0x14] sm:$0xf0]  ;;  %v289_v40 = vadd.f32 %v1142_v52, %v288_v27 }
  0x32   : > { %556 = vmatpush.bf16.msra.mxu3 %v761_v1  ;;  %v705_v36 = vor.u32 %v829_v31, %v702_v33  ;;  %v709_v37 = vor.u32 %v832_v35, %v708_v34  ;;  %v830_v38 = vld [vmem:[%s1097_s25 + $0xc] sm:$0xf]  ;;  %v710_v39 = vld [vmem:[%s1097_s25 + $0x18] sm:$0xf0]  ;;  %v920_v53 = vld [vmem:[%s1211_s1] ss:$0 sm:$0xff] }
  0x33   : > { %v713_v41 = vor.u32 %v830_v38, %v710_v39  ;;  %v291_v42 = vsel %vm290_vm0, %v1142_v52, %v289_v40  ;;  %s1225_s30 = smov (!%p266_p13, %s695_s30), 11 }
  0x34   : > { %518 = vmatpush.bf16.msra.mxu0 %v733_v6  ;;  %531 = vmatpush.bf16.msra.mxu1 %v737_v10  ;;  %s268_s7 = scalar_lea.vmem %s1213_s3, %s1225_s30  ;;  %s697_s8 = sshll.u32 %s1225_s30, 2 }
  0x35   : > { %544 = vmatpush.bf16.msra.mxu2 %v741_v11  ;;  %v343_v57 = vld [vmem:[%s268_s7] sm:$0xf]  ;;  %s278_s11 = scalar_lea.vmem %s1214_s4, %s697_s8 }
  0x36   : > { %557 = vmatpush.bf16.msra.mxu3 %v745_v15  ;;  %v345_v58 = vperm.slane %v343_v57, 0  ;;  %v346_v59 = vperm.slane %v343_v57, 1  ;;  %v347_v0 = vperm.slane %v343_v57, 2  ;;  %v348_v1 = vperm.slane %v343_v57, 3 }
  0x38   : > { %519 = vmatpush.bf16.msra.mxu0 %v717_v19  ;;  %532 = vmatpush.bf16.msra.mxu1 %v721_v23 }
  0x39   : > { %545 = vmatpush.bf16.msra.mxu2 %v725_v24 }
  0x3a   : > { %558 = vmatpush.bf16.msra.mxu3 %v729_v28 }
  0x3c   : > { %520 = vmatpush.bf16.msra.mxu0 %v701_v32  ;;  %533 = vmatpush.bf16.msra.mxu1 %v705_v36 }
  0x3d   : > { %546 = vmatpush.bf16.msra.mxu2 %v709_v37 }
  0x3e   : > { %559 = vmatpush.bf16.msra.mxu3 %v713_v41 }
  0x94   : > { %v284_v43 = vpop.xlane.xlu0 %283 }
  0x95   : > { %v292_v44 = vmul.f32 %v291_v42, %v284_v43 }
  0x97   : > { %v293_v45 = vadd.f32 1e-06, %v292_v44 }
  0x99   : > { %923 = vrsqrt.f32 %v293_v45  ;;  %vm300_vm2 = vweird.f32 %v293_v45 }
  0x9f   : > { %v924_v46 = vpop.eup %923 }
  0xa0   : > { %v295_v47 = vmul.f32 %v924_v46, %v293_v45  ;;  %vm301_vm1 = vweird.f32 %v924_v46 }
  0xa1   : > { %vm302_vm3 = vmor %vm300_vm2, %vm301_vm1 }
  0xa2   : > { %v296_v48 = vmul.f32 %v924_v46, %v295_v47 }
  0xa4   : > { %v297_v49 = vmul.f32 0.5, %v296_v48 }
  0xa6   : > { %v298_v50 = vsub.f32 1.5, %v297_v49 }
  0xa8   : > { %v299_v51 = vmul.f32 %v924_v46, %v298_v50 }
  0xaa   : > { %v303_v54 = vsel %vm302_vm3, %v924_v46, %v299_v51 }
  0xab   : > { %v304_v52 = vmul.f32 %v303_v54, %v1108_v3 }
  0xad   : > { %v309_v55 = vmul.f32 %v920_v53, %v304_v52 }
  0xaf   : > { %v310_v56 = vpack.c.bf16 %v309_v55, %v309_v55 }
  0xb1   : > { %521 = vmatmul.bf16.vlgmr.msra.gmra.mxu0 %v310_v56  ;;  %534 = vmatmul.bf16.vlgmr.msra.gmra.mxu1 %v310_v56 }
  0xb2   : > { %547 = vmatmul.bf16.vlgmr.msra.gmra.mxu2 %v310_v56  ;;  %560 = vmatmul.bf16.vlgmr.msra.gmra.mxu3 %v310_v56 }
 0x12e   : > { %v522_v60 = vpop.f32.mrf.mxu0  ;;  %v535_v61 = vpop.f32.mrf.mxu1 }
 0x12f   : > { %v523_v3 = vadd.f32 %v522_v60, %v345_v58  ;;  %v536_v62 = vadd.f32 %v535_v61, %v346_v59 }
 0x131   : > { %v565_v63 = vpack.c.bf16 %v536_v62, %v523_v3 }
 0x133   : > { %567 = vst [vmem:[%s278_s11] sm:$0xff] %v565_v63 }
 0x135   : > { %v548_v2 = vpop.f32.mrf.mxu2  ;;  %v561_v4 = vpop.f32.mrf.mxu3 }
 0x136   : > { %v549_v5 = vadd.f32 %v548_v2, %v347_v0  ;;  %v562_v6 = vadd.f32 %v561_v4, %v348_v1  ;;  %v524_v7 = vpop.f32.mrf.mxu0  ;;  %v537_v8 = vpop.f32.mrf.mxu1 }
 0x138   : > { %v566_v9 = vpack.c.bf16 %v562_v6, %v549_v5 }
 0x13a   : > { %568 = vst [vmem:[%s278_s11 + $0x8] sm:$0xff] %v566_v9 }
 0x13d   : > { %v550_v10 = vpop.f32.mrf.mxu2  ;;  %v563_v11 = vpop.f32.mrf.mxu3 }
 0x13e PF: > { %s17_s20 = sadd.s32 1, %s1005_s20   ;;  %s1217_s15 = smov %s989_s16 }
 0x13f   : > { %p14_p0 = scmp.ge.s32.totalorder %s17_s20, 5   ;;  %s1218_s16 = smov %s993_s17 }
 0x140   : > { %s1219_s17 = smov %s1085_s27  ;;  %s1220_s18 = smov %s1001_s19 }
 0x141   : > { %s1221_s19 = smov %s1223_s22  ;;  %16 = sbr.rel (!%p14_p0) target bundleno = 4 (0x4), region = 82 }
 0x146   :  { %599 = vsyncpa [#allocation3], 1 }
 0x147   :  { %601 = vsyncpa [#allocation3 + $0x1], 1 }

// kernel: mimo_mtp_forward.5
= control target key start
LH: loop header
LB: loop body
LE: loop exit
PB: predicated region body
PF: predicated region fallthrough
CT: control target
= control target key end

     0   :  { %12 = vsyncpa [#allocation3], 0  ;;  %s503_s0 = inlined_call_operand.vmem [shape: s32[8,1], index: 0, kind: input, shape index: {}]   ;;  %s504_s1 = inlined_call_operand.vmem [shape: f32[8,128], index: 1, kind: input, shape index: {}]   ;;  %s505_s2 = inlined_call_operand.vmem [shape: f32[8,128], index: 2, kind: input, shape index: {}]   ;;  %s506_s3 = inlined_call_operand.vmem [shape: f32[1,128], index: 3, kind: input, shape index: {}]   ;;  %s507_s4 = inlined_call_operand.vmem [shape: f32[1,128], index: 4, kind: input, shape index: {}]   ;;  %s508_s5 = inlined_call_operand.hbm [shape: bf16[128,128], index: 5, kind: input, shape index: {}]   ;;  %s509_s6 = inlined_call_operand.hbm [shape: bf16[128,128], index: 6, kind: input, shape index: {}]   ;;  %s510_s7 = inlined_call_operand.vmem [shape: bf16[8,128], index: 7, kind: output, shape index: {}]  }
   0x1   :  { %s28_s26 = sshll.u32 %s508_s5, 4  ;;  %s29_s26 = int_to_ptr.hbm [resolvable:$true] %s28_s26 }
   0x2   :  { %13 = vsyncpa [#allocation5], 0  ;;  %s428_s27 = smov [#allocation2]   ;;  %s41_s8 = sshll.u32 %s509_s6, 4  ;;  %s42_s8 = int_to_ptr.hbm [resolvable:$true] %s41_s8 }
   0x3   :  { %s30_s28 = sshll.u32 %s428_s27, 4  ;;  %s429_s9 = smov 64   ;;  %s31_s28 = int_to_ptr.vmem [resolvable:$true] %s30_s28 }
   0x4   :  { %s430_s10 = smov 4   ;;  %s431_s11 = smov [#allocation4]  }
   0x5   :  { %36 = dma.hbm_to_vmem [thread:$0]  %s29_s26, 1024, %s31_s28, [#allocation3], %s429_s9, %s429_s9, %s430_s10  }
   0x6   :  { %s43_s12 = sshll.u32 %s431_s11, 4  ;;  %s44_s12 = int_to_ptr.vmem [resolvable:$true] %s43_s12 }
   0x7   :  { %49 = dma.hbm_to_vmem [thread:$0]  %s42_s8, 1024, %s44_s12, [#allocation5], %s429_s9, %s429_s9, %s430_s10  }
   0x8   :  { %424 = dma.done.wait [#allocation3], 1024  }
   0x9   :  { %425 = vsyncadd [#allocation3], 4294966272 }
   0xa   :  { %426 = dma.done.wait [#allocation5], 1024  }
   0xb   :  { %427 = vsyncadd [#allocation5], 4294966272  ;;  %v432_v0 = vmov 0   ;;  %v58_v1 = vld [vmem:[%s503_s0] sm:$0xff]  ;;  %v352_v5 = vld [vmem:[#allocation2 + $0x38] sm:$0xff]  ;;  %v433_v17 = vmov 128.0  }
   0xc   :  { %367 = vset.pattern.permute.xlu0 %v432_v0  ;;  %v96_v2 = vld [vmem:[%s504_s1] sm:$0xff]  ;;  %vm60_vm0 = vcmp.eq.s32.totalorder %v58_v1, 0  ;;  %260 = vmatpush.bf16.msra.mxu1 %v352_v5  ;;  %v351_v6 = vld [vmem:[#allocation2 + $0x30] sm:$0xff]  ;;  %v360_v7 = vld [vmem:[#allocation4 + $0x38] sm:$0xff]  ;;  %370 = vrcp.f32 %v433_v17 }
   0xd   :  { %v97_v3 = vmul.f32 %v96_v2, %v96_v2  ;;  %v61_v4 = vsel %vm60_vm0, 1, %v432_v0  ;;  %v350_v8 = vld [vmem:[#allocation2 + $0x28] sm:$0xff]  ;;  %199 = vmatpush.bf16.msra.mxu0 %v360_v7  ;;  %v349_v9 = vld [vmem:[#allocation2 + $0x20] sm:$0xff]  ;;  %v348_v10 = vld [vmem:[#allocation2 + $0x18] sm:$0xff] }
   0xe   :  { %63 = vperm.xlu0 %367, %v61_v4   ;;  %v59_v11 = vld [vmem:[%s505_s2] sm:$0xff]  ;;  %v347_v13 = vld [vmem:[#allocation2 + $0x10] sm:$0xff]  ;;  %v346_v16 = vld [vmem:[#allocation2 + $0x8] sm:$0xff] }
   0xf   :  { %98 = vadd.xlane.f32.xlu1 %v97_v3  ;;  %v359_v34 = vld [vmem:[#allocation4 + $0x30] sm:$0xff]  ;;  %v368_v36 = vld [vmem:[%s506_s3] ss:$0 sm:$0xff]  ;;  %v358_v39 = vld [vmem:[#allocation4 + $0x28] sm:$0xff] }
  0x10   :  { %261 = vmatpush.bf16.msra.mxu1 %v351_v6  ;;  %v345_v37 = vld [vmem:[#allocation2] sm:$0xff]  ;;  %v356_v42 = vld [vmem:[#allocation4 + $0x18] sm:$0xff]  ;;  %v355_v43 = vld [vmem:[#allocation4 + $0x10] sm:$0xff] }
  0x11   :  { %200 = vmatpush.bf16.msra.mxu0 %v359_v34  ;;  %v357_v41 = vld [vmem:[#allocation4 + $0x20] sm:$0xff]  ;;  %v354_v44 = vld [vmem:[#allocation4 + $0x8] sm:$0xff] }
  0x12   :  { %v371_v18 = vpop.eup %370  ;;  %v353_v45 = vld [vmem:[#allocation4] sm:$0xff] }
  0x13   :  { %v71_v19 = vmul.f32 128.0, %v371_v18  ;;  %vm75_vm2 = vweird.f32 %v371_v18  ;;  %v369_v55 = vld [vmem:[%s507_s4] ss:$0 sm:$0xff] }
  0x14   :  { %262 = vmatpush.bf16.msra.mxu1 %v350_v8 }
  0x15   :  { %v72_v20 = vsub.f32 1.0, %v71_v19  ;;  %201 = vmatpush.bf16.msra.mxu0 %v358_v39 }
  0x17   :  { %v73_v21 = vmul.f32 %v371_v18, %v72_v20 }
  0x18   :  { %263 = vmatpush.bf16.msra.mxu1 %v349_v9 }
  0x19   :  { %v74_v22 = vadd.f32 %v371_v18, %v73_v21  ;;  %202 = vmatpush.bf16.msra.mxu0 %v357_v41 }
  0x1b   :  { %v76_v23 = vsel %vm75_vm2, %v371_v18, %v74_v22 }
  0x1c   :  { %264 = vmatpush.bf16.msra.mxu1 %v348_v10 }
  0x1d   :  { %203 = vmatpush.bf16.msra.mxu0 %v356_v42 }
  0x20   :  { %265 = vmatpush.bf16.msra.mxu1 %v347_v13 }
  0x21   :  { %204 = vmatpush.bf16.msra.mxu0 %v355_v43 }
  0x24   :  { %266 = vmatpush.bf16.msra.mxu1 %v346_v16 }
  0x25   :  { %205 = vmatpush.bf16.msra.mxu0 %v354_v44 }
  0x28   :  { %267 = vmatpush.bf16.msra.mxu1 %v345_v37 }
  0x29   :  { %206 = vmatpush.bf16.msra.mxu0 %v353_v45 }
  0x80   :  { %v64_v12 = vpop.permute.xlu0 %63 }
  0x81   :  { %vm65_vm1 = vcmp.eq.s32.totalorder %v64_v12, 1 }
  0x82   :  { %v489_v14 = vsel %vm65_vm1, 0.0, %v59_v11  ;;  %v99_v24 = vpop.xlane.xlu1 %98 }
  0x83   :  { %v67_v15 = vmul.f32 %v489_v14, %v489_v14  ;;  %v100_v25 = vmul.f32 %v99_v24, %v76_v23 }
  0x85   :  { %68 = vadd.xlane.f32.xlu0 %v67_v15  ;;  %v101_v26 = vadd.f32 1e-06, %v100_v25 }
  0x87   :  { %372 = vrsqrt.f32 %v101_v26  ;;  %vm108_vm3 = vweird.f32 %v101_v26 }
  0x8d   :  { %v373_v27 = vpop.eup %372 }
  0x8e   :  { %v103_v28 = vmul.f32 %v373_v27, %v101_v26  ;;  %vm109_vm4 = vweird.f32 %v373_v27 }
  0x8f   :  { %vm110_vm5 = vmor %vm108_vm3, %vm109_vm4 }
  0x90   :  { %v104_v29 = vmul.f32 %v373_v27, %v103_v28 }
  0x92   :  { %v105_v30 = vmul.f32 0.5, %v104_v29 }
  0x94   :  { %v106_v31 = vsub.f32 1.5, %v105_v30 }
  0x96   :  { %v107_v32 = vmul.f32 %v373_v27, %v106_v31 }
  0x98   :  { %v111_v33 = vsel %vm110_vm5, %v373_v27, %v107_v32 }
  0x99   :  { %v112_v35 = vmul.f32 %v111_v33, %v96_v2 }
  0x9b   :  { %v117_v38 = vmul.f32 %v368_v36, %v112_v35 }
  0x9d   :  { %v118_v40 = vpack.c.bf16 %v117_v38, %v117_v38 }
  0x9f   :  { %268 = vmatmul.bf16.vlgmr.msra.gmra.mxu1 %v118_v40 }
  0xf8   :  { %v69_v46 = vpop.xlane.xlu0 %68 }
  0xf9   :  { %v77_v47 = vmul.f32 %v76_v23, %v69_v46 }
  0xfb   :  { %v78_v48 = vadd.f32 1e-06, %v77_v47 }
  0xfd   :  { %374 = vrsqrt.f32 %v78_v48  ;;  %vm85_vm7 = vweird.f32 %v78_v48 }
 0x103   :  { %v375_v49 = vpop.eup %374 }
 0x104   :  { %v80_v50 = vmul.f32 %v375_v49, %v78_v48  ;;  %vm86_vm6 = vweird.f32 %v375_v49 }
 0x105   :  { %vm87_vm8 = vmor %vm85_vm7, %vm86_vm6 }
 0x106   :  { %v81_v51 = vmul.f32 %v375_v49, %v80_v50 }
 0x108   :  { %v82_v52 = vmul.f32 0.5, %v81_v51 }
 0x10a   :  { %v83_v53 = vsub.f32 1.5, %v82_v52 }
 0x10c   :  { %v84_v54 = vmul.f32 %v375_v49, %v83_v53 }
 0x10e   :  { %v88_v56 = vsel %vm87_vm8, %v375_v49, %v84_v54 }
 0x10f   :  { %v89_v57 = vmul.f32 %v88_v56, %v489_v14 }
 0x111   :  { %v94_v58 = vmul.f32 %v369_v55, %v89_v57 }
 0x113   :  { %v95_v59 = vpack.c.bf16 %v94_v58, %v94_v58 }
 0x115   :  { %207 = vmatmul.bf16.vlgmr.msra.gmra.mxu0 %v95_v59 }
 0x11c   :  { %v269_v60 = vpop.f32.mrf.mxu1 }
 0x124   :  { %v271_v61 = vpop.f32.mrf.mxu1 }
 0x192   :  { %v208_v62 = vpop.f32.mrf.mxu0 }
 0x193   :  { %v270_v63 = vadd.f32 %v269_v60, %v208_v62 }
 0x195   :  { %v273_v0 = vpack.c.bf16 %v270_v63, %v270_v63 }
 0x197   :  { %274 = vst [vmem:[%s510_s7] sm:$0xf] %v273_v0 }
 0x19a   :  { %v210_v1 = vpop.f32.mrf.mxu0 }
 0x19b   :  { %279 = vsyncpa [#allocation3], 1 }
 0x19c   :  { %280 = vsyncpa [#allocation5], 1 }

// kernel: mimo_mtp_forward.8
= control target key start
LH: loop header
LB: loop body
LE: loop exit
PB: predicated region body
PF: predicated region fallthrough
CT: control target
= control target key end

     0   :  { %11 = vsyncpa [#allocation4], 0  ;;  %s1322_s0 = inlined_call_operand.vmem [shape: bf16[8,1024], index: 0, kind: input, shape index: {}]   ;;  %s1323_s1 = inlined_call_operand.vmem [shape: bf16[8,128], index: 1, kind: input, shape index: {}]   ;;  %s1324_s2 = inlined_call_operand.hbm [shape: bf16[1024,128], index: 2, kind: input, shape index: {}]   ;;  %s1325_s3 = inlined_call_operand.vmem [shape: f32[1,128], index: 3, kind: input, shape index: {}]   ;;  %s1326_s4 = inlined_call_operand.vmem [shape: bf16[8,128], index: 4, kind: output, shape index: {0}]   ;;  %s1327_s5 = inlined_call_operand.vmem [shape: bf16[8,128], index: 5, kind: output, shape index: {1}]  }
   0x1   :  { %13 = vsyncpa [#allocation4 + $0x1], 0  ;;  %s1183_s18 = smov 0   ;;  %s1185_s19 = smov 0  }
   0x2   :  { %s1187_s20 = smov 0   ;;  %s1189_s21 = smov 0  }
   0x3   :  { %s1191_s22 = smov 0   ;;  %s1193_s23 = smov 0  }
   0x4 LB: > { %s825_s24 = sadd.s32 4294967295, %s1147_s23   ;;  %s28_s25 = sadd.s32 1, %s1143_s22  ;;  %s1147_s23 = sphi %s1193_s23, %s19_s23   ;;  %s1143_s22 = sphi %s1191_s22, %s1334_s22   ;;  %s1139_s21 = sphi %s1189_s21, %s1333_s21   ;;  %s1135_s20 = sphi %s1187_s20, %s1332_s20   ;;  %s1131_s19 = sphi %s1185_s19, %s1331_s19   ;;  %s1127_s18 = sphi %s1183_s18, %s1330_s18  }
   0x5   : > { %p29_p0 = scmp.ge.s32.totalorder %s28_s25, 2  ;;  %s92_s26 = sadd.s32 1, %s1135_s20 }
   0x6   : > { %p99_p1 = scmp.ne.s32.totalorder %s1135_s20, %s1131_s19  ;;  %p100_p2 = scmp.eq.s32.totalorder %s1147_s23, 0 }
   0x7   : > { %s1336_s25 = smov (%p29_p0, %s28_s25), 0  ;;  %p105_p4 = scmp.ne.s32.totalorder %s1131_s19, %s1127_s18 }
   0x8   : > { %p1219_p3 = por %p100_p2, %p99_p1  ;;  %s89_s28 = ssub.s32 %s1143_s22, %s1336_s25 }
   0x9   : > { %p106_p5 = scmp.eq.s32.totalorder %s825_s24, 0  ;;  %p90_p6 = scmp.eq.s32.totalorder %s89_s28, 0 }
   0xa   : > { %p1009_p8 = scmp.lt.s32.totalorder %s1147_s23, 2  ;;  %s225_s6 = sand.u32 1, %s1135_s20  }
   0xb   : > { %p1226_p7 = por %p106_p5, %p105_p4  ;;  %s970_s7 = sshll.u32 %s1143_s22, 8 }
   0xc   : > { %s1232_s30 = scalar_select %p90_p6, %s1135_s20, %s92_s26  }
   0xd   : > { %s829_s8 = sshll.u32 %s225_s6, 8  ;;  %s234_s11 = scalar_lea.hbm %s1324_s2, %s970_s7 }
   0xe   : > { %s235_s12 = sshll.u32 %s234_s11, 4  ;;  %s229_s13 = scalar_lea.vmem [#allocation3], %s829_s8  ;;  %s236_s12 = int_to_ptr.hbm [resolvable:$true] %s235_s12 }
   0xf   : > { %s237_s14 = sshll.u32 %s229_s13, 4  ;;  %p1006_p9 = pnand %p1009_p8, %p1219_p3  ;;  %s238_s14 = int_to_ptr.vmem [resolvable:$true] %s237_s14 }
  0x10   : > { %p832_p10 = scmp.ge.s32.totalorder %s1147_s23, 1  ;;  %p245_p11 = scmp.lt.s32.totalorder %s1147_s23, 3 }
  0x11   : > { %s226_s15 = scalar_lea.sflag [#allocation4], %s225_s6  ;;  %s1149_s16 = smov 64  }
  0x12   : > { %s1150_s17 = smov 4   ;;  %p246_p12 = pnand %p832_p10, %p245_p11 }
  0x13   : > { %1008 = dma.hbm_to_vmem [thread:$0]  (!%p1006_p9), %s236_s12, 4096, %s238_s14, %s226_s15, %s1149_s16, %s1149_s16, %s1150_s17  }
  0x14   : > { %249 = sbr.rel (%p246_p12) target bundleno = 364 (0x16c), region = 36  ;;  %s251_s18 = sand.u32 (!%p246_p12), 1, %s1131_s19  }
  0x15   : > { %s833_s24 = sshll.u32 (!%p246_p12), %s251_s18, 8  ;;  %s252_s26 = scalar_lea.sflag (!%p246_p12), [#allocation4], %s251_s18 }
  0x16   : > { %s1244_s28 = scalar_lea.vmem (!%p246_p12), [#allocation3], %s833_s24 }
  0x19   : > { %1122 = dma.done.wait (%p1226_p7), %s252_s26, 4096  }
  0x1a   : > { %1124 = vsyncadd (%p1226_p7), %s252_s26, 4294963200  ;;  %s834_s27 = sshll.u32 %s1139_s21, 2  ;;  %p836_p0 = scmp.ne.s32.totalorder %s1139_s21, 0 }
  0x1b   : > { %p302_p13 = scmp.lt.s32.totalorder %s834_s27, 7 }
  0x1c   : > { %325 = sbr.rel (%p836_p0) target bundleno = 35 (0x23), region = 44 }
  0x1d   : > { %s1338_s27 = smov (!%p302_p13, %s834_s27), 7 }
  0x1e   : > { %s835_s6 = sshll.u32 %s1338_s27, 2 }
  0x1f   : > { %s1254_s9 = scalar_lea.vmem %s1322_s0, %s835_s6 }
  0x21   : > { %v1151_v0 = vmov 0.0  }
  0x22   : > { %326 = vst [vmem:[#allocation2] sm:$0xff] %v1151_v0 }
  0x23 PF: > { %v978_v1 = vld [vmem:[%s1244_s28 + $0x38] sm:$0xff]  ;;  %v977_v5 = vld [vmem:[%s1244_s28 + $0x30] sm:$0xff]  ;;  %v976_v9 = vld [vmem:[%s1244_s28 + $0x28] sm:$0xff]  ;;  %p965_p1 = scmp.ne.s32.totalorder %s1139_s21, 1 }
  0x24   : > { %v986_v2 = vld [vmem:[%s1244_s28 + $0x78] sm:$0xff]  ;;  %600 = vmatpush.bf16.msra.mxu0 %v978_v1  ;;  %v985_v6 = vld [vmem:[%s1244_s28 + $0x70] sm:$0xff]  ;;  %v984_v10 = vld [vmem:[%s1244_s28 + $0x68] sm:$0xff] }
  0x25   : > { %v994_v3 = vld [vmem:[%s1244_s28 + $0xb8] sm:$0xff]  ;;  %613 = vmatpush.bf16.msra.mxu1 %v986_v2  ;;  %v993_v7 = vld [vmem:[%s1244_s28 + $0xb0] sm:$0xff]  ;;  %v992_v11 = vld [vmem:[%s1244_s28 + $0xa8] sm:$0xff] }
  0x26   : > { %v1002_v4 = vld [vmem:[%s1244_s28 + $0xf8] sm:$0xff]  ;;  %626 = vmatpush.bf16.msra.mxu2 %v994_v3  ;;  %v1001_v8 = vld [vmem:[%s1244_s28 + $0xf0] sm:$0xff]  ;;  %v1000_v12 = vld [vmem:[%s1244_s28 + $0xe8] sm:$0xff] }
  0x27   : > { %639 = vmatpush.bf16.msra.mxu3 %v1002_v4  ;;  %v975_v13 = vld [vmem:[%s1244_s28 + $0x20] sm:$0xff]  ;;  %v974_v17 = vld [vmem:[%s1244_s28 + $0x18] sm:$0xff]  ;;  %v973_v21 = vld [vmem:[%s1244_s28 + $0x10] sm:$0xff] }
  0x28   : > { %601 = vmatpush.bf16.msra.mxu0 %v977_v5  ;;  %v983_v14 = vld [vmem:[%s1244_s28 + $0x60] sm:$0xff]  ;;  %v982_v18 = vld [vmem:[%s1244_s28 + $0x58] sm:$0xff]  ;;  %v981_v22 = vld [vmem:[%s1244_s28 + $0x50] sm:$0xff] }
  0x29   : > { %614 = vmatpush.bf16.msra.mxu1 %v985_v6  ;;  %v991_v15 = vld [vmem:[%s1244_s28 + $0xa0] sm:$0xff]  ;;  %v990_v19 = vld [vmem:[%s1244_s28 + $0x98] sm:$0xff]  ;;  %v989_v23 = vld [vmem:[%s1244_s28 + $0x90] sm:$0xff] }
  0x2a   : > { %627 = vmatpush.bf16.msra.mxu2 %v993_v7  ;;  %v999_v16 = vld [vmem:[%s1244_s28 + $0xe0] sm:$0xff]  ;;  %v998_v20 = vld [vmem:[%s1244_s28 + $0xd8] sm:$0xff]  ;;  %v997_v24 = vld [vmem:[%s1244_s28 + $0xd0] sm:$0xff] }
  0x2b   : > { %640 = vmatpush.bf16.msra.mxu3 %v1001_v8  ;;  %v972_v25 = vld [vmem:[%s1244_s28 + $0x8] sm:$0xff]  ;;  %v328_v27 = vld [vmem:[%s1254_s9] sm:$0xff]  ;;  %v329_v30 = vld [vmem:[%s1254_s9 + $0x8] sm:$0xff] }
  0x2c   : > { %602 = vmatpush.bf16.msra.mxu0 %v976_v9  ;;  %v980_v26 = vld [vmem:[%s1244_s28 + $0x48] sm:$0xff]  ;;  %v396_v31 = vunpack.c.l.b16 %v328_v27  ;;  %v397_v32 = vunpack.c.h.b16 %v328_v27  ;;  %v971_v33 = vld [vmem:[%s1244_s28] sm:$0xff]  ;;  %v398_v35 = vunpack.c.l.b16 %v329_v30  ;;  %v399_v36 = vunpack.c.h.b16 %v329_v30  ;;  %v327_v51 = vld [vmem:[#allocation2] sm:$0xff] }
  0x2d   : > { %615 = vmatpush.bf16.msra.mxu1 %v984_v10  ;;  %v988_v28 = vld [vmem:[%s1244_s28 + $0x88] sm:$0xff]  ;;  %v979_v34 = vld [vmem:[%s1244_s28 + $0x40] sm:$0xff] }
  0x2e   : > { %628 = vmatpush.bf16.msra.mxu2 %v992_v11  ;;  %v996_v29 = vld [vmem:[%s1244_s28 + $0xc8] sm:$0xff]  ;;  %v987_v37 = vld [vmem:[%s1244_s28 + $0x80] sm:$0xff]  ;;  %v400_v39 = vpack.c.b16 %v396_v31, %v396_v31  ;;  %v401_v40 = vpack.c.b16 %v397_v32, %v397_v32  ;;  %v402_v41 = vpack.c.b16 %v398_v35, %v398_v35  ;;  %v403_v42 = vpack.c.b16 %v399_v36, %v399_v36 }
  0x2f   : > { %641 = vmatpush.bf16.msra.mxu3 %v1000_v12  ;;  %v995_v38 = vld [vmem:[%s1244_s28 + $0xc0] sm:$0xff] }
  0x30   : > { %603 = vmatpush.bf16.msra.mxu0 %v975_v13 }
  0x31   : > { %616 = vmatpush.bf16.msra.mxu1 %v983_v14 }
  0x32   : > { %629 = vmatpush.bf16.msra.mxu2 %v991_v15 }
  0x33   : > { %642 = vmatpush.bf16.msra.mxu3 %v999_v16 }
  0x34   : > { %604 = vmatpush.bf16.msra.mxu0 %v974_v17 }
  0x35   : > { %617 = vmatpush.bf16.msra.mxu1 %v982_v18 }
  0x36   : > { %630 = vmatpush.bf16.msra.mxu2 %v990_v19 }
  0x37   : > { %643 = vmatpush.bf16.msra.mxu3 %v998_v20 }
  0x38   : > { %605 = vmatpush.bf16.msra.mxu0 %v973_v21 }
  0x39   : > { %618 = vmatpush.bf16.msra.mxu1 %v981_v22 }
  0x3a   : > { %631 = vmatpush.bf16.msra.mxu2 %v989_v23 }
  0x3b   : > { %644 = vmatpush.bf16.msra.mxu3 %v997_v24 }
  0x3c   : > { %606 = vmatpush.bf16.msra.mxu0 %v972_v25 }
  0x3d   : > { %619 = vmatpush.bf16.msra.mxu1 %v980_v26 }
  0x3e   : > { %632 = vmatpush.bf16.msra.mxu2 %v988_v28 }
  0x3f   : > { %645 = vmatpush.bf16.msra.mxu3 %v996_v29 }
  0x40   : > { %607 = vmatpush.bf16.msra.mxu0 %v971_v33 }
  0x41   : > { %620 = vmatpush.bf16.msra.mxu1 %v979_v34 }
  0x42   : > { %633 = vmatpush.bf16.msra.mxu2 %v987_v37 }
  0x43   : > { %646 = vmatpush.bf16.msra.mxu3 %v995_v38  ;;  %608 = vmatmul.bf16.vlgmr.msra.gmra.mxu0 %v400_v39 }
  0x44   : > { %621 = vmatmul.bf16.vlgmr.msra.gmra.mxu1 %v401_v40 }
  0x45   : > { %634 = vmatmul.bf16.vlgmr.msra.gmra.mxu2 %v402_v41 }
  0x46   : > { %647 = vmatmul.bf16.vlgmr.msra.gmra.mxu3 %v403_v42 }
  0xc0   : > { %v609_v43 = vpop.f32.mrf.mxu0 }
  0xc1   : > { %v622_v44 = vpop.f32.mrf.mxu1 }
  0xc2   : > { %v623_v45 = vadd.f32 %v622_v44, %v609_v43 }
  0xc8   : > { %v635_v46 = vpop.f32.mrf.mxu2  ;;  %v611_v49 = vpop.f32.mrf.mxu0 }
  0xc9   : > { %v648_v47 = vpop.f32.mrf.mxu3  ;;  %v636_v48 = vadd.f32 %v635_v46, %v623_v45  ;;  %v624_v50 = vpop.f32.mrf.mxu1 }
  0xcb   : > { %v649_v52 = vadd.f32 %v648_v47, %v636_v48 }
  0xcd   : > { %v652_v53 = vadd.f32 %v649_v52, %v327_v51  ;;  %657 = sbr.rel (%p965_p1) target bundleno = 364 (0x16c), region = 48 }
  0xcf   : > { %653 = vst [vmem:[#allocation2] sm:$0xff] %v652_v53 }
  0xd0   : > { %v637_v54 = vpop.f32.mrf.mxu2 }
  0xd1   : > { %v650_v55 = vpop.f32.mrf.mxu3 }
  0xd2   : > { %v659_v57 = vld [vmem:[%s1323_s1] sm:$0xf]  ;;  %v1152_v62 = vmov 128.0  }
  0xd3   : > { %v660_v58 = vunpack.c.l.bf16 %v659_v57  ;;  %1063 = vrcp.f32 %v1152_v62  ;;  %v1062_v14 = vld [vmem:[%s1325_s3] ss:$0 sm:$0xff] }
  0xd6   : > { %v658_v56 = vld [vmem:[#allocation2] sm:$0xff] }
  0xd7   : > { %v661_v59 = vadd.f32 %v660_v58, %v658_v56 }
  0xd9   : > { %v662_v60 = vpack.c.bf16 %v661_v59, %v661_v59  ;;  %v664_v61 = vmul.f32 %v661_v59, %v661_v59  ;;  %v1064_v63 = vpop.eup %1063 }
  0xda   : > { %v668_v0 = vmul.f32 128.0, %v1064_v63  ;;  %vm672_vm0 = vweird.f32 %v1064_v63 }
  0xdb   : > { %663 = vst [vmem:[%s1327_s5] sm:$0xf] %v662_v60  ;;  %665 = vadd.xlane.f32.xlu0 %v664_v61 }
  0xdc   : > { %v669_v1 = vsub.f32 1.0, %v668_v0 }
  0xde   : > { %v670_v2 = vmul.f32 %v1064_v63, %v669_v1 }
  0xe0   : > { %v671_v3 = vadd.f32 %v1064_v63, %v670_v2 }
  0xe2   : > { %v673_v4 = vsel %vm672_vm0, %v1064_v63, %v671_v3 }
 0x14e   : > { %v666_v5 = vpop.xlane.xlu0 %665 }
 0x14f   : > { %v674_v6 = vmul.f32 %v673_v4, %v666_v5 }
 0x151   : > { %v675_v7 = vadd.f32 1e-06, %v674_v6 }
 0x153   : > { %1065 = vrsqrt.f32 %v675_v7  ;;  %vm682_vm2 = vweird.f32 %v675_v7 }
 0x159   : > { %v1066_v8 = vpop.eup %1065 }
 0x15a   : > { %v677_v9 = vmul.f32 %v1066_v8, %v675_v7  ;;  %vm683_vm1 = vweird.f32 %v1066_v8 }
 0x15b   : > { %vm684_vm3 = vmor %vm682_vm2, %vm683_vm1 }
 0x15c   : > { %v678_v10 = vmul.f32 %v1066_v8, %v677_v9 }
 0x15e   : > { %v679_v11 = vmul.f32 0.5, %v678_v10 }
 0x160   : > { %v680_v12 = vsub.f32 1.5, %v679_v11 }
 0x162   : > { %v681_v13 = vmul.f32 %v1066_v8, %v680_v12 }
 0x164   : > { %v685_v15 = vsel %vm684_vm3, %v1066_v8, %v681_v13 }
 0x165   : > { %v686_v16 = vmul.f32 %v685_v15, %v661_v59 }
 0x167   : > { %v691_v17 = vmul.f32 %v1062_v14, %v686_v16 }
 0x169   : > { %v692_v18 = vpack.c.bf16 %v691_v17, %v691_v17 }
 0x16b   : > { %693 = vst [vmem:[%s1326_s4] sm:$0xf] %v692_v18 }
 0x16c PF: > { %s19_s23 = sadd.s32 1, %s1147_s23   ;;  %s1330_s18 = smov %s1131_s19 }
 0x16d   : > { %p16_p2 = scmp.ge.s32.totalorder %s19_s23, 4   ;;  %s1331_s19 = smov %s1135_s20 }
 0x16e   : > { %s1332_s20 = smov %s1232_s30  ;;  %s1333_s21 = smov %s1143_s22 }
 0x16f   : > { %s1334_s22 = smov %s1336_s25  ;;  %18 = sbr.rel (!%p16_p2) target bundleno = 4 (0x4), region = 102 }
 0x174   :  { %727 = vsyncpa [#allocation4], 1 }
 0x175   :  { %729 = vsyncpa [#allocation4 + $0x1], 1 }

// kernel: mimo_mtp_forward.7
= control target key start
LH: loop header
LB: loop body
LE: loop exit
PB: predicated region body
PF: predicated region fallthrough
CT: control target
= control target key end

     0   :  { %s717_s18 = smov 0   ;;  %s821_s0 = inlined_call_operand.vmem [shape: bf16[8,1536], index: 0, kind: input, shape index: {}, may-alias: {0,1,2}]   ;;  %s822_s1 = inlined_call_operand.vmem [shape: bf16[8,1536], index: 1, kind: input, shape index: {}, may-alias: {0,1,2}]   ;;  %s823_s2 = inlined_call_operand.vmem [shape: bf16[8,1536], index: 2, kind: input, shape index: {}, may-alias: {0,1,2}]   ;;  %s824_s3 = inlined_call_operand.vmem [shape: f32[8,128], index: 3, kind: input, shape index: {}]   ;;  %s825_s4 = inlined_call_operand.vmem [shape: f32[8,128], index: 4, kind: input, shape index: {}]   ;;  %s826_s5 = inlined_call_operand.vmem [shape: bf16[8,1024], index: 5, kind: output, shape index: {}]  }
   0x1 LB: > { %s631_s19 = sadd.s32 4294967295, %s684_s18   ;;  %p635_p0 = scmp.ge.s32.totalorder %s684_s18, 1  ;;  %s684_s18 = sphi %s717_s18, %s15_s18  }
   0x2   : > { %p214_p1 = scmp.lt.s32.totalorder %s684_s18, 3 }
   0x4   : > { %p215_p2 = pnand %p635_p0, %p214_p1 }
   0x5   : > { %s258_s20 = sadd.s32 (!%p215_p2), 8, %s631_s19  ;;  %s725_s21 = sshll.u32 (!%p215_p2), %s631_s19, 2 }
   0x6   : > { %218 = sbr.rel (%p215_p2) target bundleno = 827 (0x33b), region = 40  ;;  %p259_p3 = scmp.lt.s32.totalorder (!%p215_p2), %s258_s20, 11 }
   0x7   : > { %p253_p4 = scmp.lt.s32.totalorder (!%p215_p2), %s725_s21, 11  ;;  %s686_s6 = smov (!%p215_p2), 64  }
   0x8   : > { %s264_s7 = sadd.s32 (!%p215_p2), 10, %s631_s19  ;;  %p271_p6 = scmp.lt.s32.totalorder (!%p215_p2), %s725_s21, 7 }
   0x9   : > { %p265_p5 = scmp.lt.s32.totalorder (!%p215_p2), %s264_s7, 11 }
   0xb   : > { %s828_s20 = smov (!%p259_p3, %s258_s20), 11  ;;  %s830_s7 = smov (!%p265_p5, %s264_s7), 11  ;;  %vm347_vm0 = vcmask 1043456   ;;  %v752_v17 = vld [vmem:[%s824_s3] sm:$0xff]  ;;  %vm290_vm1 = vcmask 523264   ;;  %v297_v51 = vlaneseq  ;;  %vm333_vm3 = vcmask 64512  }
   0xc   : > { %s254_s22 = scalar_select %p253_p4, %s725_s21, 11  ;;  %v757_v18 = vld [vmem:[%s825_s4] sm:$0xff] }
   0xd   : > { %s638_s23 = sshll.u32 %s828_s20, 2  ;;  %s639_s8 = sshll.u32 %s830_s7, 2  ;;  %v773_v52 = vshrl.u32 %v297_v51, 7  ;;  %v775_v53 = vand.u32 127, %v297_v51 }
   0xe   : > { %s262_s26 = scalar_lea.vmem %s822_s1, %s638_s23  ;;  %s637_s27 = sshll.u32 %s254_s22, 2 }
   0xf   : > { %v279_v0 = vld [vmem:[%s262_s26] sm:$0xf]  ;;  %s256_s30 = scalar_lea.vmem %s821_s0, %s637_s27  ;;  %s268_s11 = scalar_lea.vmem %s823_s2, %s639_s8  ;;  %vm301_vm2 = vcmp.le.s32.totalorder %v775_v53, %v773_v52 }
  0x10   : > { %v280_v1 = vunpack.c.l.bf16 %v279_v0  ;;  %v302_v2 = vld [vmem:[%s256_s30] sm:$0xff]   ;;  %v429_v9 = vld [vmem:[%s256_s30 + $0x8] sm:$0xff]   ;;  %s832_s21 = smov (!%p271_p6, %s725_s21), 7 }
  0x11   : > { %v303_v3 = vunpack.c.l.bf16 %v302_v2  ;;  %v296_v6 = vld [vmem:[%s268_s11] sm:$0xf]  ;;  %v369_v8 = vunpack.c.h.bf16 %v302_v2  ;;  %v742_v10 = vunpack.c.l.bf16 %v429_v9  ;;  %v491_v13 = vunpack.c.h.bf16 %v429_v9  ;;  %s641_s16 = sshll.u32 %s832_s21, 2 }
  0x12   : > { %v281_v4 = vsub.f32 0.0, %v280_v1  ;;  %v349_v7 = vsel %vm347_vm0, %v296_v6, 0  ;;  %v292_v20 = vmul.f32 %v280_v1, %v752_v17  ;;  %s806_s20 = scalar_lea.vmem %s826_s5, %s641_s16 }
  0x13   : > { %v304_v5 = vsub.f32 0.0, %v303_v3  ;;  %358 = vmatpush.bf16.msra.mxu1 %v349_v7  ;;  %419 = vmatpush.bf16.msra.mxu3 %v349_v7  ;;  %v370_v11 = vsub.f32 0.0, %v369_v8  ;;  %v431_v12 = vsub.f32 0.0, %v742_v10  ;;  %v492_v15 = vsub.f32 0.0, %v491_v13 }
  0x14   : > { %283 = vrot.lane.b32.xlu0 %v281_v4, %s686_s6  ;;  %v657_v19 = vpack.i.bf16 %v491_v13, %v742_v10  ;;  %v314_v24 = vmul.f32 %v303_v3, %v752_v17  ;;  %v380_v35 = vmul.f32 %v369_v8, %v752_v17  ;;  %v502_v44 = vmul.f32 %v491_v13, %v752_v17 }
  0x15   : > { %306 = vrot.lane.b32.xlu1 %v304_v5, %s686_s6  ;;  %372 = vrot.lane.b32.xlu2 %v370_v11, %s686_s6  ;;  %v441_v11 = vmul.f32 %v742_v10, %v752_v17 }
  0x17   : > { %480 = vmatpush.bf16.msrb.mxu3 %v349_v7 }
  0x1c   : > { %287 = vrot.lane.b32.xlu0 %v280_v1, %s686_s6 }
  0x1d   : > { %310 = vrot.lane.b32.xlu1 %v303_v3, %s686_s6  ;;  %376 = vrot.lane.b32.xlu2 %v369_v8, %s686_s6 }
  0x25   : > { %433 = vrot.lane.b32.xlu1 %v431_v12, %s686_s6  ;;  %658 = vrot.lane.b32.xlu2 %v657_v19, %s686_s6 }
  0x2d   : > { %494 = vrot.lane.b32.xlu1 %v492_v15, %s686_s6 }
  0x6f   : > { %v373_v33 = vpop.permute.xlu2 %372 }
  0x77   : > { %v377_v34 = vpop.permute.xlu2 %376 }
  0x78   : > { %v379_v36 = vsel %vm290_vm1, %v373_v33, %v377_v34 }
  0x79   : > { %v381_v37 = vmul.f32 %v379_v36, %v757_v18 }
  0x7b   : > { %v382_v38 = vadd.f32 %v381_v37, %v380_v35 }
  0x7d   : > { %v383_v39 = vmul.f32 0.088388346, %v382_v38 }
  0x7f   : > { %v384_v40 = vpack.c.bf16 %v383_v39, %v383_v39  ;;  %v659_v42 = vpop.permute.xlu2 %658 }
  0x80   : > { %v661_v43 = vunpack.i.h.bf16 %v659_v42  ;;  %v660_v5 = vunpack.i.l.bf16 %v659_v42 }
  0x86   : > { %v284_v14 = vpop.permute.xlu0 %283 }
  0x87   : > { %v307_v16 = vpop.permute.xlu1 %306 }
  0x8e   : > { %v288_v21 = vpop.permute.xlu0 %287 }
  0x8f   : > { %v291_v22 = vsel %vm290_vm1, %v284_v14, %v288_v21  ;;  %v311_v23 = vpop.permute.xlu1 %310 }
  0x90   : > { %v293_v25 = vmul.f32 %v291_v22, %v757_v18  ;;  %v313_v26 = vsel %vm290_vm1, %v307_v16, %v311_v23 }
  0x91   : > { %v315_v27 = vmul.f32 %v313_v26, %v757_v18 }
  0x92   : > { %v294_v28 = vadd.f32 %v293_v25, %v292_v20 }
  0x93   : > { %v316_v29 = vadd.f32 %v315_v27, %v314_v24 }
  0x94   : > { %v295_v30 = vpack.c.bf16 %v294_v28, %v294_v28 }
  0x95   : > { %v317_v31 = vmul.f32 0.088388346, %v316_v29 }
  0x96   : > { %326 = vmatpush.bf16.xpose.msra.mxu0 %v295_v30  ;;  %392 = vmatpush.bf16.xpose.msra.mxu2 %v295_v30 }
  0x97   : > { %453 = vmatpush.bf16.xpose.msrb.mxu1 %v295_v30  ;;  %v318_v32 = vpack.c.bf16 %v317_v31, %v317_v31  ;;  %v434_v41 = vpop.permute.xlu1 %433 }
  0x98   : > { %v440_v9 = vsel %vm290_vm1, %v434_v41, %v660_v5 }
  0x99   : > { %v442_v12 = vmul.f32 %v440_v9, %v757_v18 }
  0x9b   : > { %v443_v13 = vadd.f32 %v442_v12, %v441_v11 }
  0x9d   : > { %327 = vmatmul.bf16.vlgmr.msra.gmra.mxu0 %v318_v32  ;;  %393 = vmatmul.bf16.vlgmr.msra.gmra.mxu2 %v384_v40  ;;  %v444_v14 = vmul.f32 0.088388346, %v443_v13 }
  0x9e   : > { %514 = vmatpush.bf16.xpose.msrb.mxu0 %v295_v30  ;;  %541 = vmatpush.bf16.msrb.mxu2 %v349_v7 }
  0x9f   : > { %v495_v45 = vpop.permute.xlu1 %494  ;;  %v445_v15 = vpack.c.bf16 %v444_v14, %v444_v14 }
  0xa0   : > { %v501_v46 = vsel %vm290_vm1, %v495_v45, %v661_v43 }
  0xa1   : > { %v503_v47 = vmul.f32 %v501_v46, %v757_v18 }
  0xa3   : > { %v504_v48 = vadd.f32 %v503_v47, %v502_v44 }
  0xa5   : > { %v505_v49 = vmul.f32 0.088388346, %v504_v48 }
  0xa7   : > { %v506_v50 = vpack.c.bf16 %v505_v49, %v505_v49 }
  0xad   : > { %515 = vmatmul.bf16.vlgmr.msrb.gmra.mxu0 %v506_v50 }
 0x11a   : > { %v328_v54 = vpop.f32.mrf.mxu0 }
 0x11b   : > { %v332_v55 = vsel %vm301_vm2, %v328_v54, -inf }
 0x11c   : > { %v334_v56 = vsel %vm333_vm3, %v332_v55, -inf }
 0x11d   : > { %335 = vmax.xlane.f32.xlu0 %v334_v56 }
 0x120   : > { %v394_v58 = vpop.f32.mrf.mxu2 }
 0x121   : > { %v398_v59 = vsel %vm301_vm2, %v394_v58, -inf }
 0x122   : > { %v330_v57 = vpop.f32.mrf.mxu0  ;;  %v399_v60 = vsel %vm333_vm3, %v398_v59, -inf }
 0x123   : > { %400 = vmax.xlane.f32.xlu2 %v399_v60 }
 0x128   : > { %v396_v61 = vpop.f32.mrf.mxu2 }
 0x12a   : > { %v516_v62 = vpop.f32.mrf.mxu0 }
 0x12b   : > { %v520_v63 = vsel %vm301_vm2, %v516_v62, -inf }
 0x12c   : > { %v521_v0 = vsel %vm333_vm3, %v520_v63, -inf }
 0x12d   : > { %522 = vmax.xlane.f32.xlu0 %v521_v0 }
 0x132   : > { %v518_v4 = vpop.f32.mrf.mxu0 }
 0x190   : > { %v336_v1 = vpop.xlane.xlu0 %335 }
 0x191   : > { %v337_v2 = vsub.f32 %v332_v55, %v336_v1 }
 0x193   : > { %v338_v3 = vmul.f32 1.442695, %v337_v2 }
 0x195   : > { %662 = vpow2.f32 %v338_v3 }
 0x196   : > { %v401_v16 = vpop.xlane.xlu2 %400 }
 0x197   : > { %v402_v19 = vsub.f32 %v398_v59, %v401_v16 }
 0x199   : > { %v403_v20 = vmul.f32 1.442695, %v402_v19 }
 0x19b   : > { %v663_v6 = vpop.eup %662  ;;  %664 = vpow2.f32 %v403_v20 }
 0x19c   : > { %v340_v7 = vsel %vm333_vm3, %v663_v6, 0.0  ;;  %v343_v8 = vpack.c.bf16 %v663_v6, %v663_v6 }
 0x19d   : > { %341 = vadd.xlane.f32.xlu2 %v340_v7 }
 0x19e   : > { %642 = vmatmul.msk.bf16.vlgmr.msra.gmra.mxu1 %vm333_vm3, %v343_v8 }
 0x1a0   : > { %v523_v10 = vpop.xlane.xlu0 %522 }
 0x1a1   : > { %v665_v21 = vpop.eup %664  ;;  %v524_v17 = vsub.f32 %v520_v63, %v523_v10 }
 0x1a2   : > { %v408_v22 = vpack.c.bf16 %v665_v21, %v665_v21  ;;  %v405_v23 = vsel %vm333_vm3, %v665_v21, 0.0 }
 0x1a3   : > { %406 = vadd.xlane.f32.xlu0 %v405_v23  ;;  %v525_v18 = vmul.f32 1.442695, %v524_v17 }
 0x1a4   : > { %643 = vmatmul.msk.bf16.vlgmr.msra.gmra.mxu3 %vm333_vm3, %v408_v22 }
 0x1a5   : > { %666 = vpow2.f32 %v525_v18 }
 0x1ab   : > { %v667_v24 = vpop.eup %666 }
 0x1ac   : > { %v530_v25 = vpack.c.bf16 %v667_v24, %v667_v24  ;;  %v527_v27 = vsel %vm333_vm3, %v667_v24, 0.0 }
 0x1ad   : > { %528 = vadd.xlane.f32.xlu0 %v527_v27 }
 0x1ae   : > { %454 = vmatmul.bf16.vlgmr.msrb.gmra.mxu1 %v445_v15  ;;  %645 = vmatmul.msk.bf16.vlgmr.msrb.gmra.mxu2 %vm333_vm3, %v530_v25 }
 0x210   : > { %v342_v26 = vpop.xlane.xlu2 %341 }
 0x211   : > { %668 = vrcp.f32 %v342_v26 }
 0x216   : > { %v407_v37 = vpop.xlane.xlu0 %406 }
 0x217   : > { %v669_v28 = vpop.eup %668  ;;  %670 = vrcp.f32 %v407_v37 }
 0x21b   : > { %v360_v29 = vpop.f32.mrf.mxu1 }
 0x21c   : > { %v365_v30 = vmul.f32 %v669_v28, %v360_v29 }
 0x21d   : > { %v671_v39 = vpop.eup %670 }
 0x21e   : > { %v366_v31 = vpack.c.bf16 %v365_v30, %v365_v30 }
 0x220   : > { %367 = vst [vmem:[%s806_s20] sm:$0xf] %v366_v31  ;;  %v529_v51 = vpop.xlane.xlu0 %528 }
 0x223   : > { %v362_v32 = vpop.f32.mrf.mxu1 }
 0x227   : > { %v421_v38 = vpop.f32.mrf.mxu3 }
 0x228   : > { %v426_v40 = vmul.f32 %v671_v39, %v421_v38 }
 0x22a   : > { %v427_v41 = vpack.c.bf16 %v426_v40, %v426_v40 }
 0x22b   : > { %v455_v33 = vpop.f32.mrf.mxu1 }
 0x22c   : > { %v459_v34 = vsel %vm301_vm2, %v455_v33, -inf  ;;  %428 = vst [vmem:[%s806_s20 + $0x4] sm:$0xf] %v427_v41 }
 0x22d   : > { %v460_v35 = vsel %vm333_vm3, %v459_v34, -inf }
 0x22e   : > { %461 = vmax.xlane.f32.xlu1 %v460_v35 }
 0x22f   : > { %v423_v42 = vpop.f32.mrf.mxu3 }
 0x231   : > { %v543_v43 = vpop.f32.mrf.mxu2 }
 0x233   : > { %v457_v36 = vpop.f32.mrf.mxu1 }
 0x239   : > { %v545_v44 = vpop.f32.mrf.mxu2 }
 0x2a1   : > { %v462_v45 = vpop.xlane.xlu1 %461 }
 0x2a2   : > { %v463_v46 = vsub.f32 %v459_v34, %v462_v45 }
 0x2a4   : > { %v464_v47 = vmul.f32 1.442695, %v463_v46 }
 0x2a6   : > { %672 = vpow2.f32 %v464_v47 }
 0x2a7   : > { %674 = vrcp.f32 %v529_v51 }
 0x2ac   : > { %v673_v48 = vpop.eup %672 }
 0x2ad   : > { %v466_v49 = vsel %vm333_vm3, %v673_v48, 0.0  ;;  %v469_v50 = vpack.c.bf16 %v673_v48, %v673_v48  ;;  %v675_v53 = vpop.eup %674 }
 0x2ae   : > { %467 = vadd.xlane.f32.xlu2 %v466_v49  ;;  %v548_v55 = vmul.f32 %v675_v53, %v543_v43 }
 0x2af   : > { %644 = vmatmul.msk.bf16.vlgmr.msrb.gmra.mxu3 %vm333_vm3, %v469_v50 }
 0x2b0   : > { %v549_v59 = vpack.c.bf16 %v548_v55, %v548_v55 }
 0x2b2   : > { %550 = vst [vmem:[%s806_s20 + $0xc] sm:$0xf] %v549_v59 }
 0x321   : > { %v468_v52 = vpop.xlane.xlu2 %467 }
 0x322   : > { %676 = vrcp.f32 %v468_v52 }
 0x328   : > { %v677_v54 = vpop.eup %676 }
 0x332   : > { %v482_v56 = vpop.f32.mrf.mxu3 }
 0x333   : > { %v487_v57 = vmul.f32 %v677_v54, %v482_v56 }
 0x335   : > { %v488_v58 = vpack.c.bf16 %v487_v57, %v487_v57 }
 0x337   : > { %489 = vst [vmem:[%s806_s20 + $0x8] sm:$0xf] %v488_v58 }
 0x33a   : > { %v484_v60 = vpop.f32.mrf.mxu3 }
 0x33b PF: > { %s15_s18 = sadd.s32 1, %s684_s18  }
 0x33c   : > { %p12_p7 = scmp.ge.s32.totalorder %s15_s18, 4  }
 0x33e   :  { %14 = sbr.rel (!%p12_p7) target bundleno = 1 (0x1), region = 76 }

// kernel: mimo_mtp_forward.9
= control target key start
LH: loop header
LB: loop body
LE: loop exit
PB: predicated region body
PF: predicated region fallthrough
CT: control target
= control target key end

     0   :  { %s2634_s0 = inlined_call_operand.vmem [shape: bf16[8,128], index: 0, kind: input, shape index: {}]   ;;  %s2635_s1 = inlined_call_operand.vmem [shape: bf16[8,128], index: 1, kind: input, shape index: {}]   ;;  %s2636_s2 = inlined_call_operand.hbm [shape: bf16[128,1024], index: 2, kind: input, shape index: {}]   ;;  %s2637_s3 = inlined_call_operand.hbm [shape: bf16[128,1024], index: 3, kind: input, shape index: {}]   ;;  %s2638_s4 = inlined_call_operand.hbm [shape: bf16[1024,128], index: 4, kind: input, shape index: {}]   ;;  %s2639_s5 = inlined_call_operand.vmem [shape: f32[1,128], index: 5, kind: input, shape index: {}]   ;;  %s2640_s6 = inlined_call_operand.hbm [shape: f32[8,128], index: 6, kind: output, shape index: {}]  }
   0x1   :  { %2644 = sst [smem:[#allocation17_spill]] %s2635_s1 }
   0x2   :  { %2645 = sst [smem:[#allocation18_spill]] %s2637_s3 }
   0x3   :  { %2646 = sst [smem:[#allocation19_spill]] %s2639_s5 }
   0x4   :  { %2647 = sst [smem:[#allocation20_spill]] %s2640_s6 }
   0x5   :  { %11 = vsyncpa [#allocation4], 0 }
   0x6   :  { %13 = vsyncpa [#allocation4 + $0x1], 0 }
   0x7   :  { %14 = vsyncpa [#allocation7], 0 }
   0x8   :  { %16 = vsyncpa [#allocation7 + $0x1], 0 }
   0x9   :  { %17 = vsyncpa [#allocation5], 0  ;;  %s2302_s21 = smov 0   ;;  %s2304_s22 = smov 0  }
   0xa   :  { %s2306_s23 = smov 0   ;;  %s2308_s24 = smov 0  }
   0xb   :  { %s2310_s25 = smov 0   ;;  %s2312_s26 = smov 0  }
   0xc LB: > { %2648 = sst [smem:[#allocation13_spill]] %s2245_s23  ;;  %s2331_s27 = sadd.s32 4294967295, %s2257_s26   ;;  %s2257_s26 = sphi %s2312_s26, %s23_s26   ;;  %s2253_s25 = sphi %s2310_s25, %s2666_s25   ;;  %s2249_s24 = sphi %s2308_s24, %s2665_s24   ;;  %s2245_s23 = sphi %s2306_s23, %s2661_s23   ;;  %s2241_s22 = sphi %s2304_s22, %s2664_s22   ;;  %s2237_s21 = sphi %s2302_s21, %s2663_s21  }
   0xd   : > { %2649 = sst [smem:[#allocation14_spill]] %s2257_s26  ;;  %s32_s28 = sadd.s32 1, %s2253_s25 }
   0xe   : > { %p33_p0 = scmp.ge.s32.totalorder %s32_s28, 2  ;;  %s94_s29 = sadd.s32 1, %s2245_s23 }
   0xf   : > { %p101_p1 = scmp.ne.s32.totalorder %s2245_s23, %s2241_s22  ;;  %p102_p2 = scmp.eq.s32.totalorder %s2257_s26, 0 }
  0x10   : > { %s2668_s28 = smov (%p33_p0, %s32_s28), 0  ;;  %p107_p4 = scmp.ne.s32.totalorder %s2241_s22, %s2237_s21 }
  0x11   : > { %2650 = sst [smem:[#allocation15_spill]] %s2668_s28  ;;  %p103_p3 = por %p102_p2, %p101_p1 }
  0x12   : > { %s91_s30 = ssub.s32 %s2253_s25, %s2668_s28  ;;  %p108_p5 = scmp.eq.s32.totalorder %s2331_s27, 0 }
  0x13   : > { %p92_p6 = scmp.eq.s32.totalorder %s91_s30, 0  ;;  %p2001_p8 = scmp.lt.s32.totalorder %s2257_s26, 2 }
  0x14   : > { %p2344_p7 = por %p108_p5, %p107_p4  ;;  %s247_s9 = sand.u32 1, %s2245_s23  }
  0x15   : > { %s2350_s8 = scalar_select %p92_p6, %s2245_s23, %s94_s29  }
  0x16   : > { %s1882_s10 = sshll.u32 %s2253_s25, 4  ;;  %s2354_s11 = sshll.u32 %s247_s9, 8 }
  0x17   : > { %2652 = sst [smem:[#allocation16_spill]] %s2350_s8  ;;  %p2356_p9 = pnand %p2001_p8, %p103_p3 }
  0x18   : > { %s269_s13 = sand.u32 1, %s2257_s26   ;;  %s2654_s3 = sld [smem:[#allocation18_spill]] }
  0x19   : > { %s273_s18 = scalar_lea.vmem [#allocation6], %s2354_s11  ;;  %s2365_s20 = scalar_lea.sflag [#allocation7], %s269_s13 }
  0x1a   : > { %s281_s19 = sshll.u32 %s273_s18, 4  ;;  %s2259_s21 = smov 512   ;;  %s282_s19 = int_to_ptr.vmem [resolvable:$true] %s281_s19 }
  0x1b   : > { %s2260_s29 = smov 256   ;;  %s2261_s30 = smov 16  }
  0x1c   : > { %p1484_p10 = scmp.ge.s32.totalorder %s2257_s26, 1  ;;  %p311_p11 = scmp.lt.s32.totalorder %s2257_s26, 3 }
  0x1d   : > { %s256_s18 = scalar_lea.hbm %s2636_s2, %s1882_s10  ;;  %s248_s8 = scalar_lea.sflag [#allocation4], %s247_s9 }
  0x1e   : > { %s278_s16 = scalar_lea.hbm %s2654_s3, %s1882_s10  ;;  %p2372_p12 = pnand %p1484_p10, %p311_p11 }
  0x1f   : > { %s279_s17 = sshll.u32 %s278_s16, 4  ;;  %s257_s13 = sshll.u32 %s256_s18, 4  ;;  %s280_s17 = int_to_ptr.hbm [resolvable:$true] %s279_s17  ;;  %s258_s13 = int_to_ptr.hbm [resolvable:$true] %s257_s13 }
  0x20   : > { %1997 = dma.hbm_to_vmem [thread:$0]  (!%p2356_p9), %s280_s17, 4096, %s282_s19, %s2365_s20, %s2259_s21, %s2260_s29, %s2261_s30  }
  0x21   : > { %s251_s3 = scalar_lea.vmem [#allocation3], %s2354_s11  ;;  %s1884_s17 = sshll.u32 %s2253_s25, 8 }
  0x22   : > { %s259_s28 = sshll.u32 %s251_s3, 4  ;;  %s300_s26 = scalar_lea.hbm %s2638_s4, %s1884_s17  ;;  %s260_s28 = int_to_ptr.vmem [resolvable:$true] %s259_s28 }
  0x23   : > { %1994 = dma.hbm_to_vmem [thread:$0]  (!%p2356_p9), %s258_s13, 4096, %s260_s28, %s248_s8, %s2259_s21, %s2260_s29, %s2261_s30  }
  0x24   : > { %s295_s6 = scalar_lea.vmem [#allocation8], %s2354_s11  ;;  %s301_s1 = sshll.u32 %s300_s26, 4  ;;  %s302_s1 = int_to_ptr.hbm [resolvable:$true] %s301_s1 }
  0x25   : > { %s303_s5 = sshll.u32 %s295_s6, 4  ;;  %s2262_s10 = smov 64   ;;  %s304_s5 = int_to_ptr.vmem [resolvable:$true] %s303_s5 }
  0x26   : > { %s2263_s15 = smov 4   ;;  %315 = sbr.rel (%p2372_p12) target bundleno = 562 (0x232), region = 44 }
  0x27   : > { %2000 = dma.hbm_to_vmem [thread:$0]  (!%p2356_p9), %s302_s1, 4096, %s304_s5, %s2365_s20, %s2262_s10, %s2262_s10, %s2263_s15  }
  0x28   : > { %s317_s3 = sand.u32 (!%p2372_p12), 1, %s2241_s22  }
  0x29   : > { %s1485_s28 = sshll.u32 (!%p2372_p12), %s317_s3, 8  ;;  %s318_s8 = scalar_lea.sflag (!%p2372_p12), [#allocation4], %s317_s3 }
  0x2a   : > { %s2393_s9 = scalar_lea.vmem (!%p2372_p12), [#allocation3], %s1485_s28 }
  0x2b   : > { %2224 = dma.done.wait (%p2344_p7), %s318_s8, 4096  }
  0x2c   : > { %2226 = vsyncadd (%p2344_p7), %s318_s8, 4294963200  ;;  %s327_s6 = sand.u32 1, %s2331_s27   ;;  %s2400_s1 = scalar_lea.vmem [#allocation6], %s1485_s28 }
  0x2d   : > { %s328_s23 = scalar_lea.sflag [#allocation7], %s327_s6 }
  0x2e   : > { %2228 = dma.done.wait (%p2344_p7), %s328_s23, 8192  }
  0x2f   : > { %2230 = vsyncadd (%p2344_p7), %s328_s23, 4294959104  ;;  %s2406_s5 = scalar_lea.vmem [#allocation8], %s1485_s28  ;;  %p1488_p13 = scmp.ne.s32.totalorder %s2249_s24, 0 }
  0x31   : > { %398 = sbr.rel (%p1488_p13) target bundleno = 56 (0x38), region = 60 }
  0x36   : > { %v2264_v0 = vmov 0.0  }
  0x37   : > { %399 = vst [vmem:[#allocation2] sm:$0xff] %v2264_v0 }
  0x38 PF: > { %v1603_v1 = vld [vmem:[%s2393_s9 + $0xe0] sm:$0xf]  ;;  %v1915_v2 = vld [vmem:[%s2393_s9 + $0xec] sm:$0xf0]  ;;  %v1913_v3 = vld [vmem:[%s2393_s9 + $0xe4] sm:$0xf] }
  0x39   : > { %v1604_v4 = vor.u32 %v1915_v2, %v1603_v1  ;;  %v1605_v5 = vld [vmem:[%s2393_s9 + $0xf0] sm:$0xf0]  ;;  %v1611_v6 = vld [vmem:[%s2393_s9 + $0xe8] sm:$0xf]  ;;  %v1916_v7 = vld [vmem:[%s2393_s9 + $0xf4] sm:$0xf0] }
  0x3a   : > { %v1608_v8 = vor.u32 %v1913_v3, %v1605_v5  ;;  %v1612_v9 = vor.u32 %v1916_v7, %v1611_v6  ;;  %v1914_v10 = vld [vmem:[%s2393_s9 + $0xec] sm:$0xf]  ;;  %v1613_v11 = vld [vmem:[%s2393_s9 + $0xf8] sm:$0xf0]  ;;  %v1587_v12 = vld [vmem:[%s2393_s9 + $0xc0] sm:$0xf] }
  0x3b   : > { %593 = vmatpush.bf16.msra.mxu0 %v1604_v4  ;;  %v1616_v13 = vor.u32 %v1914_v10, %v1613_v11  ;;  %v1911_v14 = vld [vmem:[%s2393_s9 + $0xcc] sm:$0xf0]  ;;  %v1909_v15 = vld [vmem:[%s2393_s9 + $0xc4] sm:$0xf]  ;;  %v1589_v16 = vld [vmem:[%s2393_s9 + $0xd0] sm:$0xf0] }
  0x3c   : > { %606 = vmatpush.bf16.msra.mxu1 %v1608_v8  ;;  %619 = vmatpush.bf16.msra.mxu2 %v1612_v9  ;;  %v1588_v17 = vor.u32 %v1911_v14, %v1587_v12  ;;  %v1592_v18 = vor.u32 %v1909_v15, %v1589_v16  ;;  %v1595_v19 = vld [vmem:[%s2393_s9 + $0xc8] sm:$0xf]  ;;  %v1912_v20 = vld [vmem:[%s2393_s9 + $0xd4] sm:$0xf0]  ;;  %v1910_v21 = vld [vmem:[%s2393_s9 + $0xcc] sm:$0xf] }
  0x3d   : > { %632 = vmatpush.bf16.msra.mxu3 %v1616_v13  ;;  %v1596_v22 = vor.u32 %v1912_v20, %v1595_v19  ;;  %v1597_v23 = vld [vmem:[%s2393_s9 + $0xd8] sm:$0xf0]  ;;  %v1571_v24 = vld [vmem:[%s2393_s9 + $0xa0] sm:$0xf]  ;;  %v1907_v25 = vld [vmem:[%s2393_s9 + $0xac] sm:$0xf0] }
  0x3e   : > { %v1600_v26 = vor.u32 %v1910_v21, %v1597_v23  ;;  %v1905_v27 = vld [vmem:[%s2393_s9 + $0xa4] sm:$0xf]  ;;  %v1573_v28 = vld [vmem:[%s2393_s9 + $0xb0] sm:$0xf0]  ;;  %v1579_v29 = vld [vmem:[%s2393_s9 + $0xa8] sm:$0xf]  ;;  %v1572_v30 = vor.u32 %v1907_v25, %v1571_v24 }
  0x3f   : > { %594 = vmatpush.bf16.msra.mxu0 %v1588_v17  ;;  %v1908_v31 = vld [vmem:[%s2393_s9 + $0xb4] sm:$0xf0]  ;;  %v1906_v32 = vld [vmem:[%s2393_s9 + $0xac] sm:$0xf]  ;;  %v1581_v33 = vld [vmem:[%s2393_s9 + $0xb8] sm:$0xf0]  ;;  %v1576_v34 = vor.u32 %v1905_v27, %v1573_v28 }
  0x40   : > { %607 = vmatpush.bf16.msra.mxu1 %v1592_v18  ;;  %620 = vmatpush.bf16.msra.mxu2 %v1596_v22  ;;  %v1580_v35 = vor.u32 %v1908_v31, %v1579_v29  ;;  %v1555_v36 = vld [vmem:[%s2393_s9 + $0x80] sm:$0xf]  ;;  %v1903_v37 = vld [vmem:[%s2393_s9 + $0x8c] sm:$0xf0]  ;;  %v1901_v38 = vld [vmem:[%s2393_s9 + $0x84] sm:$0xf]  ;;  %v1584_v39 = vor.u32 %v1906_v32, %v1581_v33 }
  0x41   : > { %633 = vmatpush.bf16.msra.mxu3 %v1600_v26  ;;  %v1557_v40 = vld [vmem:[%s2393_s9 + $0x90] sm:$0xf0]  ;;  %v1563_v41 = vld [vmem:[%s2393_s9 + $0x88] sm:$0xf]  ;;  %v1904_v42 = vld [vmem:[%s2393_s9 + $0x94] sm:$0xf0]  ;;  %v1556_v45 = vor.u32 %v1903_v37, %v1555_v36 }
  0x42   : > { %v1902_v43 = vld [vmem:[%s2393_s9 + $0x8c] sm:$0xf]  ;;  %v1565_v44 = vld [vmem:[%s2393_s9 + $0x98] sm:$0xf0]  ;;  %v1560_v46 = vor.u32 %v1901_v38, %v1557_v40  ;;  %v1564_v47 = vor.u32 %v1904_v42, %v1563_v41  ;;  %v1539_v48 = vld [vmem:[%s2393_s9 + $0x60] sm:$0xf] }
  0x43   : > { %595 = vmatpush.bf16.msra.mxu0 %v1572_v30  ;;  %v1899_v49 = vld [vmem:[%s2393_s9 + $0x6c] sm:$0xf0]  ;;  %v1897_v50 = vld [vmem:[%s2393_s9 + $0x64] sm:$0xf]  ;;  %v1568_v51 = vor.u32 %v1902_v43, %v1565_v44  ;;  %v1541_v52 = vld [vmem:[%s2393_s9 + $0x70] sm:$0xf0] }
  0x44   : > { %608 = vmatpush.bf16.msra.mxu1 %v1576_v34  ;;  %621 = vmatpush.bf16.msra.mxu2 %v1580_v35  ;;  %v1547_v53 = vld [vmem:[%s2393_s9 + $0x68] sm:$0xf]  ;;  %v1900_v54 = vld [vmem:[%s2393_s9 + $0x74] sm:$0xf0]  ;;  %v1898_v55 = vld [vmem:[%s2393_s9 + $0x6c] sm:$0xf]  ;;  %v1540_v57 = vor.u32 %v1899_v49, %v1539_v48  ;;  %v1544_v58 = vor.u32 %v1897_v50, %v1541_v52 }
  0x45   : > { %634 = vmatpush.bf16.msra.mxu3 %v1584_v39  ;;  %v1549_v56 = vld [vmem:[%s2393_s9 + $0x78] sm:$0xf0]  ;;  %v1548_v59 = vor.u32 %v1900_v54, %v1547_v53  ;;  %v1523_v60 = vld [vmem:[%s2393_s9 + $0x40] sm:$0xf]  ;;  %v1895_v61 = vld [vmem:[%s2393_s9 + $0x4c] sm:$0xf0] }
  0x46   : > { %v1893_v62 = vld [vmem:[%s2393_s9 + $0x44] sm:$0xf]  ;;  %v1552_v63 = vor.u32 %v1898_v55, %v1549_v56  ;;  %v1525_v0 = vld [vmem:[%s2393_s9 + $0x50] sm:$0xf0]  ;;  %v1531_v1 = vld [vmem:[%s2393_s9 + $0x48] sm:$0xf]  ;;  %v1524_v5 = vor.u32 %v1895_v61, %v1523_v60 }
  0x47   : > { %596 = vmatpush.bf16.msra.mxu0 %v1556_v45  ;;  %v1896_v2 = vld [vmem:[%s2393_s9 + $0x54] sm:$0xf0]  ;;  %v1894_v3 = vld [vmem:[%s2393_s9 + $0x4c] sm:$0xf]  ;;  %v1533_v4 = vld [vmem:[%s2393_s9 + $0x58] sm:$0xf0]  ;;  %v1528_v6 = vor.u32 %v1893_v62, %v1525_v0 }
  0x48   : > { %609 = vmatpush.bf16.msra.mxu1 %v1560_v46  ;;  %622 = vmatpush.bf16.msra.mxu2 %v1564_v47  ;;  %v1532_v7 = vor.u32 %v1896_v2, %v1531_v1  ;;  %v1507_v8 = vld [vmem:[%s2393_s9 + $0x20] sm:$0xf]  ;;  %v1891_v9 = vld [vmem:[%s2393_s9 + $0x2c] sm:$0xf0]  ;;  %v1889_v10 = vld [vmem:[%s2393_s9 + $0x24] sm:$0xf]  ;;  %v1536_v11 = vor.u32 %v1894_v3, %v1533_v4 }
  0x49   : > { %635 = vmatpush.bf16.msra.mxu3 %v1568_v51  ;;  %v1509_v12 = vld [vmem:[%s2393_s9 + $0x30] sm:$0xf0]  ;;  %v1515_v13 = vld [vmem:[%s2393_s9 + $0x28] sm:$0xf]  ;;  %v1892_v14 = vld [vmem:[%s2393_s9 + $0x34] sm:$0xf0]  ;;  %v1508_v17 = vor.u32 %v1891_v9, %v1507_v8 }
  0x4a   : > { %v1890_v15 = vld [vmem:[%s2393_s9 + $0x2c] sm:$0xf]  ;;  %v1517_v16 = vld [vmem:[%s2393_s9 + $0x38] sm:$0xf0]  ;;  %v1491_v18 = vld [vmem:[%s2393_s9] sm:$0xf]  ;;  %v1512_v20 = vor.u32 %v1889_v10, %v1509_v12  ;;  %v1516_v21 = vor.u32 %v1892_v14, %v1515_v13 }
  0x4b   : > { %597 = vmatpush.bf16.msra.mxu0 %v1540_v57  ;;  %v1887_v19 = vld [vmem:[%s2393_s9 + $0xc] sm:$0xf0]  ;;  %v1885_v22 = vld [vmem:[%s2393_s9 + $0x4] sm:$0xf]  ;;  %v1493_v23 = vld [vmem:[%s2393_s9 + $0x10] sm:$0xf0]  ;;  %v1520_v25 = vor.u32 %v1890_v15, %v1517_v16 }
  0x4c   : > { %610 = vmatpush.bf16.msra.mxu1 %v1544_v58  ;;  %623 = vmatpush.bf16.msra.mxu2 %v1548_v59  ;;  %v1499_v24 = vld [vmem:[%s2393_s9 + $0x8] sm:$0xf]  ;;  %v1888_v26 = vld [vmem:[%s2393_s9 + $0x14] sm:$0xf0]  ;;  %v1886_v27 = vld [vmem:[%s2393_s9 + $0xc] sm:$0xf]  ;;  %v1492_v32 = vor.u32 %v1887_v19, %v1491_v18  ;;  %v1496_v36 = vor.u32 %v1885_v22, %v1493_v23 }
  0x4d   : > { %636 = vmatpush.bf16.msra.mxu3 %v1552_v63  ;;  %v1501_v28 = vld [vmem:[%s2393_s9 + $0x18] sm:$0xf0]  ;;  %v1739_v29 = vld [vmem:[%s2400_s1 + $0xe8] sm:$0xf]  ;;  %v1948_v30 = vld [vmem:[%s2400_s1 + $0xf4] sm:$0xf0]  ;;  %v1500_v37 = vor.u32 %v1888_v26, %v1499_v24 }
  0x4e   : > { %v1946_v31 = vld [vmem:[%s2400_s1 + $0xec] sm:$0xf]  ;;  %v1741_v33 = vld [vmem:[%s2400_s1 + $0xf8] sm:$0xf0]  ;;  %v1731_v34 = vld [vmem:[%s2400_s1 + $0xe0] sm:$0xf]  ;;  %v1504_v40 = vor.u32 %v1886_v27, %v1501_v28  ;;  %v1740_v41 = vor.u32 %v1948_v30, %v1739_v29 }
  0x4f   : > { %598 = vmatpush.bf16.msra.mxu0 %v1524_v5  ;;  %v1947_v35 = vld [vmem:[%s2400_s1 + $0xec] sm:$0xf0]  ;;  %v1945_v38 = vld [vmem:[%s2400_s1 + $0xe4] sm:$0xf]  ;;  %v1733_v39 = vld [vmem:[%s2400_s1 + $0xf0] sm:$0xf0]  ;;  %v1744_v42 = vor.u32 %v1946_v31, %v1741_v33 }
  0x50   : > { %611 = vmatpush.bf16.msra.mxu1 %v1528_v6  ;;  %624 = vmatpush.bf16.msra.mxu2 %v1532_v7  ;;  %v1732_v43 = vor.u32 %v1947_v35, %v1731_v34  ;;  %v1723_v44 = vld [vmem:[%s2400_s1 + $0xc8] sm:$0xf]  ;;  %v1944_v45 = vld [vmem:[%s2400_s1 + $0xd4] sm:$0xf0]  ;;  %v1942_v46 = vld [vmem:[%s2400_s1 + $0xcc] sm:$0xf]  ;;  %v1736_v47 = vor.u32 %v1945_v38, %v1733_v39 }
  0x51   : > { %637 = vmatpush.bf16.msra.mxu3 %v1536_v11  ;;  %v1725_v48 = vld [vmem:[%s2400_s1 + $0xd8] sm:$0xf0]  ;;  %v1715_v49 = vld [vmem:[%s2400_s1 + $0xc0] sm:$0xf]  ;;  %v1943_v50 = vld [vmem:[%s2400_s1 + $0xcc] sm:$0xf0]  ;;  %v1724_v54 = vor.u32 %v1944_v45, %v1723_v44 }
  0x52   : > { %v2490_v51 = vld [vmem:[%s2634_s0] sm:$0xf]  ;;  %v1941_v52 = vld [vmem:[%s2400_s1 + $0xc4] sm:$0xf]  ;;  %v1717_v53 = vld [vmem:[%s2400_s1 + $0xd0] sm:$0xf0]  ;;  %v1728_v55 = vor.u32 %v1942_v46, %v1725_v48  ;;  %v1716_v56 = vor.u32 %v1943_v50, %v1715_v49 }
  0x53   : > { %599 = vmatpush.bf16.msra.mxu0 %v1508_v17  ;;  %v1707_v57 = vld [vmem:[%s2400_s1 + $0xa8] sm:$0xf]  ;;  %v1940_v58 = vld [vmem:[%s2400_s1 + $0xb4] sm:$0xf0]  ;;  %v1938_v59 = vld [vmem:[%s2400_s1 + $0xac] sm:$0xf]  ;;  %v1720_v60 = vor.u32 %v1941_v52, %v1717_v53 }
  0x54   : > { %612 = vmatpush.bf16.msra.mxu1 %v1512_v20  ;;  %625 = vmatpush.bf16.msra.mxu2 %v1516_v21  ;;  %v1709_v61 = vld [vmem:[%s2400_s1 + $0xb8] sm:$0xf0]  ;;  %v1699_v62 = vld [vmem:[%s2400_s1 + $0xa0] sm:$0xf]  ;;  %v1939_v63 = vld [vmem:[%s2400_s1 + $0xac] sm:$0xf0]  ;;  %v1708_v2 = vor.u32 %v1940_v58, %v1707_v57 }
  0x55   : > { %638 = vmatpush.bf16.msra.mxu3 %v1520_v25  ;;  %v1937_v0 = vld [vmem:[%s2400_s1 + $0xa4] sm:$0xf]  ;;  %v1701_v1 = vld [vmem:[%s2400_s1 + $0xb0] sm:$0xf0]  ;;  %v1712_v3 = vor.u32 %v1938_v59, %v1709_v61  ;;  %v1700_v4 = vor.u32 %v1939_v63, %v1699_v62  ;;  %v1691_v5 = vld [vmem:[%s2400_s1 + $0x88] sm:$0xf] }
  0x56   : > { %v1936_v6 = vld [vmem:[%s2400_s1 + $0x94] sm:$0xf0]  ;;  %v1934_v7 = vld [vmem:[%s2400_s1 + $0x8c] sm:$0xf]  ;;  %v1704_v8 = vor.u32 %v1937_v0, %v1701_v1  ;;  %v1693_v9 = vld [vmem:[%s2400_s1 + $0x98] sm:$0xf0] }
  0x57   : > { %600 = vmatpush.bf16.msra.mxu0 %v1492_v32  ;;  %v1683_v10 = vld [vmem:[%s2400_s1 + $0x80] sm:$0xf]  ;;  %v1935_v11 = vld [vmem:[%s2400_s1 + $0x8c] sm:$0xf0]  ;;  %v1933_v12 = vld [vmem:[%s2400_s1 + $0x84] sm:$0xf]  ;;  %v1692_v14 = vor.u32 %v1936_v6, %v1691_v5  ;;  %v1696_v15 = vor.u32 %v1934_v7, %v1693_v9 }
  0x58   : > { %613 = vmatpush.bf16.msra.mxu1 %v1496_v36  ;;  %626 = vmatpush.bf16.msra.mxu2 %v1500_v37  ;;  %v1685_v13 = vld [vmem:[%s2400_s1 + $0x90] sm:$0xf0]  ;;  %v1684_v16 = vor.u32 %v1935_v11, %v1683_v10  ;;  %v1675_v17 = vld [vmem:[%s2400_s1 + $0x68] sm:$0xf]  ;;  %v1932_v18 = vld [vmem:[%s2400_s1 + $0x74] sm:$0xf0] }
  0x59   : > { %639 = vmatpush.bf16.msra.mxu3 %v1504_v40  ;;  %v1930_v19 = vld [vmem:[%s2400_s1 + $0x6c] sm:$0xf]  ;;  %v1688_v20 = vor.u32 %v1933_v12, %v1685_v13  ;;  %v1677_v21 = vld [vmem:[%s2400_s1 + $0x78] sm:$0xf0]  ;;  %v1667_v22 = vld [vmem:[%s2400_s1 + $0x60] sm:$0xf]  ;;  %v1676_v26 = vor.u32 %v1932_v18, %v1675_v17 }
  0x5a   : > { %601 = vmatmul.bf16.vlgmr.msra.gmra.mxu0 %v2490_v51  ;;  %v1931_v23 = vld [vmem:[%s2400_s1 + $0x6c] sm:$0xf0]  ;;  %v1929_v24 = vld [vmem:[%s2400_s1 + $0x64] sm:$0xf]  ;;  %v1669_v25 = vld [vmem:[%s2400_s1 + $0x70] sm:$0xf0]  ;;  %v1680_v27 = vor.u32 %v1930_v19, %v1677_v21 }
  0x5b   : > { %837 = vmatpush.bf16.msrb.mxu0 %v1732_v43  ;;  %614 = vmatmul.bf16.vlgmr.msra.gmra.mxu1 %v2490_v51  ;;  %v1668_v28 = vor.u32 %v1931_v23, %v1667_v22  ;;  %v1659_v29 = vld [vmem:[%s2400_s1 + $0x48] sm:$0xf]  ;;  %v1928_v30 = vld [vmem:[%s2400_s1 + $0x54] sm:$0xf0]  ;;  %v1926_v31 = vld [vmem:[%s2400_s1 + $0x4c] sm:$0xf]  ;;  %v1672_v32 = vor.u32 %v1929_v24, %v1669_v25 }
  0x5c   : > { %863 = vmatpush.bf16.msrb.mxu2 %v1740_v41  ;;  %850 = vmatpush.bf16.msrb.mxu1 %v1736_v47  ;;  %v1661_v33 = vld [vmem:[%s2400_s1 + $0x58] sm:$0xf0]  ;;  %v1651_v34 = vld [vmem:[%s2400_s1 + $0x40] sm:$0xf]  ;;  %v1927_v35 = vld [vmem:[%s2400_s1 + $0x4c] sm:$0xf0]  ;;  %v1660_v38 = vor.u32 %v1928_v30, %v1659_v29 }
  0x5d   : > { %876 = vmatpush.bf16.msrb.mxu3 %v1744_v42  ;;  %627 = vmatmul.bf16.vlgmr.msra.gmra.mxu2 %v2490_v51  ;;  %v1925_v36 = vld [vmem:[%s2400_s1 + $0x44] sm:$0xf]  ;;  %v1653_v37 = vld [vmem:[%s2400_s1 + $0x50] sm:$0xf0]  ;;  %v1664_v39 = vor.u32 %v1926_v31, %v1661_v33  ;;  %v1652_v40 = vor.u32 %v1927_v35, %v1651_v34  ;;  %v1643_v41 = vld [vmem:[%s2400_s1 + $0x28] sm:$0xf] }
  0x5e   : > { %640 = vmatmul.bf16.vlgmr.msra.gmra.mxu3 %v2490_v51  ;;  %v1924_v42 = vld [vmem:[%s2400_s1 + $0x34] sm:$0xf0]  ;;  %v1922_v43 = vld [vmem:[%s2400_s1 + $0x2c] sm:$0xf]  ;;  %v1656_v44 = vor.u32 %v1925_v36, %v1653_v37  ;;  %v1645_v45 = vld [vmem:[%s2400_s1 + $0x38] sm:$0xf0] }
  0x5f   : > { %838 = vmatpush.bf16.msrb.mxu0 %v1716_v56  ;;  %v1635_v46 = vld [vmem:[%s2400_s1 + $0x20] sm:$0xf]  ;;  %v1923_v47 = vld [vmem:[%s2400_s1 + $0x2c] sm:$0xf0]  ;;  %v1921_v48 = vld [vmem:[%s2400_s1 + $0x24] sm:$0xf]  ;;  %v1644_v50 = vor.u32 %v1924_v42, %v1643_v41  ;;  %v1648_v52 = vor.u32 %v1922_v43, %v1645_v45 }
  0x60   : > { %864 = vmatpush.bf16.msrb.mxu2 %v1724_v54  ;;  %851 = vmatpush.bf16.msrb.mxu1 %v1720_v60  ;;  %v1637_v49 = vld [vmem:[%s2400_s1 + $0x30] sm:$0xf0]  ;;  %v1636_v53 = vor.u32 %v1923_v47, %v1635_v46  ;;  %v1627_v54 = vld [vmem:[%s2400_s1 + $0x8] sm:$0xf]  ;;  %v1918_v56 = vld [vmem:[%s2400_s1 + $0xc] sm:$0xf] }
  0x61   : > { %877 = vmatpush.bf16.msrb.mxu3 %v1728_v55  ;;  %v1920_v55 = vld [vmem:[%s2400_s1 + $0x14] sm:$0xf0]  ;;  %v1640_v57 = vor.u32 %v1921_v48, %v1637_v49  ;;  %v1629_v58 = vld [vmem:[%s2400_s1 + $0x18] sm:$0xf0]  ;;  %v1619_v59 = vld [vmem:[%s2400_s1] sm:$0xf] }
  0x62   : > { %v1919_v60 = vld [vmem:[%s2400_s1 + $0xc] sm:$0xf0]  ;;  %v1917_v61 = vld [vmem:[%s2400_s1 + $0x4] sm:$0xf]  ;;  %v1621_v62 = vld [vmem:[%s2400_s1 + $0x10] sm:$0xf0]  ;;  %v1628_v63 = vor.u32 %v1920_v55, %v1627_v54  ;;  %v1632_v0 = vor.u32 %v1918_v56, %v1629_v58 }
  0x63   : > { %839 = vmatpush.bf16.msrb.mxu0 %v1700_v4  ;;  %v1620_v1 = vor.u32 %v1919_v60, %v1619_v59  ;;  %v1964_v4 = vld [vmem:[%s2406_s5 + $0x78] sm:$0xff]  ;;  %v1955_v5 = vld [vmem:[%s2406_s5 + $0x30] sm:$0xff]  ;;  %v1954_v9 = vld [vmem:[%s2406_s5 + $0x28] sm:$0xff]  ;;  %p1877_p0 = scmp.ne.s32.totalorder %s2249_s24, 1 }
  0x64   : > { %865 = vmatpush.bf16.msrb.mxu2 %v1708_v2  ;;  %852 = vmatpush.bf16.msrb.mxu1 %v1704_v8  ;;  %v1624_v2 = vor.u32 %v1917_v61, %v1621_v62  ;;  %v1963_v6 = vld [vmem:[%s2406_s5 + $0x70] sm:$0xff]  ;;  %v1972_v7 = vld [vmem:[%s2406_s5 + $0xb8] sm:$0xff]  ;;  %v1953_v12 = vld [vmem:[%s2406_s5 + $0x20] sm:$0xff]  ;;  %s2656_s20 = sld [smem:[#allocation17_spill]] (!%p1877_p0) }
  0x65   : > { %878 = vmatpush.bf16.msrb.mxu3 %v1712_v3  ;;  %v1956_v3 = vld [vmem:[%s2406_s5 + $0x38] sm:$0xff]  ;;  %v1971_v10 = vld [vmem:[%s2406_s5 + $0xb0] sm:$0xff]  ;;  %v1961_v13 = vld [vmem:[%s2406_s5 + $0x60] sm:$0xff]  ;;  %s2657_s29 = sld [smem:[#allocation19_spill]] (!%p1877_p0) }
  0x66   : > { %v1980_v8 = vld [vmem:[%s2406_s5 + $0xf8] sm:$0xff]  ;;  %v1979_v11 = vld [vmem:[%s2406_s5 + $0xf0] sm:$0xff]  ;;  %v1969_v18 = vld [vmem:[%s2406_s5 + $0xa0] sm:$0xff] }
  0x67   : > { %840 = vmatpush.bf16.msrb.mxu0 %v1684_v16  ;;  %v1952_v16 = vld [vmem:[%s2406_s5 + $0x18] sm:$0xff]  ;;  %v1977_v19 = vld [vmem:[%s2406_s5 + $0xe0] sm:$0xff]  ;;  %v1959_v21 = vld [vmem:[%s2406_s5 + $0x50] sm:$0xff] }
  0x68   : > { %866 = vmatpush.bf16.msrb.mxu2 %v1692_v14  ;;  %853 = vmatpush.bf16.msrb.mxu1 %v1688_v20  ;;  %v1970_v14 = vld [vmem:[%s2406_s5 + $0xa8] sm:$0xff]  ;;  %v1960_v17 = vld [vmem:[%s2406_s5 + $0x58] sm:$0xff]  ;;  %v1951_v20 = vld [vmem:[%s2406_s5 + $0x10] sm:$0xff] }
  0x69   : > { %879 = vmatpush.bf16.msrb.mxu3 %v1696_v15  ;;  %v1978_v15 = vld [vmem:[%s2406_s5 + $0xe8] sm:$0xff]  ;;  %v1968_v22 = vld [vmem:[%s2406_s5 + $0x98] sm:$0xff]  ;;  %v1957_v33 = vld [vmem:[%s2406_s5 + $0x40] sm:$0xff] }
  0x6a   : > { %v1976_v23 = vld [vmem:[%s2406_s5 + $0xd8] sm:$0xff]  ;;  %v1950_v24 = vld [vmem:[%s2406_s5 + $0x8] sm:$0xff]  ;;  %v1973_v41 = vld [vmem:[%s2406_s5 + $0xc0] sm:$0xff] }
  0x6b   : > { %841 = vmatpush.bf16.msrb.mxu0 %v1668_v28  ;;  %v1958_v25 = vld [vmem:[%s2406_s5 + $0x48] sm:$0xff]  ;;  %v1975_v28 = vld [vmem:[%s2406_s5 + $0xd0] sm:$0xff] }
  0x6c   : > { %867 = vmatpush.bf16.msrb.mxu2 %v1676_v26  ;;  %854 = vmatpush.bf16.msrb.mxu1 %v1672_v32  ;;  %v1949_v32 = vld [vmem:[%s2406_s5] sm:$0xff]  ;;  %v1966_v34 = vld [vmem:[%s2406_s5 + $0x88] sm:$0xff] }
  0x6d   : > { %880 = vmatpush.bf16.msrb.mxu3 %v1680_v27  ;;  %v1967_v27 = vld [vmem:[%s2406_s5 + $0x90] sm:$0xff]  ;;  %v1974_v35 = vld [vmem:[%s2406_s5 + $0xc8] sm:$0xff] }
  0x6f   : > { %842 = vmatpush.bf16.msrb.mxu0 %v1652_v40  ;;  %v1965_v40 = vld [vmem:[%s2406_s5 + $0x80] sm:$0xff] }
  0x70   : > { %868 = vmatpush.bf16.msrb.mxu2 %v1660_v38  ;;  %855 = vmatpush.bf16.msrb.mxu1 %v1656_v44 }
  0x71   : > { %881 = vmatpush.bf16.msrb.mxu3 %v1664_v39 }
  0x73   : > { %843 = vmatpush.bf16.msrb.mxu0 %v1636_v53 }
  0x74   : > { %869 = vmatpush.bf16.msrb.mxu2 %v1644_v50  ;;  %856 = vmatpush.bf16.msrb.mxu1 %v1640_v57 }
  0x75   : > { %882 = vmatpush.bf16.msrb.mxu3 %v1648_v52 }
  0x77   : > { %844 = vmatpush.bf16.msrb.mxu0 %v1620_v1 }
  0x78   : > { %870 = vmatpush.bf16.msrb.mxu2 %v1628_v63  ;;  %857 = vmatpush.bf16.msrb.mxu1 %v1624_v2 }
  0x79   : > { %883 = vmatpush.bf16.msrb.mxu3 %v1632_v0 }
  0x7a   : > { %845 = vmatmul.bf16.vlgmr.msrb.gmra.mxu0 %v2490_v51 }
  0x7b   : > { %871 = vmatmul.bf16.vlgmr.msrb.gmra.mxu2 %v2490_v51  ;;  %858 = vmatmul.bf16.vlgmr.msrb.gmra.mxu1 %v2490_v51 }
  0x7c   : > { %884 = vmatmul.bf16.vlgmr.msrb.gmra.mxu3 %v2490_v51  ;;  %1234 = vmatpush.bf16.msra.mxu0 %v1956_v3  ;;  %v1962_v51 = vld [vmem:[%s2406_s5 + $0x68] sm:$0xff] }
  0x7d   : > { %1247 = vmatpush.bf16.msra.mxu1 %v1964_v4  ;;  %1260 = vmatpush.bf16.msra.mxu2 %v1972_v7 }
  0x7e   : > { %1273 = vmatpush.bf16.msra.mxu3 %v1980_v8 }
  0x80   : > { %1235 = vmatpush.bf16.msra.mxu0 %v1955_v5 }
  0x81   : > { %1248 = vmatpush.bf16.msra.mxu1 %v1963_v6  ;;  %1261 = vmatpush.bf16.msra.mxu2 %v1971_v10 }
  0x82   : > { %1274 = vmatpush.bf16.msra.mxu3 %v1979_v11 }
  0x84   : > { %1236 = vmatpush.bf16.msra.mxu0 %v1954_v9 }
  0x85   : > { %1249 = vmatpush.bf16.msra.mxu1 %v1962_v51  ;;  %1262 = vmatpush.bf16.msra.mxu2 %v1970_v14 }
  0x86   : > { %1275 = vmatpush.bf16.msra.mxu3 %v1978_v15 }
  0x88   : > { %1237 = vmatpush.bf16.msra.mxu0 %v1953_v12 }
  0x89   : > { %1250 = vmatpush.bf16.msra.mxu1 %v1961_v13  ;;  %1263 = vmatpush.bf16.msra.mxu2 %v1969_v18 }
  0x8a   : > { %1276 = vmatpush.bf16.msra.mxu3 %v1977_v19 }
  0x8c   : > { %1238 = vmatpush.bf16.msra.mxu0 %v1952_v16 }
  0x8d   : > { %1251 = vmatpush.bf16.msra.mxu1 %v1960_v17  ;;  %1264 = vmatpush.bf16.msra.mxu2 %v1968_v22 }
  0x8e   : > { %1277 = vmatpush.bf16.msra.mxu3 %v1976_v23 }
  0x90   : > { %1239 = vmatpush.bf16.msra.mxu0 %v1951_v20 }
  0x91   : > { %1252 = vmatpush.bf16.msra.mxu1 %v1959_v21  ;;  %1265 = vmatpush.bf16.msra.mxu2 %v1967_v27 }
  0x92   : > { %1278 = vmatpush.bf16.msra.mxu3 %v1975_v28 }
  0x94   : > { %1240 = vmatpush.bf16.msra.mxu0 %v1950_v24 }
  0x95   : > { %1253 = vmatpush.bf16.msra.mxu1 %v1958_v25  ;;  %1266 = vmatpush.bf16.msra.mxu2 %v1966_v34 }
  0x96   : > { %1279 = vmatpush.bf16.msra.mxu3 %v1974_v35 }
  0x98   : > { %1241 = vmatpush.bf16.msra.mxu0 %v1949_v32 }
  0x99   : > { %1254 = vmatpush.bf16.msra.mxu1 %v1957_v33  ;;  %1267 = vmatpush.bf16.msra.mxu2 %v1965_v40 }
  0x9a   : > { %1280 = vmatpush.bf16.msra.mxu3 %v1973_v41 }
  0xd7   : > { %v2574_v26 = vpop.f32.mrf.mxu0 }
  0xd8   : > { %v1745_v29 = vmul.f32 -1.442695, %v2574_v26  ;;  %v2579_v30 = vpop.f32.mrf.mxu1 }
  0xd9   : > { %v1746_v31 = vmul.f32 -1.442695, %v2579_v30 }
  0xda   : > { %2060 = vpow2.f32 %v1745_v29 }
  0xdb   : > { %2062 = vpow2.f32 %v1746_v31 }
  0xdf   : > { %v604_v39 = vpop.f32.mrf.mxu0 }
  0xe0   : > { %v2586_v36 = vpop.f32.mrf.mxu2  ;;  %v2061_v42 = vpop.eup %2060 }
  0xe1   : > { %v1747_v37 = vmul.f32 -1.442695, %v2586_v36  ;;  %v2589_v38 = vpop.f32.mrf.mxu3  ;;  %v617_v44 = vpop.f32.mrf.mxu1  ;;  %v901_v46 = vadd.f32 1.0, %v2061_v42 }
  0xe2   : > { %v1748_v43 = vmul.f32 -1.442695, %v2589_v38  ;;  %v2063_v45 = vpop.eup %2062 }
  0xe3   : > { %2064 = vpow2.f32 %v1747_v37  ;;  %v902_v47 = vadd.f32 1.0, %v2063_v45  ;;  %v916_v58 = vand.u32 2147483648, %v901_v46  ;;  %vm910_vm0 = vweird.f32 %v901_v46 }
  0xe4   : > { %2066 = vpow2.f32 %v1748_v43  ;;  %v914_v0 = vand.u32 2147483647, %v901_v46 }
  0xe5   : > { %2068 = vrcp.f32 %v901_v46  ;;  %v931_v61 = vand.u32 2147483648, %v902_v47  ;;  %v929_v1 = vand.u32 2147483647, %v902_v47  ;;  %v917_v2 = vor.u32 1.1754944e-38, %v916_v58 }
  0xe6   : > { %2070 = vrcp.f32 %v902_v47  ;;  %vm925_vm2 = vweird.f32 %v902_v47  ;;  %vm915_vm5 = vcmp.eq.f32.partialorder %v914_v0, 8.507059e+37 }
  0xe7   : > { %v932_v6 = vor.u32 1.1754944e-38, %v931_v61  ;;  %vm930_vm7 = vcmp.eq.f32.partialorder %v929_v1, 8.507059e+37 }
  0xe8   : > { %v630_v48 = vpop.f32.mrf.mxu2 }
  0xe9   : > { %v2065_v49 = vpop.eup %2064  ;;  %v643_v50 = vpop.f32.mrf.mxu3 }
  0xea   : > { %v2067_v52 = vpop.eup %2066  ;;  %v903_v53 = vadd.f32 1.0, %v2065_v49 }
  0xeb   : > { %v2069_v54 = vpop.eup %2068  ;;  %v2594_v55 = vadd.f32 1.0, %v2067_v52 }
  0xec   : > { %v2071_v56 = vpop.eup %2070  ;;  %v906_v57 = vmul.f32 %v2069_v54, %v901_v46  ;;  %2072 = vrcp.f32 %v903_v53  ;;  %vm911_vm1 = vweird.f32 %v2069_v54  ;;  %v944_v16 = vand.u32 2147483647, %v903_v53 }
  0xed   : > { %v921_v59 = vmul.f32 %v2071_v56, %v902_v47  ;;  %2074 = vrcp.f32 %v2594_v55  ;;  %vm926_vm3 = vweird.f32 %v2071_v56  ;;  %vm912_vm4 = vmor %vm910_vm0, %vm911_vm1  ;;  %v946_v17 = vand.u32 2147483648, %v903_v53 }
  0xee   : > { %v907_v60 = vsub.f32 1.0, %v906_v57  ;;  %vm927_vm6 = vmor %vm925_vm2, %vm926_vm3  ;;  %vm940_vm9 = vweird.f32 %v903_v53  ;;  %v959_v22 = vand.u32 2147483647, %v2594_v55  ;;  %v961_v23 = vand.u32 2147483648, %v2594_v55 }
  0xef   : > { %v922_v62 = vsub.f32 1.0, %v921_v59  ;;  %v947_v29 = vor.u32 1.1754944e-38, %v946_v17  ;;  %vm955_vm12 = vweird.f32 %v2594_v55  ;;  %vm945_vm13 = vcmp.eq.f32.partialorder %v944_v16, 8.507059e+37  ;;  %v977_v59 = vld [vmem:[#allocation2] sm:$0xff] }
  0xf0   : > { %v908_v63 = vmul.f32 %v2069_v54, %v907_v60  ;;  %v962_v35 = vor.u32 1.1754944e-38, %v961_v23  ;;  %vm960_vm15 = vcmp.eq.f32.partialorder %v959_v22, 8.507059e+37 }
  0xf1   : > { %v923_v3 = vmul.f32 %v2071_v56, %v922_v62 }
  0xf2   : > { %v2073_v4 = vpop.eup %2072  ;;  %v909_v5 = vadd.f32 %v2069_v54, %v908_v63 }
  0xf3   : > { %v924_v7 = vadd.f32 %v2071_v56, %v923_v3  ;;  %v936_v8 = vmul.f32 %v2073_v4, %v903_v53  ;;  %v2075_v9 = vpop.eup %2074  ;;  %vm941_vm8 = vweird.f32 %v2073_v4 }
  0xf4   : > { %v913_v51 = vsel %vm912_vm4, %v2069_v54, %v909_v5  ;;  %v951_v13 = vmul.f32 %v2075_v9, %v2594_v55  ;;  %vm956_vm10 = vweird.f32 %v2075_v9  ;;  %vm942_vm11 = vmor %vm940_vm9, %vm941_vm8 }
  0xf5   : > { %v918_v10 = vsel %vm915_vm5, %v917_v2, %v913_v51  ;;  %v928_v11 = vsel %vm927_vm6, %v2071_v56, %v924_v7  ;;  %v937_v12 = vsub.f32 1.0, %v936_v8  ;;  %vm957_vm14 = vmor %vm955_vm12, %vm956_vm10 }
  0xf6   : > { %v965_v14 = vmul.f32 %v918_v10, %v2574_v26  ;;  %v933_v15 = vsel %vm930_vm7, %v932_v6, %v928_v11  ;;  %v952_v20 = vsub.f32 1.0, %v951_v13 }
  0xf7   : > { %v966_v18 = vmul.f32 %v933_v15, %v2579_v30  ;;  %v938_v19 = vmul.f32 %v2073_v4, %v937_v12  ;;  %v846_v21 = vpop.f32.mrf.mxu0 }
  0xf8   : > { %v969_v24 = vmul.f32 %v965_v14, %v846_v21  ;;  %v859_v25 = vpop.f32.mrf.mxu1  ;;  %v953_v28 = vmul.f32 %v2075_v9, %v952_v20 }
  0xf9   : > { %v939_v27 = vadd.f32 %v2073_v4, %v938_v19  ;;  %v970_v26 = vmul.f32 %v966_v18, %v859_v25 }
  0xfa   : > { %v973_v30 = vpack.c.bf16 %v969_v24, %v969_v24  ;;  %v954_v32 = vadd.f32 %v2075_v9, %v953_v28 }
  0xfb   : > { %v943_v31 = vsel %vm942_vm11, %v2073_v4, %v939_v27  ;;  %v974_v33 = vpack.c.bf16 %v970_v26, %v970_v26 }
  0xfc   : > { %v948_v34 = vsel %vm945_vm13, %v947_v29, %v943_v31  ;;  %1242 = vmatmul.bf16.vlgmr.msra.gmra.mxu0 %v973_v30  ;;  %v958_v40 = vsel %vm957_vm14, %v2075_v9, %v954_v32 }
  0xfd   : > { %v967_v39 = vmul.f32 %v948_v34, %v2586_v36  ;;  %1255 = vmatmul.bf16.vlgmr.msra.gmra.mxu1 %v974_v33  ;;  %v963_v42 = vsel %vm960_vm15, %v962_v35, %v958_v40 }
  0xfe   : > { %v872_v37 = vpop.f32.mrf.mxu2  ;;  %v968_v43 = vmul.f32 %v963_v42, %v2589_v38 }
  0xff   : > { %v885_v41 = vpop.f32.mrf.mxu3  ;;  %v971_v44 = vmul.f32 %v967_v39, %v872_v37  ;;  %v848_v45 = vpop.f32.mrf.mxu0 }
 0x100   : > { %v861_v46 = vpop.f32.mrf.mxu1  ;;  %v972_v48 = vmul.f32 %v968_v43, %v885_v41 }
 0x101   : > { %v975_v47 = vpack.c.bf16 %v971_v44, %v971_v44 }
 0x102   : > { %v976_v49 = vpack.c.bf16 %v972_v48, %v972_v48 }
 0x103   : > { %1268 = vmatmul.bf16.vlgmr.msra.gmra.mxu2 %v975_v47 }
 0x104   : > { %1281 = vmatmul.bf16.vlgmr.msra.gmra.mxu3 %v976_v49 }
 0x106   : > { %v874_v50 = vpop.f32.mrf.mxu2 }
 0x107   : > { %v887_v52 = vpop.f32.mrf.mxu3 }
 0x179   : > { %v1243_v53 = vpop.f32.mrf.mxu0 }
 0x17a   : > { %v1256_v54 = vpop.f32.mrf.mxu1 }
 0x17b   : > { %v1257_v56 = vadd.f32 %v1256_v54, %v1243_v53 }
 0x181   : > { %v1245_v36 = vpop.f32.mrf.mxu0 }
 0x182   : > { %v1258_v55 = vpop.f32.mrf.mxu1 }
 0x186   : > { %v1269_v57 = vpop.f32.mrf.mxu2 }
 0x187   : > { %v1270_v58 = vadd.f32 %v1269_v57, %v1257_v56  ;;  %v1282_v60 = vpop.f32.mrf.mxu3 }
 0x189   : > { %v1283_v38 = vadd.f32 %v1282_v60, %v1270_v58 }
 0x18b   : > { %v1286_v61 = vadd.f32 %v1283_v38, %v977_v59  ;;  %1291 = sbr.rel (%p1877_p0) target bundleno = 552 (0x228), region = 64 }
 0x18d   : > { %1287 = vst [vmem:[#allocation2] sm:$0xff] %v1286_v61 }
 0x18e   : > { %v1271_v62 = vpop.f32.mrf.mxu2 }
 0x18f   : > { %v1284_v63 = vpop.f32.mrf.mxu3 }
 0x190   : > { %v1293_v1 = vld [vmem:[%s2656_s20] sm:$0xf]  ;;  %v2265_v5 = vmov 128.0  }
 0x191   : > { %v1294_v2 = vunpack.c.l.bf16 %v1293_v1  ;;  %2077 = vrcp.f32 %v2265_v5  ;;  %v2076_v20 = vld [vmem:[%s2657_s29] ss:$0 sm:$0xff] }
 0x194   : > { %v1292_v0 = vld [vmem:[#allocation2] sm:$0xff] }
 0x195   : > { %v1295_v3 = vadd.f32 %v1294_v2, %v1292_v0 }
 0x197   : > { %v1296_v4 = vmul.f32 %v1295_v3, %v1295_v3  ;;  %v2078_v6 = vpop.eup %2077 }
 0x198   : > { %v1300_v7 = vmul.f32 128.0, %v2078_v6  ;;  %vm1304_vm0 = vweird.f32 %v2078_v6 }
 0x199   : > { %1297 = vadd.xlane.f32.xlu0 %v1296_v4 }
 0x19a   : > { %v1301_v8 = vsub.f32 1.0, %v1300_v7 }
 0x19c   : > { %v1302_v9 = vmul.f32 %v2078_v6, %v1301_v8 }
 0x19e   : > { %v1303_v51 = vadd.f32 %v2078_v6, %v1302_v9 }
 0x1a0   : > { %v1305_v10 = vsel %vm1304_vm0, %v2078_v6, %v1303_v51 }
 0x20c   : > { %v1298_v11 = vpop.xlane.xlu0 %1297 }
 0x20d   : > { %v1306_v12 = vmul.f32 %v1305_v10, %v1298_v11 }
 0x20f   : > { %v1307_v13 = vadd.f32 1e-06, %v1306_v12 }
 0x211   : > { %2079 = vrsqrt.f32 %v1307_v13  ;;  %vm1314_vm2 = vweird.f32 %v1307_v13 }
 0x217   : > { %v2080_v14 = vpop.eup %2079 }
 0x218   : > { %v1309_v15 = vmul.f32 %v2080_v14, %v1307_v13  ;;  %vm1315_vm1 = vweird.f32 %v2080_v14 }
 0x219   : > { %vm1316_vm3 = vmor %vm1314_vm2, %vm1315_vm1 }
 0x21a   : > { %v1310_v16 = vmul.f32 %v2080_v14, %v1309_v15 }
 0x21c   : > { %v1311_v17 = vmul.f32 0.5, %v1310_v16 }
 0x21e   : > { %v1312_v18 = vsub.f32 1.5, %v1311_v17 }
 0x220   : > { %v1313_v19 = vmul.f32 %v2080_v14, %v1312_v18 }
 0x222   : > { %v1317_v21 = vsel %vm1316_vm3, %v2080_v14, %v1313_v19 }
 0x223   : > { %v1318_v22 = vmul.f32 %v1317_v21, %v1295_v3 }
 0x225   : > { %v1323_v23 = vmul.f32 %v2076_v20, %v1318_v22 }
 0x227   : > { %1324 = vst [vmem:[#allocation9] sm:$0xff] %v1323_v23 }
 0x228 PF: > { %p2002_p1 = scmp.eq.s32.totalorder %s2331_s27, 1  ;;  %s2658_s16 = sld [smem:[#allocation20_spill]] }
 0x229   : > { %s2266_s13 = smov [#allocation9]  }
 0x22a   : > { %s1333_s17 = sshll.u32 %s2266_s13, 4  ;;  %s1334_s17 = int_to_ptr.vmem [resolvable:$true] %s1333_s17 }
 0x22e   : > { %s1335_s18 = sshll.u32 %s2658_s16, 4  ;;  %s1336_s18 = int_to_ptr.hbm [resolvable:$true] %s1335_s18 }
 0x22f   : > { %1988 = dma.vmem_to_hbm [thread:$0]  (%p2002_p1), %s1334_s17, 128, %s1336_s18, [#allocation5]  }
 0x230   : > { %2232 = dma.done.wait (%p2002_p1), [#allocation5], 128  }
 0x231   : > { %2234 = vsyncadd (%p2002_p1), [#allocation5], 4294967168 }
 0x232 PF: > { %s2659_s19 = sld [smem:[#allocation14_spill]]  ;;  %s2663_s21 = smov %s2241_s22 }
 0x233   : > { %s2660_s10 = sld [smem:[#allocation13_spill]]  ;;  %s2665_s24 = smov %s2253_s25 }
 0x234   : > { %s2661_s23 = sld [smem:[#allocation16_spill]] }
 0x235   : > { %s2662_s27 = sld [smem:[#allocation15_spill]] }
 0x238   : > { %s23_s26 = sadd.s32 1, %s2659_s19  }
 0x239   : > { %p20_p2 = scmp.ge.s32.totalorder %s23_s26, 4   ;;  %s2664_s22 = smov %s2660_s10 }
 0x23b   : > { %s2666_s25 = smov %s2662_s27  ;;  %22 = sbr.rel (!%p20_p2) target bundleno = 12 (0xc), region = 120 }
 0x240   :  { %1349 = vsyncpa [#allocation4], 1 }
 0x241   :  { %1351 = vsyncpa [#allocation4 + $0x1], 1 }
 0x242   :  { %1352 = vsyncpa [#allocation7], 1 }
 0x243   :  { %1354 = vsyncpa [#allocation7 + $0x1], 1 }
 0x244   :  { %1355 = vsyncpa [#allocation5], 1 }
 0x245   :  { %1357 = vsyncpa [#allocation5 + $0x1], 1 }

</bundles_post_ra>
